<compile_context>
chip_gen: v6e
topology: v6e:2x2x1
jax: 0.10.0
libtpu: 0.0.40
codegen_flags: <defaults>
</compile_context>

<pallas_src>
import functools

import jax
import jax.numpy as jnp
import numpy as np
from jax import lax
from jax.experimental import pallas as pl
from jax.experimental.pallas import tpu as pltpu


# ----------------------------------------------------------------------------
# Fused Pallas kernel: all clauses, all infer steps, and the softor merge.
# ----------------------------------------------------------------------------
def _fused_infer_kernel(x_ref, idx_ref, out_ref, oh_ref, r_ref, *,
                        C, Gp, S, L, infer_step, gamma):
    """x_ref:(B,Gp) f32, idx_ref:(C,1,N) i32, out_ref:(C,B,Gp) f32,
    oh_ref:(C,Gp,N) f32 scratch, r_ref:(C,B,Gp) f32 scratch, N = S*L*Gp."""
    N = S * L * Gp
    inv_g = 1.0 / gamma

    x0 = x_ref[...]                                          # (B, Gp)
    row_iota = lax.broadcasted_iota(jnp.int32, (Gp, N), 0)

    # Hoisted out of the infer_step loop: the one-hot gather matrices depend
    # only on the (static) clause indices, so build them once and keep them
    # resident in VMEM scratch for every step's matmul.
    #   oh[c, k, (s*L + l)*Gp + g] = (I[c, g, s, l] == k)
    # TODO(synk): for very large G on v7x (64 MiB VMEM) tile this per
    # substitution, or stream a packed int8 one-hot from HBM over a clause grid
    # axis, instead of keeping all C (Gp, N) slabs resident.
    # TODO(synk): bf16 one-hot + bf16 R would halve this buffer and feed the
    # MXU natively, but bf16-rounded R sits right at the 1e-3 rtol edge and a
    # mixed f32 x bf16 dot just re-promotes; kept f32 for correctness.
    for c in range(C):
        oh_ref[c] = (row_iota == idx_ref[c]).astype(jnp.float32)
        r_ref[c] = x0

    def _approx_inv(v):
        # EUP reciprocal + one Newton step (error ~1e-7, inside the tolerance).
        r = pl.reciprocal(v, approx=True)
        return r * (2.0 - v * r)

    def step(_, carry):
        Rs = [r_ref[c] for c in range(C)]

        # ---- r_R[c] = cs[c](R[c]) ------------------------------------------
        rR = []
        for c in range(C):
            # Single wide MXU matmul fuses all L*S gathers (exact in f32):
            #   y[b, (s*L + l)*Gp + g] = R[c][b, I[c, g, s, l]]
            # TODO(synk): for tiny B the MXU row tile is mostly padding; fold
            # several batches per call (or use a VPU gather) when B << 128.
            y = jnp.dot(Rs[c], oh_ref[c], preferred_element_type=jnp.float32)
            yneg = y * (-inv_g)                              # hoisted -1/gamma

            # softand over L for each substitution s (static loops, S, L small)
            prods = []
            for s in range(S):
                lits = [yneg[:, (s * L + l) * Gp:(s * L + l + 1) * Gp]
                        for l in range(L)]                   # each (B, Gp)
                m = lits[0]
                for l in range(1, L):
                    m = jnp.maximum(m, lits[l])
                se = jnp.exp(lits[0] - m)
                for l in range(1, L):
                    se = se + jnp.exp(lits[l] - m)
                prods.append(-gamma * (m + jnp.log(se)))     # (B, Gp)

            # softand tail: shift so the global min over (B, Gp, S) is >= 0.
            mn = jnp.min(prods[0], keepdims=True)
            for s in range(1, S):
                mn = jnp.minimum(mn, jnp.min(prods[s], keepdims=True))
            shift = jnp.minimum(mn, 0.0)                     # scalar-folded
            shifted = [p - shift for p in prods]

            # softor over S.
            pos = [p * inv_g for p in shifted]
            m2 = pos[0]
            for s in range(1, S):
                m2 = jnp.maximum(m2, pos[s])
            se2 = jnp.exp(pos[0] - m2)
            for s in range(1, S):
                se2 = se2 + jnp.exp(pos[s] - m2)
            cval = gamma * (m2 + jnp.log(se2))               # (B, Gp)

            # softor tail: divide by global max iff it exceeds 1 (clamped).
            mx = jnp.max(cval, keepdims=True)                # (1, 1)
            rR.append(cval * _approx_inv(jnp.maximum(mx, 1.0)))

        # ---- R = softor([R, r_R], dim=2): pairwise LSE + global max norm ----
        merged = []
        gmx = None
        for c in range(C):
            a = Rs[c] * inv_g
            b = rR[c] * inv_g
            m = jnp.maximum(a, b)
            mc = gamma * (m + jnp.log(jnp.exp(a - m) + jnp.exp(b - m)))
            merged.append(mc)
            cm = jnp.max(mc, keepdims=True)
            gmx = cm if gmx is None else jnp.maximum(gmx, cm)
        inv_gmx = _approx_inv(jnp.maximum(gmx, 1.0))
        for c in range(C):
            r_ref[c] = merged[c] * inv_gmx
        return carry

    lax.fori_loop(0, infer_step, step, 0, unroll=(infer_step <= 4))

    for c in range(C):
        out_ref[c] = r_ref[c]


# ----------------------------------------------------------------------------
# Wrapper
# ----------------------------------------------------------------------------
def clause_infer_forward(x_pad, idx_flat, *, C, Gp, S, L, infer_step, gamma):
    B = x_pad.shape[0]
    N = S * L * Gp
    kern = functools.partial(_fused_infer_kernel, C=C, Gp=Gp, S=S, L=L,
                             infer_step=infer_step, gamma=gamma)

    # Generation-aware VMEM budget (cap at 80% of physical).
    try:
        phys_vmem = int(pltpu.get_tpu_info().vmem_capacity_bytes)
    except Exception:  # pragma: no cover - conservative fallback
        phys_vmem = 128 * 1024 * 1024
    est_bytes = 4 * (
        B * Gp + C * N + 2 * C * B * Gp        # I/O slabs (double-buffered out)
        + C * Gp * N + C * B * Gp              # hoisted one-hot + resident R
        + 2 * Gp * N                           # int32 iota + one one-hot temp
        + 2 * B * N                            # y / yneg
        + (S + 8) * B * Gp)                    # softand/softor temporaries
    vmem_limit = int(min(int(0.8 * phys_vmem),
                         max(32 * 1024 * 1024, 2 * est_bytes)))

    flops = int(2 * infer_step * C * B * Gp * N
                + infer_step * C * (4 * S * L + 6 * S + 12) * B * Gp)
    transcendentals = int(infer_step * C * (S * L + S + 4) * B * Gp)
    bytes_accessed = int(4 * (B * Gp + C * N + C * B * Gp))

    # TODO(synk): on v7x, split clauses across the two TensorCores via
    # pl.core_map and exchange only the per-step global max scalar; single TC
    # kept here for portability across v5e/v6e/v7x.
    return pl.pallas_call(
        kern,
        out_shape=jax.ShapeDtypeStruct((C, B, Gp), jnp.float32),
        grid=(1,),
        in_specs=[
            pl.BlockSpec((B, Gp), lambda i: (0, 0)),
            pl.BlockSpec((C, 1, N), lambda i: (0, 0, 0)),
        ],
        out_specs=pl.BlockSpec((C, B, Gp), lambda i: (0, 0, 0)),
        scratch_shapes=[
            pltpu.VMEM((C, Gp, N), jnp.float32),   # hoisted one-hot matrices
            pltpu.VMEM((C, B, Gp), jnp.float32),   # R, resident across steps
        ],
        compiler_params=pltpu.CompilerParams(
            dimension_semantics=("arbitrary",),
            vmem_limit_bytes=vmem_limit,
        ),
        cost_estimate=pl.CostEstimate(flops=flops,
                                      transcendentals=transcendentals,
                                      bytes_accessed=bytes_accessed),
    )(x_pad, idx_flat)


class ClauseInferModulePallas:
    """JAX/Pallas equivalent of ClauseInferModule (train=False, I_bk=I_pi=None)."""

    def __init__(self, I, infer_step, gamma=0.001, m=1):
        I_np = np.asarray(I)
        C, G, S, L = I_np.shape
        assert m == C, "Invalid m and C: %d and %d" % (m, C)
        self.C, self.G, self.S, self.L = C, G, S, L
        self.infer_step = infer_step
        self.gamma = float(gamma)
        # init_identity_weights(I): diag(100) — kept for parity, unused by forward.
        self.W = 100.0 * jnp.eye(C, dtype=jnp.float32)

        # Pad the atom axis to a multiple of 128 lanes.  Padded g positions
        # simply duplicate g = 0's indices, so the padded columns of every
        # intermediate equal column 0 and leave all global min/max unchanged.
        self.Gp = ((G + 127) // 128) * 128
        if self.Gp > G:
            pad = np.broadcast_to(I_np[:, 0:1, :, :], (C, self.Gp - G, S, L))
            I_pad = np.concatenate([I_np, pad], axis=1)
        else:
            I_pad = I_np
        # Raw gather indices only (no dense one-hot in HBM): column
        # (s*L + l)*Gp + g of clause c holds I[c, g, s, l].
        idx = np.ascontiguousarray(
            np.transpose(I_pad, (0, 2, 3, 1)).reshape(C, 1, S * L * self.Gp))
        self.idx = jnp.asarray(idx, dtype=jnp.int32)

    def __call__(self, x, atoms=None):
        # TODO(synk): r_pi / r_bk branches (I_pi / I_bk not None) need
        # Python-level symbolic atom.pred.name scanning; only the default
        # I_pi=None path of forward() is implemented, matching the defaults.
        x = jnp.asarray(x, jnp.float32)
        B = x.shape[0]
        if self.Gp > self.G:
            x_pad = jnp.concatenate(
                [x, jnp.broadcast_to(x[:, 0:1], (B, self.Gp - self.G))], axis=1)
        else:
            x_pad = x
        out = clause_infer_forward(
            x_pad, self.idx, C=self.C, Gp=self.Gp, S=self.S, L=self.L,
            infer_step=self.infer_step, gamma=self.gamma)
        return out[:, :, :self.G]


# ----------------------------------------------------------------------------
# Pure-JAX reference (mirrors the torch code) for validation
# ----------------------------------------------------------------------------
def _ref_logsumexp(x, axis):
    m = jnp.max(x, axis=axis, keepdims=True)
    out = m + jnp.log(jnp.sum(jnp.exp(x - m), axis=axis, keepdims=True))
    return jnp.squeeze(out, axis=axis)


def _ref_softand(x, axis, gamma):
    r = -gamma * _ref_logsumexp(-x / gamma, axis)
    return jnp.where(r.min() < 0, r - r.min(), r)


def _ref_softor(x, axis, gamma):
    r = gamma * _ref_logsumexp(x / gamma, axis)
    return jnp.where(r.max() > 1.0, r / r.max(), r)


def _ref_clause(x, I_i, gamma):
    gathered = x[:, I_i]                      # (B, G, S, L)
    prod = _ref_softand(gathered, 3, gamma)   # (B, G, S)
    return _ref_softor(prod, 2, gamma)        # (B, G)


def _ref_forward(x, I, infer_step, gamma):
    C, G, S, L = I.shape
    B = x.shape[0]
    R = jnp.broadcast_to(x[None], (C, B, G)).astype(jnp.float32)
    for _ in range(infer_step):
        rR = jnp.stack([_ref_clause(R[i], I[i], gamma) for i in range(C)], 0)
        R = _ref_softor(jnp.stack([R, rR], axis=2), 2, gamma)
    return R


# ----------------------------------------------------------------------------
if __name__ == "__main__":
    key = jax.random.PRNGKey(0)
    configs = [
        dict(C=2, G=8, S=3, L=2, B=2, infer_step=2, gamma=0.001),
        dict(C=3, G=20, S=2, L=3, B=4, infer_step=3, gamma=0.001),
    ]
    for cfg in configs:
        C, G, S, L, B = cfg["C"], cfg["G"], cfg["S"], cfg["L"], cfg["B"]
        key, k_idx, k_val = jax.random.split(key, 3)
        I = jax.random.randint(k_idx, (C, G, S, L), 0, G, dtype=jnp.int32)
        x = jax.random.uniform(k_val, (B, G), dtype=jnp.float32)

        module = ClauseInferModulePallas(I, cfg["infer_step"],
                                         gamma=cfg["gamma"], m=C)
        out = jax.block_until_ready(module(x, atoms=None))

        ref = _ref_forward(x, I, cfg["infer_step"], cfg["gamma"])
        assert out.shape == (C, B, G)
        assert np.all(np.isfinite(np.asarray(out)))
        err = float(np.max(np.abs(np.asarray(out) - np.asarray(ref))))
        assert np.allclose(np.asarray(out), np.asarray(ref),
                           atol=1e-3, rtol=1e-3), ("max abs err = %g" % err)

    print("KERNEL_OK")
</pallas_src>

<mosaic_0001>
module attributes {stable_mosaic.version = 11 : i64} {
  func.func @_fused_infer_kernel(%arg0: i32, %arg1: memref<2x128xf32, #tpu.memory_space<vmem>>, %arg2: memref<2x1x768xi32, #tpu.memory_space<vmem>>, %arg3: memref<2x2x128xf32, #tpu.memory_space<vmem>>, %arg4: memref<2x128x768xf32, #tpu.memory_space<vmem>>, %arg5: memref<2x2x128xf32, #tpu.memory_space<vmem>>) attributes {dimension_semantics = [#tpu.dimension_semantics<arbitrary>], iteration_bounds = array<i64: 1>, scalar_prefetch = 0 : i64, scratch_operands = 2 : i64, tpu.core_type = #tpu.core_type<tc>, window_params = [{pipeline_mode = #tpu.pipeline_mode<synchronous>, transform_indices = @transform_0, window_bounds = array<i64: 2, 128>}, {pipeline_mode = #tpu.pipeline_mode<synchronous>, transform_indices = @transform_1, window_bounds = array<i64: 2, 1, 768>}, {pipeline_mode = #tpu.pipeline_mode<synchronous>, transform_indices = @transform_2, window_bounds = array<i64: 2, 2, 128>}]} {
    %c0 = arith.constant 0 : index
    %c0_0 = arith.constant 0 : index
    %0 = vector.load %arg1[%c0, %c0_0] : memref<2x128xf32, #tpu.memory_space<vmem>>, vector<2x128xf32>
    %1 = tpu.iota {dimensions = array<i32: 0>} : vector<128x768xi32>
    %c0_1 = arith.constant 0 : index
    %c0_2 = arith.constant 0 : index
    %c0_3 = arith.constant 0 : index
    %2 = vector.load %arg2[%c0_1, %c0_2, %c0_3] : memref<2x1x768xi32, #tpu.memory_space<vmem>>, vector<1x1x768xi32>
    %3 = vector.shape_cast %2 : vector<1x1x768xi32> to vector<1x768xi32>
    %4 = vector.broadcast %3 : vector<1x768xi32> to vector<128x768xi32>
    %5 = arith.cmpi eq, %1, %4 : vector<128x768xi32>
    %6 = arith.extui %5 : vector<128x768xi1> to vector<128x768xi32>
    %7 = arith.sitofp %6 : vector<128x768xi32> to vector<128x768xf32>
    %c0_4 = arith.constant 0 : index
    %c0_5 = arith.constant 0 : index
    %c0_6 = arith.constant 0 : index
    %8 = vector.load %arg4[%c0_4, %c0_5, %c0_6] : memref<2x128x768xf32, #tpu.memory_space<vmem>>, vector<1x128x768xf32>
    %9 = vector.shape_cast %8 : vector<1x128x768xf32> to vector<128x768xf32>
    %10 = vector.shape_cast %7 : vector<128x768xf32> to vector<1x128x768xf32>
    tpu.vector_store %arg4[%c0_4, %c0_5, %c0_6], %10 {strides = array<i32>} : memref<2x128x768xf32, #tpu.memory_space<vmem>>, vector<1x128x768xf32>,
    %c0_7 = arith.constant 0 : index
    %c0_8 = arith.constant 0 : index
    %c0_9 = arith.constant 0 : index
    %11 = vector.load %arg5[%c0_7, %c0_8, %c0_9] : memref<2x2x128xf32, #tpu.memory_space<vmem>>, vector<1x2x128xf32>
    %12 = vector.shape_cast %11 : vector<1x2x128xf32> to vector<2x128xf32>
    %13 = vector.shape_cast %0 : vector<2x128xf32> to vector<1x2x128xf32>
    tpu.vector_store %arg5[%c0_7, %c0_8, %c0_9], %13 {strides = array<i32>} : memref<2x2x128xf32, #tpu.memory_space<vmem>>, vector<1x2x128xf32>,
    %c1 = arith.constant 1 : index
    %c0_10 = arith.constant 0 : index
    %c0_11 = arith.constant 0 : index
    %14 = vector.load %arg2[%c1, %c0_10, %c0_11] : memref<2x1x768xi32, #tpu.memory_space<vmem>>, vector<1x1x768xi32>
    %15 = vector.shape_cast %14 : vector<1x1x768xi32> to vector<1x768xi32>
    %16 = vector.broadcast %15 : vector<1x768xi32> to vector<128x768xi32>
    %17 = arith.cmpi eq, %1, %16 : vector<128x768xi32>
    %18 = arith.extui %17 : vector<128x768xi1> to vector<128x768xi32>
    %19 = arith.sitofp %18 : vector<128x768xi32> to vector<128x768xf32>
    %c1_12 = arith.constant 1 : index
    %c0_13 = arith.constant 0 : index
    %c0_14 = arith.constant 0 : index
    %20 = vector.load %arg4[%c1_12, %c0_13, %c0_14] : memref<2x128x768xf32, #tpu.memory_space<vmem>>, vector<1x128x768xf32>
    %21 = vector.shape_cast %20 : vector<1x128x768xf32> to vector<128x768xf32>
    %22 = vector.shape_cast %19 : vector<128x768xf32> to vector<1x128x768xf32>
    tpu.vector_store %arg4[%c1_12, %c0_13, %c0_14], %22 {strides = array<i32>} : memref<2x128x768xf32, #tpu.memory_space<vmem>>, vector<1x128x768xf32>,
    %c1_15 = arith.constant 1 : index
    %c0_16 = arith.constant 0 : index
    %c0_17 = arith.constant 0 : index
    %23 = vector.load %arg5[%c1_15, %c0_16, %c0_17] : memref<2x2x128xf32, #tpu.memory_space<vmem>>, vector<1x2x128xf32>
    %24 = vector.shape_cast %23 : vector<1x2x128xf32> to vector<2x128xf32>
    %25 = vector.shape_cast %0 : vector<2x128xf32> to vector<1x2x128xf32>
    tpu.vector_store %arg5[%c1_15, %c0_16, %c0_17], %25 {strides = array<i32>} : memref<2x2x128xf32, #tpu.memory_space<vmem>>, vector<1x2x128xf32>,
    %c0_i32 = arith.constant 0 : i32
    %c0_18 = arith.constant 0 : index
    %c0_19 = arith.constant 0 : index
    %c0_20 = arith.constant 0 : index
    %26 = vector.load %arg5[%c0_18, %c0_19, %c0_20] : memref<2x2x128xf32, #tpu.memory_space<vmem>>, vector<1x2x128xf32>
    %27 = vector.shape_cast %26 : vector<1x2x128xf32> to vector<2x128xf32>
    %c1_21 = arith.constant 1 : index
    %c0_22 = arith.constant 0 : index
    %c0_23 = arith.constant 0 : index
    %28 = vector.load %arg5[%c1_21, %c0_22, %c0_23] : memref<2x2x128xf32, #tpu.memory_space<vmem>>, vector<1x2x128xf32>
    %29 = vector.shape_cast %28 : vector<1x2x128xf32> to vector<2x128xf32>
    %c0_24 = arith.constant 0 : index
    %c0_25 = arith.constant 0 : index
    %c0_26 = arith.constant 0 : index
    %30 = vector.load %arg4[%c0_24, %c0_25, %c0_26] : memref<2x128x768xf32, #tpu.memory_space<vmem>>, vector<1x128x768xf32>
    %31 = vector.shape_cast %30 : vector<1x128x768xf32> to vector<128x768xf32>
    %cst = arith.constant dense<0.000000e+00> : vector<2x768xf32>
    %32 = tpu.matmul %27, %31, %cst {dimension_numbers = #tpu.dot_dimension_numbers<[1], [0], [0], [1], [0, 0, 1, 1], [], []>} : vector<2x128xf32>, vector<128x768xf32>, vector<2x768xf32> -> vector<2x768xf32>
    %cst_27 = arith.constant -1.000000e+03 : f32
    %33 = vector.broadcast %cst_27 : f32 to vector<2x768xf32>
    %34 = arith.mulf %32, %33 : vector<2x768xf32>
    %35 = vector.extract_strided_slice %34 {offsets = [0, 0], sizes = [2, 128], strides = [1, 1]} : vector<2x768xf32> to vector<2x128xf32>
    %36 = vector.extract_strided_slice %34 {offsets = [0, 128], sizes = [2, 128], strides = [1, 1]} : vector<2x768xf32> to vector<2x128xf32>
    %37 = arith.maximumf %35, %36 : vector<2x128xf32>
    %38 = arith.subf %35, %37 : vector<2x128xf32>
    %39 = math.exp %38 : vector<2x128xf32>
    %40 = arith.subf %36, %37 : vector<2x128xf32>
    %41 = math.exp %40 : vector<2x128xf32>
    %42 = arith.addf %39, %41 : vector<2x128xf32>
    %43 = math.log %42 : vector<2x128xf32>
    %44 = arith.addf %37, %43 : vector<2x128xf32>
    %cst_28 = arith.constant -1.000000e-03 : f32
    %45 = vector.broadcast %cst_28 : f32 to vector<2x128xf32>
    %46 = arith.mulf %45, %44 : vector<2x128xf32>
    %47 = vector.extract_strided_slice %34 {offsets = [0, 256], sizes = [2, 128], strides = [1, 1]} : vector<2x768xf32> to vector<2x128xf32>
    %48 = vector.extract_strided_slice %34 {offsets = [0, 384], sizes = [2, 128], strides = [1, 1]} : vector<2x768xf32> to vector<2x128xf32>
    %49 = arith.maximumf %47, %48 : vector<2x128xf32>
    %50 = arith.subf %47, %49 : vector<2x128xf32>
    %51 = math.exp %50 : vector<2x128xf32>
    %52 = arith.subf %48, %49 : vector<2x128xf32>
    %53 = math.exp %52 : vector<2x128xf32>
    %54 = arith.addf %51, %53 : vector<2x128xf32>
    %55 = math.log %54 : vector<2x128xf32>
    %56 = arith.addf %49, %55 : vector<2x128xf32>
    %cst_29 = arith.constant -1.000000e-03 : f32
    %57 = vector.broadcast %cst_29 : f32 to vector<2x128xf32>
    %58 = arith.mulf %57, %56 : vector<2x128xf32>
    %59 = vector.extract_strided_slice %34 {offsets = [0, 512], sizes = [2, 128], strides = [1, 1]} : vector<2x768xf32> to vector<2x128xf32>
    %60 = vector.extract_strided_slice %34 {offsets = [0, 640], sizes = [2, 128], strides = [1, 1]} : vector<2x768xf32> to vector<2x128xf32>
    %61 = arith.maximumf %59, %60 : vector<2x128xf32>
    %62 = arith.subf %59, %61 : vector<2x128xf32>
    %63 = math.exp %62 : vector<2x128xf32>
    %64 = arith.subf %60, %61 : vector<2x128xf32>
    %65 = math.exp %64 : vector<2x128xf32>
    %66 = arith.addf %63, %65 : vector<2x128xf32>
    %67 = math.log %66 : vector<2x128xf32>
    %68 = arith.addf %61, %67 : vector<2x128xf32>
    %cst_30 = arith.constant -1.000000e-03 : f32
    %69 = vector.broadcast %cst_30 : f32 to vector<2x128xf32>
    %70 = arith.mulf %69, %68 : vector<2x128xf32>
    %71 = vector.shape_cast %46 : vector<2x128xf32> to vector<1x2x128xf32>
    %cst_31 = arith.constant dense<0x7F800000> : vector<1xf32>
    %72 = vector.multi_reduction <minimumf>, %71, %cst_31 [1, 2] : vector<1x2x128xf32> to vector<1xf32>
    %73 = vector.shape_cast %72 : vector<1xf32> to vector<1x1x1xf32>
    %74 = vector.extract %73[0, 0, 0] : f32 from vector<1x1x1xf32>
    %75 = vector.broadcast %74 : f32 to vector<1x1xf32>
    %76 = vector.shape_cast %58 : vector<2x128xf32> to vector<1x2x128xf32>
    %cst_32 = arith.constant dense<0x7F800000> : vector<1xf32>
    %77 = vector.multi_reduction <minimumf>, %76, %cst_32 [1, 2] : vector<1x2x128xf32> to vector<1xf32>
    %78 = vector.shape_cast %77 : vector<1xf32> to vector<1x1x1xf32>
    %79 = vector.extract %78[0, 0, 0] : f32 from vector<1x1x1xf32>
    %80 = vector.broadcast %79 : f32 to vector<1x1xf32>
    %81 = arith.minimumf %75, %80 : vector<1x1xf32>
    %82 = vector.shape_cast %70 : vector<2x128xf32> to vector<1x2x128xf32>
    %cst_33 = arith.constant dense<0x7F800000> : vector<1xf32>
    %83 = vector.multi_reduction <minimumf>, %82, %cst_33 [1, 2] : vector<1x2x128xf32> to vector<1xf32>
    %84 = vector.shape_cast %83 : vector<1xf32> to vector<1x1x1xf32>
    %85 = vector.extract %84[0, 0, 0] : f32 from vector<1x1x1xf32>
    %86 = vector.broadcast %85 : f32 to vector<1x1xf32>
    %87 = arith.minimumf %81, %86 : vector<1x1xf32>
    %cst_34 = arith.constant 0.000000e+00 : f32
    %88 = vector.broadcast %cst_34 : f32 to vector<1x1xf32>
    %89 = arith.minimumf %87, %88 : vector<1x1xf32>
    %90 = vector.broadcast %89 : vector<1x1xf32> to vector<2x128xf32>
    %91 = arith.subf %46, %90 : vector<2x128xf32>
    %92 = vector.broadcast %89 : vector<1x1xf32> to vector<2x128xf32>
    %93 = arith.subf %58, %92 : vector<2x128xf32>
    %94 = vector.broadcast %89 : vector<1x1xf32> to vector<2x128xf32>
    %95 = arith.subf %70, %94 : vector<2x128xf32>
    %cst_35 = arith.constant 1.000000e+03 : f32
    %96 = vector.broadcast %cst_35 : f32 to vector<2x128xf32>
    %97 = arith.mulf %91, %96 : vector<2x128xf32>
    %cst_36 = arith.constant 1.000000e+03 : f32
    %98 = vector.broadcast %cst_36 : f32 to vector<2x128xf32>
    %99 = arith.mulf %93, %98 : vector<2x128xf32>
    %cst_37 = arith.constant 1.000000e+03 : f32
    %100 = vector.broadcast %cst_37 : f32 to vector<2x128xf32>
    %101 = arith.mulf %95, %100 : vector<2x128xf32>
    %102 = arith.maximumf %97, %99 : vector<2x128xf32>
    %103 = arith.maximumf %102, %101 : vector<2x128xf32>
    %104 = arith.subf %97, %103 : vector<2x128xf32>
    %105 = math.exp %104 : vector<2x128xf32>
    %106 = arith.subf %99, %103 : vector<2x128xf32>
    %107 = math.exp %106 : vector<2x128xf32>
    %108 = arith.addf %105, %107 : vector<2x128xf32>
    %109 = arith.subf %101, %103 : vector<2x128xf32>
    %110 = math.exp %109 : vector<2x128xf32>
    %111 = arith.addf %108, %110 : vector<2x128xf32>
    %112 = math.log %111 : vector<2x128xf32>
    %113 = arith.addf %103, %112 : vector<2x128xf32>
    %cst_38 = arith.constant 1.000000e-03 : f32
    %114 = vector.broadcast %cst_38 : f32 to vector<2x128xf32>
    %115 = arith.mulf %114, %113 : vector<2x128xf32>
    %116 = vector.shape_cast %115 : vector<2x128xf32> to vector<1x2x128xf32>
    %cst_39 = arith.constant dense<0xFF800000> : vector<1xf32>
    %117 = vector.multi_reduction <maximumf>, %116, %cst_39 [1, 2] : vector<1x2x128xf32> to vector<1xf32>
    %118 = vector.shape_cast %117 : vector<1xf32> to vector<1x1x1xf32>
    %119 = vector.extract %118[0, 0, 0] : f32 from vector<1x1x1xf32>
    %120 = vector.broadcast %119 : f32 to vector<1x1xf32>
    %cst_40 = arith.constant 1.000000e+00 : f32
    %121 = vector.broadcast %cst_40 : f32 to vector<1x1xf32>
    %122 = arith.maximumf %120, %121 : vector<1x1xf32>
    %123 = tpu.reciprocal %122 {approx = true} : vector<1x1xf32> -> vector<1x1xf32>
    %124 = arith.mulf %122, %123 : vector<1x1xf32>
    %cst_41 = arith.constant 2.000000e+00 : f32
    %125 = vector.broadcast %cst_41 : f32 to vector<1x1xf32>
    %126 = arith.subf %125, %124 : vector<1x1xf32>
    %127 = arith.mulf %123, %126 : vector<1x1xf32>
    %128 = vector.broadcast %127 : vector<1x1xf32> to vector<2x128xf32>
    %129 = arith.mulf %115, %128 : vector<2x128xf32>
    %c1_42 = arith.constant 1 : index
    %c0_43 = arith.constant 0 : index
    %c0_44 = arith.constant 0 : index
    %130 = vector.load %arg4[%c1_42, %c0_43, %c0_44] : memref<2x128x768xf32, #tpu.memory_space<vmem>>, vector<1x128x768xf32>
    %131 = vector.shape_cast %130 : vector<1x128x768xf32> to vector<128x768xf32>
    %cst_45 = arith.constant dense<0.000000e+00> : vector<2x768xf32>
    %132 = tpu.matmul %29, %131, %cst_45 {dimension_numbers = #tpu.dot_dimension_numbers<[1], [0], [0], [1], [0, 0, 1, 1], [], []>} : vector<2x128xf32>, vector<128x768xf32>, vector<2x768xf32> -> vector<2x768xf32>
    %cst_46 = arith.constant -1.000000e+03 : f32
    %133 = vector.broadcast %cst_46 : f32 to vector<2x768xf32>
    %134 = arith.mulf %132, %133 : vector<2x768xf32>
    %135 = vector.extract_strided_slice %134 {offsets = [0, 0], sizes = [2, 128], strides = [1, 1]} : vector<2x768xf32> to vector<2x128xf32>
    %136 = vector.extract_strided_slice %134 {offsets = [0, 128], sizes = [2, 128], strides = [1, 1]} : vector<2x768xf32> to vector<2x128xf32>
    %137 = arith.maximumf %135, %136 : vector<2x128xf32>
    %138 = arith.subf %135, %137 : vector<2x128xf32>
    %139 = math.exp %138 : vector<2x128xf32>
    %140 = arith.subf %136, %137 : vector<2x128xf32>
    %141 = math.exp %140 : vector<2x128xf32>
    %142 = arith.addf %139, %141 : vector<2x128xf32>
    %143 = math.log %142 : vector<2x128xf32>
    %144 = arith.addf %137, %143 : vector<2x128xf32>
    %cst_47 = arith.constant -1.000000e-03 : f32
    %145 = vector.broadcast %cst_47 : f32 to vector<2x128xf32>
    %146 = arith.mulf %145, %144 : vector<2x128xf32>
    %147 = vector.extract_strided_slice %134 {offsets = [0, 256], sizes = [2, 128], strides = [1, 1]} : vector<2x768xf32> to vector<2x128xf32>
    %148 = vector.extract_strided_slice %134 {offsets = [0, 384], sizes = [2, 128], strides = [1, 1]} : vector<2x768xf32> to vector<2x128xf32>
    %149 = arith.maximumf %147, %148 : vector<2x128xf32>
    %150 = arith.subf %147, %149 : vector<2x128xf32>
    %151 = math.exp %150 : vector<2x128xf32>
    %152 = arith.subf %148, %149 : vector<2x128xf32>
    %153 = math.exp %152 : vector<2x128xf32>
    %154 = arith.addf %151, %153 : vector<2x128xf32>
    %155 = math.log %154 : vector<2x128xf32>
    %156 = arith.addf %149, %155 : vector<2x128xf32>
    %cst_48 = arith.constant -1.000000e-03 : f32
    %157 = vector.broadcast %cst_48 : f32 to vector<2x128xf32>
    %158 = arith.mulf %157, %156 : vector<2x128xf32>
    %159 = vector.extract_strided_slice %134 {offsets = [0, 512], sizes = [2, 128], strides = [1, 1]} : vector<2x768xf32> to vector<2x128xf32>
    %160 = vector.extract_strided_slice %134 {offsets = [0, 640], sizes = [2, 128], strides = [1, 1]} : vector<2x768xf32> to vector<2x128xf32>
    %161 = arith.maximumf %159, %160 : vector<2x128xf32>
    %162 = arith.subf %159, %161 : vector<2x128xf32>
    %163 = math.exp %162 : vector<2x128xf32>
    %164 = arith.subf %160, %161 : vector<2x128xf32>
    %165 = math.exp %164 : vector<2x128xf32>
    %166 = arith.addf %163, %165 : vector<2x128xf32>
    %167 = math.log %166 : vector<2x128xf32>
    %168 = arith.addf %161, %167 : vector<2x128xf32>
    %cst_49 = arith.constant -1.000000e-03 : f32
    %169 = vector.broadcast %cst_49 : f32 to vector<2x128xf32>
    %170 = arith.mulf %169, %168 : vector<2x128xf32>
    %171 = vector.shape_cast %146 : vector<2x128xf32> to vector<1x2x128xf32>
    %cst_50 = arith.constant dense<0x7F800000> : vector<1xf32>
    %172 = vector.multi_reduction <minimumf>, %171, %cst_50 [1, 2] : vector<1x2x128xf32> to vector<1xf32>
    %173 = vector.shape_cast %172 : vector<1xf32> to vector<1x1x1xf32>
    %174 = vector.extract %173[0, 0, 0] : f32 from vector<1x1x1xf32>
    %175 = vector.broadcast %174 : f32 to vector<1x1xf32>
    %176 = vector.shape_cast %158 : vector<2x128xf32> to vector<1x2x128xf32>
    %cst_51 = arith.constant dense<0x7F800000> : vector<1xf32>
    %177 = vector.multi_reduction <minimumf>, %176, %cst_51 [1, 2] : vector<1x2x128xf32> to vector<1xf32>
    %178 = vector.shape_cast %177 : vector<1xf32> to vector<1x1x1xf32>
    %179 = vector.extract %178[0, 0, 0] : f32 from vector<1x1x1xf32>
    %180 = vector.broadcast %179 : f32 to vector<1x1xf32>
    %181 = arith.minimumf %175, %180 : vector<1x1xf32>
    %182 = vector.shape_cast %170 : vector<2x128xf32> to vector<1x2x128xf32>
    %cst_52 = arith.constant dense<0x7F800000> : vector<1xf32>
    %183 = vector.multi_reduction <minimumf>, %182, %cst_52 [1, 2] : vector<1x2x128xf32> to vector<1xf32>
    %184 = vector.shape_cast %183 : vector<1xf32> to vector<1x1x1xf32>
    %185 = vector.extract %184[0, 0, 0] : f32 from vector<1x1x1xf32>
    %186 = vector.broadcast %185 : f32 to vector<1x1xf32>
    %187 = arith.minimumf %181, %186 : vector<1x1xf32>
    %cst_53 = arith.constant 0.000000e+00 : f32
    %188 = vector.broadcast %cst_53 : f32 to vector<1x1xf32>
    %189 = arith.minimumf %187, %188 : vector<1x1xf32>
    %190 = vector.broadcast %189 : vector<1x1xf32> to vector<2x128xf32>
    %191 = arith.subf %146, %190 : vector<2x128xf32>
    %192 = vector.broadcast %189 : vector<1x1xf32> to vector<2x128xf32>
    %193 = arith.subf %158, %192 : vector<2x128xf32>
    %194 = vector.broadcast %189 : vector<1x1xf32> to vector<2x128xf32>
    %195 = arith.subf %170, %194 : vector<2x128xf32>
    %cst_54 = arith.constant 1.000000e+03 : f32
    %196 = vector.broadcast %cst_54 : f32 to vector<2x128xf32>
    %197 = arith.mulf %191, %196 : vector<2x128xf32>
    %cst_55 = arith.constant 1.000000e+03 : f32
    %198 = vector.broadcast %cst_55 : f32 to vector<2x128xf32>
    %199 = arith.mulf %193, %198 : vector<2x128xf32>
    %cst_56 = arith.constant 1.000000e+03 : f32
    %200 = vector.broadcast %cst_56 : f32 to vector<2x128xf32>
    %201 = arith.mulf %195, %200 : vector<2x128xf32>
    %202 = arith.maximumf %197, %199 : vector<2x128xf32>
    %203 = arith.maximumf %202, %201 : vector<2x128xf32>
    %204 = arith.subf %197, %203 : vector<2x128xf32>
    %205 = math.exp %204 : vector<2x128xf32>
    %206 = arith.subf %199, %203 : vector<2x128xf32>
    %207 = math.exp %206 : vector<2x128xf32>
    %208 = arith.addf %205, %207 : vector<2x128xf32>
    %209 = arith.subf %201, %203 : vector<2x128xf32>
    %210 = math.exp %209 : vector<2x128xf32>
    %211 = arith.addf %208, %210 : vector<2x128xf32>
    %212 = math.log %211 : vector<2x128xf32>
    %213 = arith.addf %203, %212 : vector<2x128xf32>
    %cst_57 = arith.constant 1.000000e-03 : f32
    %214 = vector.broadcast %cst_57 : f32 to vector<2x128xf32>
    %215 = arith.mulf %214, %213 : vector<2x128xf32>
    %216 = vector.shape_cast %215 : vector<2x128xf32> to vector<1x2x128xf32>
    %cst_58 = arith.constant dense<0xFF800000> : vector<1xf32>
    %217 = vector.multi_reduction <maximumf>, %216, %cst_58 [1, 2] : vector<1x2x128xf32> to vector<1xf32>
    %218 = vector.shape_cast %217 : vector<1xf32> to vector<1x1x1xf32>
    %219 = vector.extract %218[0, 0, 0] : f32 from vector<1x1x1xf32>
    %220 = vector.broadcast %219 : f32 to vector<1x1xf32>
    %cst_59 = arith.constant 1.000000e+00 : f32
    %221 = vector.broadcast %cst_59 : f32 to vector<1x1xf32>
    %222 = arith.maximumf %220, %221 : vector<1x1xf32>
    %223 = tpu.reciprocal %222 {approx = true} : vector<1x1xf32> -> vector<1x1xf32>
    %224 = arith.mulf %222, %223 : vector<1x1xf32>
    %cst_60 = arith.constant 2.000000e+00 : f32
    %225 = vector.broadcast %cst_60 : f32 to vector<1x1xf32>
    %226 = arith.subf %225, %224 : vector<1x1xf32>
    %227 = arith.mulf %223, %226 : vector<1x1xf32>
    %228 = vector.broadcast %227 : vector<1x1xf32> to vector<2x128xf32>
    %229 = arith.mulf %215, %228 : vector<2x128xf32>
    %cst_61 = arith.constant 1.000000e+03 : f32
    %230 = vector.broadcast %cst_61 : f32 to vector<2x128xf32>
    %231 = arith.mulf %27, %230 : vector<2x128xf32>
    %cst_62 = arith.constant 1.000000e+03 : f32
    %232 = vector.broadcast %cst_62 : f32 to vector<2x128xf32>
    %233 = arith.mulf %129, %232 : vector<2x128xf32>
    %234 = arith.maximumf %231, %233 : vector<2x128xf32>
    %235 = arith.subf %231, %234 : vector<2x128xf32>
    %236 = math.exp %235 : vector<2x128xf32>
    %237 = arith.subf %233, %234 : vector<2x128xf32>
    %238 = math.exp %237 : vector<2x128xf32>
    %239 = arith.addf %236, %238 : vector<2x128xf32>
    %240 = math.log %239 : vector<2x128xf32>
    %241 = arith.addf %234, %240 : vector<2x128xf32>
    %cst_63 = arith.constant 1.000000e-03 : f32
    %242 = vector.broadcast %cst_63 : f32 to vector<2x128xf32>
    %243 = arith.mulf %242, %241 : vector<2x128xf32>
    %244 = vector.shape_cast %243 : vector<2x128xf32> to vector<1x2x128xf32>
    %cst_64 = arith.constant dense<0xFF800000> : vector<1xf32>
    %245 = vector.multi_reduction <maximumf>, %244, %cst_64 [1, 2] : vector<1x2x128xf32> to vector<1xf32>
    %246 = vector.shape_cast %245 : vector<1xf32> to vector<1x1x1xf32>
    %247 = vector.extract %246[0, 0, 0] : f32 from vector<1x1x1xf32>
    %248 = vector.broadcast %247 : f32 to vector<1x1xf32>
    %cst_65 = arith.constant 1.000000e+03 : f32
    %249 = vector.broadcast %cst_65 : f32 to vector<2x128xf32>
    %250 = arith.mulf %29, %249 : vector<2x128xf32>
    %cst_66 = arith.constant 1.000000e+03 : f32
    %251 = vector.broadcast %cst_66 : f32 to vector<2x128xf32>
    %252 = arith.mulf %229, %251 : vector<2x128xf32>
    %253 = arith.maximumf %250, %252 : vector<2x128xf32>
    %254 = arith.subf %250, %253 : vector<2x128xf32>
    %255 = math.exp %254 : vector<2x128xf32>
    %256 = arith.subf %252, %253 : vector<2x128xf32>
    %257 = math.exp %256 : vector<2x128xf32>
    %258 = arith.addf %255, %257 : vector<2x128xf32>
    %259 = math.log %258 : vector<2x128xf32>
    %260 = arith.addf %253, %259 : vector<2x128xf32>
    %cst_67 = arith.constant 1.000000e-03 : f32
    %261 = vector.broadcast %cst_67 : f32 to vector<2x128xf32>
    %262 = arith.mulf %261, %260 : vector<2x128xf32>
    %263 = vector.shape_cast %262 : vector<2x128xf32> to vector<1x2x128xf32>
    %cst_68 = arith.constant dense<0xFF800000> : vector<1xf32>
    %264 = vector.multi_reduction <maximumf>, %263, %cst_68 [1, 2] : vector<1x2x128xf32> to vector<1xf32>
    %265 = vector.shape_cast %264 : vector<1xf32> to vector<1x1x1xf32>
    %266 = vector.extract %265[0, 0, 0] : f32 from vector<1x1x1xf32>
    %267 = vector.broadcast %266 : f32 to vector<1x1xf32>
    %268 = arith.maximumf %248, %267 : vector<1x1xf32>
    %cst_69 = arith.constant 1.000000e+00 : f32
    %269 = vector.broadcast %cst_69 : f32 to vector<1x1xf32>
    %270 = arith.maximumf %268, %269 : vector<1x1xf32>
    %271 = tpu.reciprocal %270 {approx = true} : vector<1x1xf32> -> vector<1x1xf32>
    %272 = arith.mulf %270, %271 : vector<1x1xf32>
    %cst_70 = arith.constant 2.000000e+00 : f32
    %273 = vector.broadcast %cst_70 : f32 to vector<1x1xf32>
    %274 = arith.subf %273, %272 : vector<1x1xf32>
    %275 = arith.mulf %271, %274 : vector<1x1xf32>
    %276 = vector.broadcast %275 : vector<1x1xf32> to vector<2x128xf32>
    %277 = arith.mulf %243, %276 : vector<2x128xf32>
    %c0_71 = arith.constant 0 : index
    %c0_72 = arith.constant 0 : index
    %c0_73 = arith.constant 0 : index
    %278 = vector.load %arg5[%c0_71, %c0_72, %c0_73] : memref<2x2x128xf32, #tpu.memory_space<vmem>>, vector<1x2x128xf32>
    %279 = vector.shape_cast %278 : vector<1x2x128xf32> to vector<2x128xf32>
    %280 = vector.shape_cast %277 : vector<2x128xf32> to vector<1x2x128xf32>
    tpu.vector_store %arg5[%c0_71, %c0_72, %c0_73], %280 {strides = array<i32>} : memref<2x2x128xf32, #tpu.memory_space<vmem>>, vector<1x2x128xf32>,
    %281 = vector.broadcast %275 : vector<1x1xf32> to vector<2x128xf32>
    %282 = arith.mulf %262, %281 : vector<2x128xf32>
    %c1_74 = arith.constant 1 : index
    %c0_75 = arith.constant 0 : index
    %c0_76 = arith.constant 0 : index
    %283 = vector.load %arg5[%c1_74, %c0_75, %c0_76] : memref<2x2x128xf32, #tpu.memory_space<vmem>>, vector<1x2x128xf32>
    %284 = vector.shape_cast %283 : vector<1x2x128xf32> to vector<2x128xf32>
    %285 = vector.shape_cast %282 : vector<2x128xf32> to vector<1x2x128xf32>
    tpu.vector_store %arg5[%c1_74, %c0_75, %c0_76], %285 {strides = array<i32>} : memref<2x2x128xf32, #tpu.memory_space<vmem>>, vector<1x2x128xf32>,
    %c1_i32 = arith.constant 1 : i32
    %c0_77 = arith.constant 0 : index
    %c0_78 = arith.constant 0 : index
    %c0_79 = arith.constant 0 : index
    %286 = vector.load %arg5[%c0_77, %c0_78, %c0_79] : memref<2x2x128xf32, #tpu.memory_space<vmem>>, vector<1x2x128xf32>
    %287 = vector.shape_cast %286 : vector<1x2x128xf32> to vector<2x128xf32>
    %c1_80 = arith.constant 1 : index
    %c0_81 = arith.constant 0 : index
    %c0_82 = arith.constant 0 : index
    %288 = vector.load %arg5[%c1_80, %c0_81, %c0_82] : memref<2x2x128xf32, #tpu.memory_space<vmem>>, vector<1x2x128xf32>
    %289 = vector.shape_cast %288 : vector<1x2x128xf32> to vector<2x128xf32>
    %c0_83 = arith.constant 0 : index
    %c0_84 = arith.constant 0 : index
    %c0_85 = arith.constant 0 : index
    %290 = vector.load %arg4[%c0_83, %c0_84, %c0_85] : memref<2x128x768xf32, #tpu.memory_space<vmem>>, vector<1x128x768xf32>
    %291 = vector.shape_cast %290 : vector<1x128x768xf32> to vector<128x768xf32>
    %cst_86 = arith.constant dense<0.000000e+00> : vector<2x768xf32>
    %292 = tpu.matmul %287, %291, %cst_86 {dimension_numbers = #tpu.dot_dimension_numbers<[1], [0], [0], [1], [0, 0, 1, 1], [], []>} : vector<2x128xf32>, vector<128x768xf32>, vector<2x768xf32> -> vector<2x768xf32>
    %cst_87 = arith.constant -1.000000e+03 : f32
    %293 = vector.broadcast %cst_87 : f32 to vector<2x768xf32>
    %294 = arith.mulf %292, %293 : vector<2x768xf32>
    %295 = vector.extract_strided_slice %294 {offsets = [0, 0], sizes = [2, 128], strides = [1, 1]} : vector<2x768xf32> to vector<2x128xf32>
    %296 = vector.extract_strided_slice %294 {offsets = [0, 128], sizes = [2, 128], strides = [1, 1]} : vector<2x768xf32> to vector<2x128xf32>
    %297 = arith.maximumf %295, %296 : vector<2x128xf32>
    %298 = arith.subf %295, %297 : vector<2x128xf32>
    %299 = math.exp %298 : vector<2x128xf32>
    %300 = arith.subf %296, %297 : vector<2x128xf32>
    %301 = math.exp %300 : vector<2x128xf32>
    %302 = arith.addf %299, %301 : vector<2x128xf32>
    %303 = math.log %302 : vector<2x128xf32>
    %304 = arith.addf %297, %303 : vector<2x128xf32>
    %cst_88 = arith.constant -1.000000e-03 : f32
    %305 = vector.broadcast %cst_88 : f32 to vector<2x128xf32>
    %306 = arith.mulf %305, %304 : vector<2x128xf32>
    %307 = vector.extract_strided_slice %294 {offsets = [0, 256], sizes = [2, 128], strides = [1, 1]} : vector<2x768xf32> to vector<2x128xf32>
    %308 = vector.extract_strided_slice %294 {offsets = [0, 384], sizes = [2, 128], strides = [1, 1]} : vector<2x768xf32> to vector<2x128xf32>
    %309 = arith.maximumf %307, %308 : vector<2x128xf32>
    %310 = arith.subf %307, %309 : vector<2x128xf32>
    %311 = math.exp %310 : vector<2x128xf32>
    %312 = arith.subf %308, %309 : vector<2x128xf32>
    %313 = math.exp %312 : vector<2x128xf32>
    %314 = arith.addf %311, %313 : vector<2x128xf32>
    %315 = math.log %314 : vector<2x128xf32>
    %316 = arith.addf %309, %315 : vector<2x128xf32>
    %cst_89 = arith.constant -1.000000e-03 : f32
    %317 = vector.broadcast %cst_89 : f32 to vector<2x128xf32>
    %318 = arith.mulf %317, %316 : vector<2x128xf32>
    %319 = vector.extract_strided_slice %294 {offsets = [0, 512], sizes = [2, 128], strides = [1, 1]} : vector<2x768xf32> to vector<2x128xf32>
    %320 = vector.extract_strided_slice %294 {offsets = [0, 640], sizes = [2, 128], strides = [1, 1]} : vector<2x768xf32> to vector<2x128xf32>
    %321 = arith.maximumf %319, %320 : vector<2x128xf32>
    %322 = arith.subf %319, %321 : vector<2x128xf32>
    %323 = math.exp %322 : vector<2x128xf32>
    %324 = arith.subf %320, %321 : vector<2x128xf32>
    %325 = math.exp %324 : vector<2x128xf32>
    %326 = arith.addf %323, %325 : vector<2x128xf32>
    %327 = math.log %326 : vector<2x128xf32>
    %328 = arith.addf %321, %327 : vector<2x128xf32>
    %cst_90 = arith.constant -1.000000e-03 : f32
    %329 = vector.broadcast %cst_90 : f32 to vector<2x128xf32>
    %330 = arith.mulf %329, %328 : vector<2x128xf32>
    %331 = vector.shape_cast %306 : vector<2x128xf32> to vector<1x2x128xf32>
    %cst_91 = arith.constant dense<0x7F800000> : vector<1xf32>
    %332 = vector.multi_reduction <minimumf>, %331, %cst_91 [1, 2] : vector<1x2x128xf32> to vector<1xf32>
    %333 = vector.shape_cast %332 : vector<1xf32> to vector<1x1x1xf32>
    %334 = vector.extract %333[0, 0, 0] : f32 from vector<1x1x1xf32>
    %335 = vector.broadcast %334 : f32 to vector<1x1xf32>
    %336 = vector.shape_cast %318 : vector<2x128xf32> to vector<1x2x128xf32>
    %cst_92 = arith.constant dense<0x7F800000> : vector<1xf32>
    %337 = vector.multi_reduction <minimumf>, %336, %cst_92 [1, 2] : vector<1x2x128xf32> to vector<1xf32>
    %338 = vector.shape_cast %337 : vector<1xf32> to vector<1x1x1xf32>
    %339 = vector.extract %338[0, 0, 0] : f32 from vector<1x1x1xf32>
    %340 = vector.broadcast %339 : f32 to vector<1x1xf32>
    %341 = arith.minimumf %335, %340 : vector<1x1xf32>
    %342 = vector.shape_cast %330 : vector<2x128xf32> to vector<1x2x128xf32>
    %cst_93 = arith.constant dense<0x7F800000> : vector<1xf32>
    %343 = vector.multi_reduction <minimumf>, %342, %cst_93 [1, 2] : vector<1x2x128xf32> to vector<1xf32>
    %344 = vector.shape_cast %343 : vector<1xf32> to vector<1x1x1xf32>
    %345 = vector.extract %344[0, 0, 0] : f32 from vector<1x1x1xf32>
    %346 = vector.broadcast %345 : f32 to vector<1x1xf32>
    %347 = arith.minimumf %341, %346 : vector<1x1xf32>
    %cst_94 = arith.constant 0.000000e+00 : f32
    %348 = vector.broadcast %cst_94 : f32 to vector<1x1xf32>
    %349 = arith.minimumf %347, %348 : vector<1x1xf32>
    %350 = vector.broadcast %349 : vector<1x1xf32> to vector<2x128xf32>
    %351 = arith.subf %306, %350 : vector<2x128xf32>
    %352 = vector.broadcast %349 : vector<1x1xf32> to vector<2x128xf32>
    %353 = arith.subf %318, %352 : vector<2x128xf32>
    %354 = vector.broadcast %349 : vector<1x1xf32> to vector<2x128xf32>
    %355 = arith.subf %330, %354 : vector<2x128xf32>
    %cst_95 = arith.constant 1.000000e+03 : f32
    %356 = vector.broadcast %cst_95 : f32 to vector<2x128xf32>
    %357 = arith.mulf %351, %356 : vector<2x128xf32>
    %cst_96 = arith.constant 1.000000e+03 : f32
    %358 = vector.broadcast %cst_96 : f32 to vector<2x128xf32>
    %359 = arith.mulf %353, %358 : vector<2x128xf32>
    %cst_97 = arith.constant 1.000000e+03 : f32
    %360 = vector.broadcast %cst_97 : f32 to vector<2x128xf32>
    %361 = arith.mulf %355, %360 : vector<2x128xf32>
    %362 = arith.maximumf %357, %359 : vector<2x128xf32>
    %363 = arith.maximumf %362, %361 : vector<2x128xf32>
    %364 = arith.subf %357, %363 : vector<2x128xf32>
    %365 = math.exp %364 : vector<2x128xf32>
    %366 = arith.subf %359, %363 : vector<2x128xf32>
    %367 = math.exp %366 : vector<2x128xf32>
    %368 = arith.addf %365, %367 : vector<2x128xf32>
    %369 = arith.subf %361, %363 : vector<2x128xf32>
    %370 = math.exp %369 : vector<2x128xf32>
    %371 = arith.addf %368, %370 : vector<2x128xf32>
    %372 = math.log %371 : vector<2x128xf32>
    %373 = arith.addf %363, %372 : vector<2x128xf32>
    %cst_98 = arith.constant 1.000000e-03 : f32
    %374 = vector.broadcast %cst_98 : f32 to vector<2x128xf32>
    %375 = arith.mulf %374, %373 : vector<2x128xf32>
    %376 = vector.shape_cast %375 : vector<2x128xf32> to vector<1x2x128xf32>
    %cst_99 = arith.constant dense<0xFF800000> : vector<1xf32>
    %377 = vector.multi_reduction <maximumf>, %376, %cst_99 [1, 2] : vector<1x2x128xf32> to vector<1xf32>
    %378 = vector.shape_cast %377 : vector<1xf32> to vector<1x1x1xf32>
    %379 = vector.extract %378[0, 0, 0] : f32 from vector<1x1x1xf32>
    %380 = vector.broadcast %379 : f32 to vector<1x1xf32>
    %cst_100 = arith.constant 1.000000e+00 : f32
    %381 = vector.broadcast %cst_100 : f32 to vector<1x1xf32>
    %382 = arith.maximumf %380, %381 : vector<1x1xf32>
    %383 = tpu.reciprocal %382 {approx = true} : vector<1x1xf32> -> vector<1x1xf32>
    %384 = arith.mulf %382, %383 : vector<1x1xf32>
    %cst_101 = arith.constant 2.000000e+00 : f32
    %385 = vector.broadcast %cst_101 : f32 to vector<1x1xf32>
    %386 = arith.subf %385, %384 : vector<1x1xf32>
    %387 = arith.mulf %383, %386 : vector<1x1xf32>
    %388 = vector.broadcast %387 : vector<1x1xf32> to vector<2x128xf32>
    %389 = arith.mulf %375, %388 : vector<2x128xf32>
    %c1_102 = arith.constant 1 : index
    %c0_103 = arith.constant 0 : index
    %c0_104 = arith.constant 0 : index
    %390 = vector.load %arg4[%c1_102, %c0_103, %c0_104] : memref<2x128x768xf32, #tpu.memory_space<vmem>>, vector<1x128x768xf32>
    %391 = vector.shape_cast %390 : vector<1x128x768xf32> to vector<128x768xf32>
    %cst_105 = arith.constant dense<0.000000e+00> : vector<2x768xf32>
    %392 = tpu.matmul %289, %391, %cst_105 {dimension_numbers = #tpu.dot_dimension_numbers<[1], [0], [0], [1], [0, 0, 1, 1], [], []>} : vector<2x128xf32>, vector<128x768xf32>, vector<2x768xf32> -> vector<2x768xf32>
    %cst_106 = arith.constant -1.000000e+03 : f32
    %393 = vector.broadcast %cst_106 : f32 to vector<2x768xf32>
    %394 = arith.mulf %392, %393 : vector<2x768xf32>
    %395 = vector.extract_strided_slice %394 {offsets = [0, 0], sizes = [2, 128], strides = [1, 1]} : vector<2x768xf32> to vector<2x128xf32>
    %396 = vector.extract_strided_slice %394 {offsets = [0, 128], sizes = [2, 128], strides = [1, 1]} : vector<2x768xf32> to vector<2x128xf32>
    %397 = arith.maximumf %395, %396 : vector<2x128xf32>
    %398 = arith.subf %395, %397 : vector<2x128xf32>
    %399 = math.exp %398 : vector<2x128xf32>
    %400 = arith.subf %396, %397 : vector<2x128xf32>
    %401 = math.exp %400 : vector<2x128xf32>
    %402 = arith.addf %399, %401 : vector<2x128xf32>
    %403 = math.log %402 : vector<2x128xf32>
    %404 = arith.addf %397, %403 : vector<2x128xf32>
    %cst_107 = arith.constant -1.000000e-03 : f32
    %405 = vector.broadcast %cst_107 : f32 to vector<2x128xf32>
    %406 = arith.mulf %405, %404 : vector<2x128xf32>
    %407 = vector.extract_strided_slice %394 {offsets = [0, 256], sizes = [2, 128], strides = [1, 1]} : vector<2x768xf32> to vector<2x128xf32>
    %408 = vector.extract_strided_slice %394 {offsets = [0, 384], sizes = [2, 128], strides = [1, 1]} : vector<2x768xf32> to vector<2x128xf32>
    %409 = arith.maximumf %407, %408 : vector<2x128xf32>
    %410 = arith.subf %407, %409 : vector<2x128xf32>
    %411 = math.exp %410 : vector<2x128xf32>
    %412 = arith.subf %408, %409 : vector<2x128xf32>
    %413 = math.exp %412 : vector<2x128xf32>
    %414 = arith.addf %411, %413 : vector<2x128xf32>
    %415 = math.log %414 : vector<2x128xf32>
    %416 = arith.addf %409, %415 : vector<2x128xf32>
    %cst_108 = arith.constant -1.000000e-03 : f32
    %417 = vector.broadcast %cst_108 : f32 to vector<2x128xf32>
    %418 = arith.mulf %417, %416 : vector<2x128xf32>
    %419 = vector.extract_strided_slice %394 {offsets = [0, 512], sizes = [2, 128], strides = [1, 1]} : vector<2x768xf32> to vector<2x128xf32>
    %420 = vector.extract_strided_slice %394 {offsets = [0, 640], sizes = [2, 128], strides = [1, 1]} : vector<2x768xf32> to vector<2x128xf32>
    %421 = arith.maximumf %419, %420 : vector<2x128xf32>
    %422 = arith.subf %419, %421 : vector<2x128xf32>
    %423 = math.exp %422 : vector<2x128xf32>
    %424 = arith.subf %420, %421 : vector<2x128xf32>
    %425 = math.exp %424 : vector<2x128xf32>
    %426 = arith.addf %423, %425 : vector<2x128xf32>
    %427 = math.log %426 : vector<2x128xf32>
    %428 = arith.addf %421, %427 : vector<2x128xf32>
    %cst_109 = arith.constant -1.000000e-03 : f32
    %429 = vector.broadcast %cst_109 : f32 to vector<2x128xf32>
    %430 = arith.mulf %429, %428 : vector<2x128xf32>
    %431 = vector.shape_cast %406 : vector<2x128xf32> to vector<1x2x128xf32>
    %cst_110 = arith.constant dense<0x7F800000> : vector<1xf32>
    %432 = vector.multi_reduction <minimumf>, %431, %cst_110 [1, 2] : vector<1x2x128xf32> to vector<1xf32>
    %433 = vector.shape_cast %432 : vector<1xf32> to vector<1x1x1xf32>
    %434 = vector.extract %433[0, 0, 0] : f32 from vector<1x1x1xf32>
    %435 = vector.broadcast %434 : f32 to vector<1x1xf32>
    %436 = vector.shape_cast %418 : vector<2x128xf32> to vector<1x2x128xf32>
    %cst_111 = arith.constant dense<0x7F800000> : vector<1xf32>
    %437 = vector.multi_reduction <minimumf>, %436, %cst_111 [1, 2] : vector<1x2x128xf32> to vector<1xf32>
    %438 = vector.shape_cast %437 : vector<1xf32> to vector<1x1x1xf32>
    %439 = vector.extract %438[0, 0, 0] : f32 from vector<1x1x1xf32>
    %440 = vector.broadcast %439 : f32 to vector<1x1xf32>
    %441 = arith.minimumf %435, %440 : vector<1x1xf32>
    %442 = vector.shape_cast %430 : vector<2x128xf32> to vector<1x2x128xf32>
    %cst_112 = arith.constant dense<0x7F800000> : vector<1xf32>
    %443 = vector.multi_reduction <minimumf>, %442, %cst_112 [1, 2] : vector<1x2x128xf32> to vector<1xf32>
    %444 = vector.shape_cast %443 : vector<1xf32> to vector<1x1x1xf32>
    %445 = vector.extract %444[0, 0, 0] : f32 from vector<1x1x1xf32>
    %446 = vector.broadcast %445 : f32 to vector<1x1xf32>
    %447 = arith.minimumf %441, %446 : vector<1x1xf32>
    %cst_113 = arith.constant 0.000000e+00 : f32
    %448 = vector.broadcast %cst_113 : f32 to vector<1x1xf32>
    %449 = arith.minimumf %447, %448 : vector<1x1xf32>
    %450 = vector.broadcast %449 : vector<1x1xf32> to vector<2x128xf32>
    %451 = arith.subf %406, %450 : vector<2x128xf32>
    %452 = vector.broadcast %449 : vector<1x1xf32> to vector<2x128xf32>
    %453 = arith.subf %418, %452 : vector<2x128xf32>
    %454 = vector.broadcast %449 : vector<1x1xf32> to vector<2x128xf32>
    %455 = arith.subf %430, %454 : vector<2x128xf32>
    %cst_114 = arith.constant 1.000000e+03 : f32
    %456 = vector.broadcast %cst_114 : f32 to vector<2x128xf32>
    %457 = arith.mulf %451, %456 : vector<2x128xf32>
    %cst_115 = arith.constant 1.000000e+03 : f32
    %458 = vector.broadcast %cst_115 : f32 to vector<2x128xf32>
    %459 = arith.mulf %453, %458 : vector<2x128xf32>
    %cst_116 = arith.constant 1.000000e+03 : f32
    %460 = vector.broadcast %cst_116 : f32 to vector<2x128xf32>
    %461 = arith.mulf %455, %460 : vector<2x128xf32>
    %462 = arith.maximumf %457, %459 : vector<2x128xf32>
    %463 = arith.maximumf %462, %461 : vector<2x128xf32>
    %464 = arith.subf %457, %463 : vector<2x128xf32>
    %465 = math.exp %464 : vector<2x128xf32>
    %466 = arith.subf %459, %463 : vector<2x128xf32>
    %467 = math.exp %466 : vector<2x128xf32>
    %468 = arith.addf %465, %467 : vector<2x128xf32>
    %469 = arith.subf %461, %463 : vector<2x128xf32>
    %470 = math.exp %469 : vector<2x128xf32>
    %471 = arith.addf %468, %470 : vector<2x128xf32>
    %472 = math.log %471 : vector<2x128xf32>
    %473 = arith.addf %463, %472 : vector<2x128xf32>
    %cst_117 = arith.constant 1.000000e-03 : f32
    %474 = vector.broadcast %cst_117 : f32 to vector<2x128xf32>
    %475 = arith.mulf %474, %473 : vector<2x128xf32>
    %476 = vector.shape_cast %475 : vector<2x128xf32> to vector<1x2x128xf32>
    %cst_118 = arith.constant dense<0xFF800000> : vector<1xf32>
    %477 = vector.multi_reduction <maximumf>, %476, %cst_118 [1, 2] : vector<1x2x128xf32> to vector<1xf32>
    %478 = vector.shape_cast %477 : vector<1xf32> to vector<1x1x1xf32>
    %479 = vector.extract %478[0, 0, 0] : f32 from vector<1x1x1xf32>
    %480 = vector.broadcast %479 : f32 to vector<1x1xf32>
    %cst_119 = arith.constant 1.000000e+00 : f32
    %481 = vector.broadcast %cst_119 : f32 to vector<1x1xf32>
    %482 = arith.maximumf %480, %481 : vector<1x1xf32>
    %483 = tpu.reciprocal %482 {approx = true} : vector<1x1xf32> -> vector<1x1xf32>
    %484 = arith.mulf %482, %483 : vector<1x1xf32>
    %cst_120 = arith.constant 2.000000e+00 : f32
    %485 = vector.broadcast %cst_120 : f32 to vector<1x1xf32>
    %486 = arith.subf %485, %484 : vector<1x1xf32>
    %487 = arith.mulf %483, %486 : vector<1x1xf32>
    %488 = vector.broadcast %487 : vector<1x1xf32> to vector<2x128xf32>
    %489 = arith.mulf %475, %488 : vector<2x128xf32>
    %cst_121 = arith.constant 1.000000e+03 : f32
    %490 = vector.broadcast %cst_121 : f32 to vector<2x128xf32>
    %491 = arith.mulf %287, %490 : vector<2x128xf32>
    %cst_122 = arith.constant 1.000000e+03 : f32
    %492 = vector.broadcast %cst_122 : f32 to vector<2x128xf32>
    %493 = arith.mulf %389, %492 : vector<2x128xf32>
    %494 = arith.maximumf %491, %493 : vector<2x128xf32>
    %495 = arith.subf %491, %494 : vector<2x128xf32>
    %496 = math.exp %495 : vector<2x128xf32>
    %497 = arith.subf %493, %494 : vector<2x128xf32>
    %498 = math.exp %497 : vector<2x128xf32>
    %499 = arith.addf %496, %498 : vector<2x128xf32>
    %500 = math.log %499 : vector<2x128xf32>
    %501 = arith.addf %494, %500 : vector<2x128xf32>
    %cst_123 = arith.constant 1.000000e-03 : f32
    %502 = vector.broadcast %cst_123 : f32 to vector<2x128xf32>
    %503 = arith.mulf %502, %501 : vector<2x128xf32>
    %504 = vector.shape_cast %503 : vector<2x128xf32> to vector<1x2x128xf32>
    %cst_124 = arith.constant dense<0xFF800000> : vector<1xf32>
    %505 = vector.multi_reduction <maximumf>, %504, %cst_124 [1, 2] : vector<1x2x128xf32> to vector<1xf32>
    %506 = vector.shape_cast %505 : vector<1xf32> to vector<1x1x1xf32>
    %507 = vector.extract %506[0, 0, 0] : f32 from vector<1x1x1xf32>
    %508 = vector.broadcast %507 : f32 to vector<1x1xf32>
    %cst_125 = arith.constant 1.000000e+03 : f32
    %509 = vector.broadcast %cst_125 : f32 to vector<2x128xf32>
    %510 = arith.mulf %289, %509 : vector<2x128xf32>
    %cst_126 = arith.constant 1.000000e+03 : f32
    %511 = vector.broadcast %cst_126 : f32 to vector<2x128xf32>
    %512 = arith.mulf %489, %511 : vector<2x128xf32>
    %513 = arith.maximumf %510, %512 : vector<2x128xf32>
    %514 = arith.subf %510, %513 : vector<2x128xf32>
    %515 = math.exp %514 : vector<2x128xf32>
    %516 = arith.subf %512, %513 : vector<2x128xf32>
    %517 = math.exp %516 : vector<2x128xf32>
    %518 = arith.addf %515, %517 : vector<2x128xf32>
    %519 = math.log %518 : vector<2x128xf32>
    %520 = arith.addf %513, %519 : vector<2x128xf32>
    %cst_127 = arith.constant 1.000000e-03 : f32
    %521 = vector.broadcast %cst_127 : f32 to vector<2x128xf32>
    %522 = arith.mulf %521, %520 : vector<2x128xf32>
    %523 = vector.shape_cast %522 : vector<2x128xf32> to vector<1x2x128xf32>
    %cst_128 = arith.constant dense<0xFF800000> : vector<1xf32>
    %524 = vector.multi_reduction <maximumf>, %523, %cst_128 [1, 2] : vector<1x2x128xf32> to vector<1xf32>
    %525 = vector.shape_cast %524 : vector<1xf32> to vector<1x1x1xf32>
    %526 = vector.extract %525[0, 0, 0] : f32 from vector<1x1x1xf32>
    %527 = vector.broadcast %526 : f32 to vector<1x1xf32>
    %528 = arith.maximumf %508, %527 : vector<1x1xf32>
    %cst_129 = arith.constant 1.000000e+00 : f32
    %529 = vector.broadcast %cst_129 : f32 to vector<1x1xf32>
    %530 = arith.maximumf %528, %529 : vector<1x1xf32>
    %531 = tpu.reciprocal %530 {approx = true} : vector<1x1xf32> -> vector<1x1xf32>
    %532 = arith.mulf %530, %531 : vector<1x1xf32>
    %cst_130 = arith.constant 2.000000e+00 : f32
    %533 = vector.broadcast %cst_130 : f32 to vector<1x1xf32>
    %534 = arith.subf %533, %532 : vector<1x1xf32>
    %535 = arith.mulf %531, %534 : vector<1x1xf32>
    %536 = vector.broadcast %535 : vector<1x1xf32> to vector<2x128xf32>
    %537 = arith.mulf %503, %536 : vector<2x128xf32>
    %c0_131 = arith.constant 0 : index
    %c0_132 = arith.constant 0 : index
    %c0_133 = arith.constant 0 : index
    %538 = vector.load %arg5[%c0_131, %c0_132, %c0_133] : memref<2x2x128xf32, #tpu.memory_space<vmem>>, vector<1x2x128xf32>
    %539 = vector.shape_cast %538 : vector<1x2x128xf32> to vector<2x128xf32>
    %540 = vector.shape_cast %537 : vector<2x128xf32> to vector<1x2x128xf32>
    tpu.vector_store %arg5[%c0_131, %c0_132, %c0_133], %540 {strides = array<i32>} : memref<2x2x128xf32, #tpu.memory_space<vmem>>, vector<1x2x128xf32>,
    %541 = vector.broadcast %535 : vector<1x1xf32> to vector<2x128xf32>
    %542 = arith.mulf %522, %541 : vector<2x128xf32>
    %c1_134 = arith.constant 1 : index
    %c0_135 = arith.constant 0 : index
    %c0_136 = arith.constant 0 : index
    %543 = vector.load %arg5[%c1_134, %c0_135, %c0_136] : memref<2x2x128xf32, #tpu.memory_space<vmem>>, vector<1x2x128xf32>
    %544 = vector.shape_cast %543 : vector<1x2x128xf32> to vector<2x128xf32>
    %545 = vector.shape_cast %542 : vector<2x128xf32> to vector<1x2x128xf32>
    tpu.vector_store %arg5[%c1_134, %c0_135, %c0_136], %545 {strides = array<i32>} : memref<2x2x128xf32, #tpu.memory_space<vmem>>, vector<1x2x128xf32>,
    %c0_137 = arith.constant 0 : index
    %c0_138 = arith.constant 0 : index
    %c0_139 = arith.constant 0 : index
    %546 = vector.load %arg5[%c0_137, %c0_138, %c0_139] : memref<2x2x128xf32, #tpu.memory_space<vmem>>, vector<1x2x128xf32>
    %547 = vector.shape_cast %546 : vector<1x2x128xf32> to vector<2x128xf32>
    %c0_140 = arith.constant 0 : index
    %c0_141 = arith.constant 0 : index
    %c0_142 = arith.constant 0 : index
    %548 = vector.load %arg3[%c0_140, %c0_141, %c0_142] : memref<2x2x128xf32, #tpu.memory_space<vmem>>, vector<1x2x128xf32>
    %549 = vector.shape_cast %548 : vector<1x2x128xf32> to vector<2x128xf32>
    %550 = vector.shape_cast %547 : vector<2x128xf32> to vector<1x2x128xf32>
    tpu.vector_store %arg3[%c0_140, %c0_141, %c0_142], %550 {strides = array<i32>} : memref<2x2x128xf32, #tpu.memory_space<vmem>>, vector<1x2x128xf32>,
    %c1_143 = arith.constant 1 : index
    %c0_144 = arith.constant 0 : index
    %c0_145 = arith.constant 0 : index
    %551 = vector.load %arg5[%c1_143, %c0_144, %c0_145] : memref<2x2x128xf32, #tpu.memory_space<vmem>>, vector<1x2x128xf32>
    %552 = vector.shape_cast %551 : vector<1x2x128xf32> to vector<2x128xf32>
    %c1_146 = arith.constant 1 : index
    %c0_147 = arith.constant 0 : index
    %c0_148 = arith.constant 0 : index
    %553 = vector.load %arg3[%c1_146, %c0_147, %c0_148] : memref<2x2x128xf32, #tpu.memory_space<vmem>>, vector<1x2x128xf32>
    %554 = vector.shape_cast %553 : vector<1x2x128xf32> to vector<2x128xf32>
    %555 = vector.shape_cast %552 : vector<2x128xf32> to vector<1x2x128xf32>
    tpu.vector_store %arg3[%c1_146, %c0_147, %c0_148], %555 {strides = array<i32>} : memref<2x2x128xf32, #tpu.memory_space<vmem>>, vector<1x2x128xf32>,
    return
  }
  func.func @transform_0(%arg0: i32) -> (i32, i32) {
    %c0_i32 = arith.constant 0 : i32
    %c0_i32_0 = arith.constant 0 : i32
    %c0_i32_1 = arith.constant 0 : i32
    return %c0_i32, %c0_i32_0 : i32, i32
  }
  func.func @transform_1(%arg0: i32) -> (i32, i32, i32) {
    %c0_i32 = arith.constant 0 : i32
    %c0_i32_0 = arith.constant 0 : i32
    %c0_i32_1 = arith.constant 0 : i32
    %c0_i32_2 = arith.constant 0 : i32
    return %c0_i32, %c0_i32_0, %c0_i32_1 : i32, i32, i32
  }
  func.func @transform_2(%arg0: i32) -> (i32, i32, i32) {
    %c0_i32 = arith.constant 0 : i32
    %c0_i32_0 = arith.constant 0 : i32
    %c0_i32_1 = arith.constant 0 : i32
    %c0_i32_2 = arith.constant 0 : i32
    return %c0_i32, %c0_i32_0, %c0_i32_1 : i32, i32, i32
  }
}

</mosaic_0001>

<bundles_post_ra>
// kernel: tpu_custom_call.1
= control target key start
LH: loop header
LB: loop body
LE: loop exit
PB: predicated region body
PF: predicated region fallthrough
CT: control target
= control target key end

     0   :  { %7 = vsyncpa [#allocation5], 0  ;;  %s5748_s0 = inlined_call_operand.hbm [shape: f32[2,128], index: 0, kind: input, shape index: {}]   ;;  %s5749_s1 = inlined_call_operand.hbm [shape: s32[2,1,768], index: 1, kind: input, shape index: {}]   ;;  %s5750_s2 = inlined_call_operand.hbm [shape: f32[2,2,128], index: 2, kind: output, shape index: {}]  }
   0x1   :  { %8 = vsyncpa [#allocation8], 0 }
   0x2   :  { %9 = vsyncpa [#allocation6], 0  ;;  %s3567_s9 = smov [#allocation4]   ;;  %s3568_s11 = smov [#allocation7]  }
   0x3   :  { %s16_s10 = sshll.u32 %s3567_s9, 4  ;;  %s25_s12 = sshll.u32 %s3568_s11, 4  ;;  %s17_s10 = int_to_ptr.vmem [resolvable:$true] %s16_s10  ;;  %s26_s12 = int_to_ptr.vmem [resolvable:$true] %s25_s12 }
   0x4   :  { %s3509_s13 = scalar_lea.vmem %s17_s10, 32  ;;  %p3514_p1 = scmp.lt.s32.totalorder %s17_s10, %s17_s10 }
   0x5   :  { %p3510_p0 = scmp.ne.s32.totalorder %s17_s10, %s3509_s13  ;;  %p3515_p2 = scmp.lt.s32.totalorder %s3509_s13, %s3509_s13 }
   0x7   :  { %p3516_p3 = por %p3515_p2, %p3514_p1 }
   0x9   :  { %p3517_p4 = pnand %p3516_p3, %p3510_p0 }
   0xb   :  { %3520 = shalt.err (!%p3517_p4)
}
   0xc   :  { %19 = dma.hbm_to_vmem [thread:$0]  %s5748_s0, 32, %s17_s10, [#allocation5]  }
   0xd   :  { %s3529_s16 = scalar_lea.vmem %s26_s12, 192  ;;  %p3534_p6 = scmp.lt.s32.totalorder %s26_s12, %s26_s12 }
   0xe   :  { %p3530_p5 = scmp.ne.s32.totalorder %s26_s12, %s3529_s16  ;;  %p3535_p7 = scmp.lt.s32.totalorder %s3529_s16, %s3529_s16 }
  0x10   :  { %p3536_p8 = por %p3535_p7, %p3534_p6 }
  0x12   :  { %p3537_p9 = pnand %p3536_p8, %p3530_p5 }
  0x14   :  { %3540 = shalt.err (!%p3537_p9)
}
  0x15   :  { %s3569_s17 = smov 96   ;;  %s3570_s18 = smov 6  }
  0x16   :  { %31 = dma.hbm_to_vmem [thread:$0]  %s5749_s1, 192, %s26_s12, [#allocation8], %s3569_s17, %s3569_s17, %s3570_s18  }
  0x17   :  { %3561 = dma.done.wait [#allocation5], 32  }
  0x18   :  { %3562 = vsyncadd [#allocation5], 4294967264 }
  0x19   :  { %3563 = dma.done.wait [#allocation8], 192  }
  0x1a   :  { %3564 = vsyncadd [#allocation8], 4294967104  ;;  %v39_v0 = vlaneseq  ;;  %v3571_v1 = vmov 0.0   ;;  %v3608_v8 = vld [vmem:[#allocation7] sm:$0x3f]  ;;  %v3572_v17 = vmov 1.0  }
  0x1b   :  { %1041 = vmatprep.mubr.f32.mxu0 %v3571_v1  ;;  %1112 = vmatprep.mubr.f32.mxu1 %v3571_v1  ;;  %v38_v15 = vld [vmem:[#allocation4] sm:$0x3]  ;;  %v3998_v31 = vld [vmem:[#allocation7 + $0x6] sm:$0x3f]  ;;  %s3573_s11 = smov [#allocation9]  }
  0x1c   :  { %v3599_v2 = vshrl.u32 %v39_v0, 7  ;;  %465 = vst [vmem:[#allocation3] sm:$0x3] %v38_v15  ;;  %878 = vst [vmem:[#allocation3 + $0x2] sm:$0x3] %v38_v15  ;;  %s2722_s12 = sshll.u32 %s3573_s11, 4  ;;  %s2723_s12 = int_to_ptr.vmem [resolvable:$true] %s2722_s12 }
  0x1d   :  { %s3541_s13 = scalar_lea.vmem %s2723_s12, 64  ;;  %p3546_p11 = scmp.lt.s32.totalorder %s2723_s12, %s2723_s12 }
  0x1e   :  { %v63_v3 = vsub.s32 1, %v3599_v2  ;;  %v71_v4 = vsub.s32 3, %v3599_v2  ;;  %v59_v5 = vsub.s32 0, %v3599_v2  ;;  %v67_v6 = vsub.s32 2, %v3599_v2  ;;  %p3542_p10 = scmp.ne.s32.totalorder %s2723_s12, %s3541_s13  ;;  %p3547_p12 = scmp.lt.s32.totalorder %s3541_s13, %s3541_s13 }
  0x1f   :  { %v3606_v7 = vadd.s32 120, %v3599_v2  ;;  %v3611_v9 = vadd.s32 112, %v3599_v2  ;;  %v3614_v10 = vadd.s32 104, %v3599_v2  ;;  %v3637_v16 = vadd.s32 96, %v3599_v2 }
  0x20   :  { %v3619_v11 = vrot.slane %v3608_v8, %v63_v3  ;;  %v3624_v12 = vrot.slane %v3608_v8, %v71_v4  ;;  %v3629_v13 = vrot.slane %v3608_v8, %v59_v5  ;;  %v3634_v14 = vrot.slane %v3608_v8, %v67_v6  ;;  %p3548_p13 = por %p3547_p12, %p3546_p11 }
  0x21   :  { %v3676_v18 = vadd.s32 88, %v3599_v2  ;;  %v3703_v19 = vadd.s32 80, %v3599_v2  ;;  %v3730_v20 = vadd.s32 72, %v3599_v2  ;;  %v3757_v21 = vadd.s32 64, %v3599_v2 }
  0x22   :  { %vm172_vm0 = vcmp.eq.s32.totalorder %v3606_v7, %v3619_v11  ;;  %vm174_vm1 = vcmp.eq.s32.totalorder %v3606_v7, %v3624_v12  ;;  %vm171_vm2 = vcmp.eq.s32.totalorder %v3606_v7, %v3629_v13  ;;  %vm173_vm3 = vcmp.eq.s32.totalorder %v3606_v7, %v3634_v14  ;;  %p3549_p0 = pnand %p3548_p13, %p3542_p10 }
  0x23   :  { %2927 = vmatprep.subr.msk.mxu0 %vm172_vm0, %v3572_v17  ;;  %2959 = vmatprep.subr.msk.mxu1 %vm174_vm1, %v3572_v17  ;;  %vm166_vm4 = vcmp.eq.s32.totalorder %v3611_v9, %v3619_v11  ;;  %vm168_vm5 = vcmp.eq.s32.totalorder %v3611_v9, %v3624_v12  ;;  %vm5752_vm6 = vcmp.eq.s32.totalorder %v3611_v9, %v3629_v13  ;;  %v3784_v22 = vadd.s32 56, %v3599_v2  ;;  %v4059_v35 = vld [vmem:[#allocation3] sm:$0x3]  ;;  %v4498_v41 = vld [vmem:[#allocation3 + $0x2] sm:$0x3] }
  0x24   :  { %2928 = vmatpush1.msk.msra.mxu0 %vm171_vm2, %v3572_v17  ;;  %2960 = vmatpush1.msk.msra.mxu1 %vm173_vm3, %v3572_v17  ;;  %vm167_vm7 = vcmp.eq.s32.totalorder %v3611_v9, %v3634_v14  ;;  %vm5751_vm8 = vcmp.eq.s32.totalorder %v3614_v10, %v3619_v11  ;;  %vm5808_vm9 = vcmp.eq.s32.totalorder %v3614_v10, %v3624_v12  ;;  %v3811_v23 = vadd.s32 48, %v3599_v2 }
  0x25   :  { %2929 = vmatprep.subr.msk.mxu0 %vm166_vm4, %v3572_v17  ;;  %2961 = vmatprep.subr.msk.mxu1 %vm168_vm5, %v3572_v17  ;;  %vm5753_vm10 = vcmp.eq.s32.totalorder %v3614_v10, %v3629_v13  ;;  %vm5754_vm11 = vcmp.eq.s32.totalorder %v3614_v10, %v3634_v14  ;;  %vm5755_vm12 = vcmp.eq.s32.totalorder %v3637_v16, %v3619_v11  ;;  %v3838_v24 = vadd.s32 40, %v3599_v2 }
  0x26   :  { %2930 = vmatpush1.msk.msra.mxu0 %vm5752_vm6, %v3572_v17  ;;  %2962 = vmatpush1.msk.msra.mxu1 %vm167_vm7, %v3572_v17  ;;  %vm5756_vm13 = vcmp.eq.s32.totalorder %v3637_v16, %v3624_v12  ;;  %vm5757_vm14 = vcmp.eq.s32.totalorder %v3637_v16, %v3629_v13  ;;  %vm5758_vm15 = vcmp.eq.s32.totalorder %v3637_v16, %v3634_v14  ;;  %v3865_v25 = vadd.s32 32, %v3599_v2 }
  0x27   :  { %2931 = vmatprep.subr.msk.mxu0 %vm5751_vm8, %v3572_v17  ;;  %2963 = vmatprep.subr.msk.mxu1 %vm5808_vm9, %v3572_v17  ;;  %vm5759_vm8 = vcmp.eq.s32.totalorder %v3676_v18, %v3619_v11  ;;  %vm5760_vm6 = vcmp.eq.s32.totalorder %v3676_v18, %v3624_v12  ;;  %v3892_v26 = vadd.s32 24, %v3599_v2  ;;  %v3919_v27 = vadd.s32 16, %v3599_v2 }
  0x28   :  { %2932 = vmatpush1.msk.msra.mxu0 %vm5753_vm10, %v3572_v17  ;;  %2964 = vmatpush1.msk.msra.mxu1 %vm5754_vm11, %v3572_v17  ;;  %vm5761_vm10 = vcmp.eq.s32.totalorder %v3676_v18, %v3629_v13  ;;  %vm5762_vm11 = vcmp.eq.s32.totalorder %v3676_v18, %v3634_v14  ;;  %v3946_v28 = vadd.s32 8, %v3599_v2  ;;  %v79_v29 = vsub.s32 5, %v3599_v2 }
  0x29   :  { %2933 = vmatprep.subr.msk.mxu0 %vm5755_vm12, %v3572_v17  ;;  %2965 = vmatprep.subr.msk.mxu1 %vm5756_vm13, %v3572_v17  ;;  %vm5763_vm12 = vcmp.eq.s32.totalorder %v3703_v19, %v3619_v11  ;;  %vm5764_vm13 = vcmp.eq.s32.totalorder %v3703_v19, %v3624_v12  ;;  %v75_v30 = vsub.s32 4, %v3599_v2  ;;  %v4049_v34 = vrot.slane %v3998_v31, %v63_v3 }
  0x2a   :  { %2934 = vmatpush1.msk.msra.mxu0 %vm5757_vm14, %v3572_v17  ;;  %2966 = vmatpush1.msk.msra.mxu1 %vm5758_vm15, %v3572_v17  ;;  %vm5765_vm14 = vcmp.eq.s32.totalorder %v3703_v19, %v3629_v13  ;;  %vm5766_vm15 = vcmp.eq.s32.totalorder %v3703_v19, %v3634_v14  ;;  %v4015_v32 = vrot.slane %v3608_v8, %v79_v29 }
  0x2b   :  { %2935 = vmatprep.subr.msk.mxu0 %vm5759_vm8, %v3572_v17  ;;  %2967 = vmatprep.subr.msk.mxu1 %vm5760_vm6, %v3572_v17  ;;  %vm5767_vm8 = vcmp.eq.s32.totalorder %v3730_v20, %v3619_v11  ;;  %vm5768_vm6 = vcmp.eq.s32.totalorder %v3730_v20, %v3624_v12  ;;  %v4032_v33 = vrot.slane %v3608_v8, %v75_v30 }
  0x2c   :  { %2936 = vmatpush1.msk.msra.mxu0 %vm5761_vm10, %v3572_v17  ;;  %2968 = vmatpush1.msk.msra.mxu1 %vm5762_vm11, %v3572_v17  ;;  %vm5769_vm10 = vcmp.eq.s32.totalorder %v3730_v20, %v3629_v13  ;;  %vm5770_vm11 = vcmp.eq.s32.totalorder %v3730_v20, %v3634_v14  ;;  %v4064_v36 = vrot.slane %v3998_v31, %v59_v5 }
  0x2d   :  { %2937 = vmatprep.subr.msk.mxu0 %vm5763_vm12, %v3572_v17  ;;  %2969 = vmatprep.subr.msk.mxu1 %vm5764_vm13, %v3572_v17  ;;  %vm5771_vm12 = vcmp.eq.s32.totalorder %v3757_v21, %v3619_v11  ;;  %vm5772_vm13 = vcmp.eq.s32.totalorder %v3757_v21, %v3624_v12  ;;  %vm5815_vm9 = vcmp.eq.s32.totalorder %v3614_v10, %v4032_v33 }
  0x2e   :  { %2938 = vmatpush1.msk.msra.mxu0 %vm5765_vm14, %v3572_v17  ;;  %2970 = vmatpush1.msk.msra.mxu1 %vm5766_vm15, %v3572_v17  ;;  %vm5773_vm14 = vcmp.eq.s32.totalorder %v3757_v21, %v3629_v13  ;;  %vm5774_vm15 = vcmp.eq.s32.totalorder %v3757_v21, %v3634_v14  ;;  %v4421_v37 = vrot.slane %v3998_v31, %v71_v4 }
  0x2f   :  { %2939 = vmatprep.subr.msk.mxu0 %vm5767_vm8, %v3572_v17  ;;  %2971 = vmatprep.subr.msk.mxu1 %vm5768_vm6, %v3572_v17  ;;  %vm5775_vm8 = vcmp.eq.s32.totalorder %v3784_v22, %v3619_v11  ;;  %vm5776_vm6 = vcmp.eq.s32.totalorder %v3784_v22, %v3624_v12  ;;  %v4426_v38 = vrot.slane %v3998_v31, %v67_v6 }
  0x30   :  { %2940 = vmatpush1.msk.msra.mxu0 %vm5769_vm10, %v3572_v17  ;;  %2972 = vmatpush1.msk.msra.mxu1 %vm5770_vm11, %v3572_v17  ;;  %vm5777_vm10 = vcmp.eq.s32.totalorder %v3784_v22, %v3629_v13  ;;  %vm5778_vm11 = vcmp.eq.s32.totalorder %v3784_v22, %v3634_v14  ;;  %v4463_v39 = vrot.slane %v3998_v31, %v79_v29 }
  0x31   :  { %2941 = vmatprep.subr.msk.mxu0 %vm5771_vm12, %v3572_v17  ;;  %2973 = vmatprep.subr.msk.mxu1 %vm5772_vm13, %v3572_v17  ;;  %vm5779_vm12 = vcmp.eq.s32.totalorder %v3811_v23, %v3619_v11  ;;  %vm5780_vm13 = vcmp.eq.s32.totalorder %v3811_v23, %v3624_v12  ;;  %v4478_v40 = vrot.slane %v3998_v31, %v75_v30 }
  0x32   :  { %2942 = vmatpush1.msk.msra.mxu0 %vm5773_vm14, %v3572_v17  ;;  %2974 = vmatpush1.msk.msra.mxu1 %vm5774_vm15, %v3572_v17  ;;  %vm5781_vm14 = vcmp.eq.s32.totalorder %v3811_v23, %v3629_v13  ;;  %vm5782_vm15 = vcmp.eq.s32.totalorder %v3811_v23, %v3634_v14 }
  0x33   :  { %2943 = vmatprep.subr.msk.mxu0 %vm5775_vm8, %v3572_v17  ;;  %2975 = vmatprep.subr.msk.mxu1 %vm5776_vm6, %v3572_v17  ;;  %vm5783_vm8 = vcmp.eq.s32.totalorder %v3838_v24, %v3619_v11  ;;  %vm5784_vm6 = vcmp.eq.s32.totalorder %v3838_v24, %v3624_v12 }
  0x34   :  { %2944 = vmatpush1.msk.msra.mxu0 %vm5777_vm10, %v3572_v17  ;;  %2976 = vmatpush1.msk.msra.mxu1 %vm5778_vm11, %v3572_v17  ;;  %vm5785_vm10 = vcmp.eq.s32.totalorder %v3838_v24, %v3629_v13  ;;  %vm5786_vm11 = vcmp.eq.s32.totalorder %v3838_v24, %v3634_v14 }
  0x35   :  { %2945 = vmatprep.subr.msk.mxu0 %vm5779_vm12, %v3572_v17  ;;  %2977 = vmatprep.subr.msk.mxu1 %vm5780_vm13, %v3572_v17  ;;  %vm5787_vm12 = vcmp.eq.s32.totalorder %v3865_v25, %v3619_v11  ;;  %vm5788_vm13 = vcmp.eq.s32.totalorder %v3865_v25, %v3624_v12 }
  0x36   :  { %2946 = vmatpush1.msk.msra.mxu0 %vm5781_vm14, %v3572_v17  ;;  %2978 = vmatpush1.msk.msra.mxu1 %vm5782_vm15, %v3572_v17  ;;  %vm5789_vm14 = vcmp.eq.s32.totalorder %v3865_v25, %v3629_v13  ;;  %vm5790_vm15 = vcmp.eq.s32.totalorder %v3865_v25, %v3634_v14 }
  0x37   :  { %2947 = vmatprep.subr.msk.mxu0 %vm5783_vm8, %v3572_v17  ;;  %2979 = vmatprep.subr.msk.mxu1 %vm5784_vm6, %v3572_v17  ;;  %vm5791_vm8 = vcmp.eq.s32.totalorder %v3892_v26, %v3619_v11  ;;  %vm5792_vm6 = vcmp.eq.s32.totalorder %v3892_v26, %v3624_v12 }
  0x38   :  { %2948 = vmatpush1.msk.msra.mxu0 %vm5785_vm10, %v3572_v17  ;;  %2980 = vmatpush1.msk.msra.mxu1 %vm5786_vm11, %v3572_v17  ;;  %vm5793_vm10 = vcmp.eq.s32.totalorder %v3892_v26, %v3629_v13  ;;  %vm5794_vm11 = vcmp.eq.s32.totalorder %v3892_v26, %v3634_v14 }
  0x39   :  { %2949 = vmatprep.subr.msk.mxu0 %vm5787_vm12, %v3572_v17  ;;  %2981 = vmatprep.subr.msk.mxu1 %vm5788_vm13, %v3572_v17  ;;  %vm5795_vm12 = vcmp.eq.s32.totalorder %v3919_v27, %v3619_v11  ;;  %vm5796_vm13 = vcmp.eq.s32.totalorder %v3919_v27, %v3624_v12 }
  0x3a   :  { %2950 = vmatpush1.msk.msra.mxu0 %vm5789_vm14, %v3572_v17  ;;  %2982 = vmatpush1.msk.msra.mxu1 %vm5790_vm15, %v3572_v17  ;;  %vm5797_vm14 = vcmp.eq.s32.totalorder %v3919_v27, %v3629_v13  ;;  %vm5798_vm15 = vcmp.eq.s32.totalorder %v3919_v27, %v3634_v14 }
  0x3b   :  { %2951 = vmatprep.subr.msk.mxu0 %vm5791_vm8, %v3572_v17  ;;  %2983 = vmatprep.subr.msk.mxu1 %vm5792_vm6, %v3572_v17  ;;  %vm5802_vm8 = vcmp.eq.s32.totalorder %v3946_v28, %v3619_v11  ;;  %vm5806_vm6 = vcmp.eq.s32.totalorder %v3946_v28, %v3624_v12 }
  0x3c   :  { %2952 = vmatpush1.msk.msra.mxu0 %vm5793_vm10, %v3572_v17  ;;  %2984 = vmatpush1.msk.msra.mxu1 %vm5794_vm11, %v3572_v17  ;;  %vm5799_vm10 = vcmp.eq.s32.totalorder %v3946_v28, %v3629_v13  ;;  %vm5805_vm11 = vcmp.eq.s32.totalorder %v3946_v28, %v3634_v14 }
  0x3d   :  { %2953 = vmatprep.subr.msk.mxu0 %vm5795_vm12, %v3572_v17  ;;  %2985 = vmatprep.subr.msk.mxu1 %vm5796_vm13, %v3572_v17  ;;  %vm5800_vm12 = vcmp.eq.s32.totalorder %v3599_v2, %v3619_v11  ;;  %vm5801_vm13 = vcmp.eq.s32.totalorder %v3599_v2, %v3624_v12 }
  0x3e   :  { %2954 = vmatpush1.msk.msra.mxu0 %vm5797_vm14, %v3572_v17  ;;  %2986 = vmatpush1.msk.msra.mxu1 %vm5798_vm15, %v3572_v17  ;;  %vm5803_vm14 = vcmp.eq.s32.totalorder %v3599_v2, %v3629_v13  ;;  %vm5804_vm15 = vcmp.eq.s32.totalorder %v3599_v2, %v3634_v14 }
  0x3f   :  { %2955 = vmatprep.subr.msk.mxu0 %vm5802_vm8, %v3572_v17  ;;  %2987 = vmatprep.subr.msk.mxu1 %vm5806_vm6, %v3572_v17  ;;  %vm5810_vm8 = vcmp.eq.s32.totalorder %v3606_v7, %v4049_v34  ;;  %vm5814_vm6 = vcmp.eq.s32.totalorder %v3614_v10, %v4015_v32 }
  0x40   :  { %2956 = vmatpush1.msk.msra.mxu0 %vm5799_vm10, %v3572_v17  ;;  %2988 = vmatpush1.msk.msra.mxu1 %vm5805_vm11, %v3572_v17  ;;  %vm5807_vm10 = vcmp.eq.s32.totalorder %v3606_v7, %v4015_v32  ;;  %vm577_vm11 = vcmp.eq.s32.totalorder %v3611_v9, %v4049_v34 }
  0x41   :  { %2957 = vmatprep.subr.msk.mxu0 %vm5800_vm12, %v3572_v17  ;;  %2989 = vmatprep.subr.msk.mxu1 %vm5801_vm13, %v3572_v17  ;;  %vm5809_vm12 = vcmp.eq.s32.totalorder %v3606_v7, %v4032_v33  ;;  %vm5811_vm13 = vcmp.eq.s32.totalorder %v3611_v9, %v4015_v32 }
  0x42   :  { %2958 = vmatpush1.msk.msra.mxu0 %vm5803_vm14, %v3572_v17  ;;  %2990 = vmatpush1.msk.msra.mxu1 %vm5804_vm15, %v3572_v17  ;;  %vm5813_vm14 = vcmp.eq.s32.totalorder %v3611_v9, %v4032_v33  ;;  %vm5812_vm15 = vcmp.eq.s32.totalorder %v3606_v7, %v4064_v36 }
  0x43   :  { %1042 = vmatmul.mubr.f32.vlgmr.msra.gmra.mxu0 %v4059_v35  ;;  %1113 = vmatmul.mubr.f32.vlgmr.msra.gmra.mxu1 %v4059_v35 }
  0x44   :  { %2991 = vmatprep.subr.msk.mxu0 %vm5807_vm10, %v3572_v17  ;;  %1183 = vmatprep.mubr.f32.mxu0 %v3571_v1  ;;  %vm5904_vm10 = vcmp.eq.s32.totalorder %v3611_v9, %v4064_v36 }
  0x45   :  { %2992 = vmatpush1.msk.msra.mxu0 %vm5809_vm12, %v3572_v17  ;;  %3023 = vmatprep.subr.msk.mxu1 %vm5810_vm8, %v3572_v17  ;;  %vm5859_vm12 = vcmp.eq.s32.totalorder %v3614_v10, %v4049_v34  ;;  %vm5816_vm8 = vcmp.eq.s32.totalorder %v3637_v16, %v4015_v32 }
  0x46   :  { %2993 = vmatprep.subr.msk.mxu0 %vm5811_vm13, %v3572_v17  ;;  %3024 = vmatpush1.msk.msra.mxu1 %vm5812_vm15, %v3572_v17  ;;  %vm5818_vm13 = vcmp.eq.s32.totalorder %v3614_v10, %v4064_v36  ;;  %vm5817_vm15 = vcmp.eq.s32.totalorder %v3637_v16, %v4032_v33 }
  0x47   :  { %2994 = vmatpush1.msk.msra.mxu0 %vm5813_vm14, %v3572_v17  ;;  %3025 = vmatprep.subr.msk.mxu1 %vm577_vm11, %v3572_v17  ;;  %vm5819_vm14 = vcmp.eq.s32.totalorder %v3676_v18, %v4015_v32 }
  0x48   :  { %2995 = vmatprep.subr.msk.mxu0 %vm5814_vm6, %v3572_v17  ;;  %3026 = vmatpush1.msk.msra.mxu1 %vm5904_vm10, %v3572_v17  ;;  %vm5820_vm6 = vcmp.eq.s32.totalorder %v3676_v18, %v4032_v33  ;;  %vm5912_vm10 = vcmp.eq.s32.totalorder %v3865_v25, %v4463_v39 }
  0x49   :  { %2996 = vmatpush1.msk.msra.mxu0 %vm5815_vm9, %v3572_v17  ;;  %3027 = vmatprep.subr.msk.mxu1 %vm5859_vm12, %v3572_v17  ;;  %vm5821_vm9 = vcmp.eq.s32.totalorder %v3703_v19, %v4015_v32  ;;  %vm5863_vm12 = vcmp.eq.s32.totalorder %v3606_v7, %v4426_v38 }
  0x4a   :  { %2997 = vmatprep.subr.msk.mxu0 %vm5816_vm8, %v3572_v17  ;;  %3028 = vmatpush1.msk.msra.mxu1 %vm5818_vm13, %v3572_v17  ;;  %vm5822_vm8 = vcmp.eq.s32.totalorder %v3703_v19, %v4032_v33  ;;  %vm5824_vm13 = vcmp.eq.s32.totalorder %v3730_v20, %v4032_v33 }
  0x4b   :  { %2998 = vmatpush1.msk.msra.mxu0 %vm5817_vm15, %v3572_v17  ;;  %1469 = vmatprep.mubr.f32.mxu1 %v3571_v1  ;;  %vm5823_vm15 = vcmp.eq.s32.totalorder %v3730_v20, %v4015_v32 }
  0x4c   :  { %2999 = vmatprep.subr.msk.mxu0 %vm5819_vm14, %v3572_v17  ;;  %vm5825_vm14 = vcmp.eq.s32.totalorder %v3757_v21, %v4015_v32 }
  0x4d   :  { %3000 = vmatpush1.msk.msra.mxu0 %vm5820_vm6, %v3572_v17  ;;  %vm5826_vm6 = vcmp.eq.s32.totalorder %v3757_v21, %v4032_v33 }
  0x4e   :  { %3001 = vmatprep.subr.msk.mxu0 %vm5821_vm9, %v3572_v17  ;;  %vm5827_vm9 = vcmp.eq.s32.totalorder %v3784_v22, %v4015_v32 }
  0x4f   :  { %3002 = vmatpush1.msk.msra.mxu0 %vm5822_vm8, %v3572_v17  ;;  %vm5828_vm8 = vcmp.eq.s32.totalorder %v3784_v22, %v4032_v33 }
  0x50   :  { %3003 = vmatprep.subr.msk.mxu0 %vm5823_vm15, %v3572_v17  ;;  %vm5829_vm15 = vcmp.eq.s32.totalorder %v3811_v23, %v4015_v32 }
  0x51   :  { %3004 = vmatpush1.msk.msra.mxu0 %vm5824_vm13, %v3572_v17  ;;  %vm5830_vm13 = vcmp.eq.s32.totalorder %v3811_v23, %v4032_v33 }
  0x52   :  { %3005 = vmatprep.subr.msk.mxu0 %vm5825_vm14, %v3572_v17  ;;  %vm5831_vm14 = vcmp.eq.s32.totalorder %v3838_v24, %v4015_v32 }
  0x53   :  { %3006 = vmatpush1.msk.msra.mxu0 %vm5826_vm6, %v3572_v17  ;;  %vm5832_vm6 = vcmp.eq.s32.totalorder %v3838_v24, %v4032_v33 }
  0x54   :  { %3007 = vmatprep.subr.msk.mxu0 %vm5827_vm9, %v3572_v17  ;;  %vm5833_vm9 = vcmp.eq.s32.totalorder %v3865_v25, %v4015_v32 }
  0x55   :  { %3008 = vmatpush1.msk.msra.mxu0 %vm5828_vm8, %v3572_v17  ;;  %vm5834_vm8 = vcmp.eq.s32.totalorder %v3865_v25, %v4032_v33 }
  0x56   :  { %3009 = vmatprep.subr.msk.mxu0 %vm5829_vm15, %v3572_v17  ;;  %vm5835_vm15 = vcmp.eq.s32.totalorder %v3892_v26, %v4015_v32 }
  0x57   :  { %3010 = vmatpush1.msk.msra.mxu0 %vm5830_vm13, %v3572_v17  ;;  %vm5836_vm13 = vcmp.eq.s32.totalorder %v3892_v26, %v4032_v33 }
  0x58   :  { %3011 = vmatprep.subr.msk.mxu0 %vm5831_vm14, %v3572_v17  ;;  %vm5842_vm14 = vcmp.eq.s32.totalorder %v3919_v27, %v4015_v32 }
  0x59   :  { %3012 = vmatpush1.msk.msra.mxu0 %vm5832_vm6, %v3572_v17  ;;  %vm5841_vm6 = vcmp.eq.s32.totalorder %v3919_v27, %v4032_v33 }
  0x5a   :  { %3013 = vmatprep.subr.msk.mxu0 %vm5833_vm9, %v3572_v17  ;;  %vm5837_vm9 = vcmp.eq.s32.totalorder %v3946_v28, %v4015_v32 }
  0x5b   :  { %3014 = vmatpush1.msk.msra.mxu0 %vm5834_vm8, %v3572_v17  ;;  %vm5840_vm8 = vcmp.eq.s32.totalorder %v3946_v28, %v4032_v33 }
  0x5c   :  { %3015 = vmatprep.subr.msk.mxu0 %vm5835_vm15, %v3572_v17  ;;  %vm5838_vm15 = vcmp.eq.s32.totalorder %v3599_v2, %v4015_v32 }
  0x5d   :  { %3016 = vmatpush1.msk.msra.mxu0 %vm5836_vm13, %v3572_v17  ;;  %vm5839_vm13 = vcmp.eq.s32.totalorder %v3599_v2, %v4032_v33 }
  0x5e   :  { %3017 = vmatprep.subr.msk.mxu0 %vm5842_vm14, %v3572_v17  ;;  %vm5846_vm14 = vcmp.eq.s32.totalorder %v3703_v19, %v4064_v36 }
  0x5f   :  { %3018 = vmatpush1.msk.msra.mxu0 %vm5841_vm6, %v3572_v17  ;;  %vm5845_vm6 = vcmp.eq.s32.totalorder %v3703_v19, %v4049_v34 }
  0x60   :  { %3019 = vmatprep.subr.msk.mxu0 %vm5837_vm9, %v3572_v17  ;;  %vm5854_vm9 = vcmp.eq.s32.totalorder %v3637_v16, %v4049_v34 }
  0x61   :  { %3020 = vmatpush1.msk.msra.mxu0 %vm5840_vm8, %v3572_v17  ;;  %3029 = vmatprep.subr.msk.mxu1 %vm5854_vm9, %v3572_v17  ;;  %vm5844_vm8 = vcmp.eq.s32.totalorder %v3676_v18, %v4064_v36  ;;  %vm5861_vm9 = vcmp.eq.s32.totalorder %v3865_v25, %v4064_v36 }
  0x62   :  { %3021 = vmatprep.subr.msk.mxu0 %vm5838_vm15, %v3572_v17  ;;  %vm5851_vm15 = vcmp.eq.s32.totalorder %v3637_v16, %v4064_v36 }
  0x63   :  { %3022 = vmatpush1.msk.msra.mxu0 %vm5839_vm13, %v3572_v17  ;;  %3030 = vmatpush1.msk.msra.mxu1 %vm5851_vm15, %v3572_v17  ;;  %vm5843_vm13 = vcmp.eq.s32.totalorder %v3676_v18, %v4049_v34  ;;  %vm5857_vm15 = vcmp.eq.s32.totalorder %v3838_v24, %v4049_v34 }
  0x64   :  { %1184 = vmatmul.mubr.f32.vlgmr.msra.gmra.mxu0 %v4059_v35  ;;  %3031 = vmatprep.subr.msk.mxu1 %vm5843_vm13, %v3572_v17  ;;  %vm5847_vm13 = vcmp.eq.s32.totalorder %v3730_v20, %v4049_v34 }
  0x65   :  { %1540 = vmatprep.mubr.f32.mxu0 %v3571_v1  ;;  %3032 = vmatpush1.msk.msra.mxu1 %vm5844_vm8, %v3572_v17  ;;  %vm5848_vm8 = vcmp.eq.s32.totalorder %v3730_v20, %v4064_v36 }
  0x66   :  { %3033 = vmatprep.subr.msk.mxu1 %vm5845_vm6, %v3572_v17  ;;  %vm5849_vm6 = vcmp.eq.s32.totalorder %v3757_v21, %v4049_v34 }
  0x67   :  { %3034 = vmatpush1.msk.msra.mxu1 %vm5846_vm14, %v3572_v17  ;;  %vm5850_vm14 = vcmp.eq.s32.totalorder %v3757_v21, %v4064_v36 }
  0x68   :  { %3035 = vmatprep.subr.msk.mxu1 %vm5847_vm13, %v3572_v17  ;;  %vm5852_vm13 = vcmp.eq.s32.totalorder %v3784_v22, %v4049_v34 }
  0x69   :  { %3036 = vmatpush1.msk.msra.mxu1 %vm5848_vm8, %v3572_v17  ;;  %vm5853_vm8 = vcmp.eq.s32.totalorder %v3784_v22, %v4064_v36 }
  0x6a   :  { %3037 = vmatprep.subr.msk.mxu1 %vm5849_vm6, %v3572_v17  ;;  %vm5855_vm6 = vcmp.eq.s32.totalorder %v3811_v23, %v4049_v34 }
  0x6b   :  { %3038 = vmatpush1.msk.msra.mxu1 %vm5850_vm14, %v3572_v17  ;;  %vm5858_vm14 = vcmp.eq.s32.totalorder %v3811_v23, %v4064_v36 }
  0x6c   :  { %3039 = vmatprep.subr.msk.mxu1 %vm5852_vm13, %v3572_v17  ;;  %vm5856_vm13 = vcmp.eq.s32.totalorder %v3838_v24, %v4064_v36 }
  0x6d   :  { %3040 = vmatpush1.msk.msra.mxu1 %vm5853_vm8, %v3572_v17  ;;  %vm5860_vm8 = vcmp.eq.s32.totalorder %v3865_v25, %v4049_v34 }
  0x6e   :  { %3041 = vmatprep.subr.msk.mxu1 %vm5855_vm6, %v3572_v17  ;;  %vm5901_vm6 = vcmp.eq.s32.totalorder %v3892_v26, %v4049_v34 }
  0x6f   :  { %3042 = vmatpush1.msk.msra.mxu1 %vm5858_vm14, %v3572_v17  ;;  %vm5862_vm14 = vcmp.eq.s32.totalorder %v3606_v7, %v4421_v37 }
  0x70   :  { %3043 = vmatprep.subr.msk.mxu1 %vm5857_vm15, %v3572_v17  ;;  %vm5864_vm15 = vcmp.eq.s32.totalorder %v3919_v27, %v4049_v34  ;;  %3055 = vmatprep.subr.msk.mxu0 %vm5862_vm14, %v3572_v17  ;;  %vm5867_vm14 = vcmp.eq.s32.totalorder %v3946_v28, %v4064_v36 }
  0x71   :  { %3044 = vmatpush1.msk.msra.mxu1 %vm5856_vm13, %v3572_v17  ;;  %vm5865_vm13 = vcmp.eq.s32.totalorder %v3892_v26, %v4064_v36  ;;  %3056 = vmatpush1.msk.msra.mxu0 %vm5863_vm12, %v3572_v17  ;;  %vm5868_vm12 = vcmp.eq.s32.totalorder %v3599_v2, %v4049_v34 }
  0x72   :  { %3045 = vmatprep.subr.msk.mxu1 %vm5860_vm8, %v3572_v17  ;;  %vm5873_vm8 = vcmp.eq.s32.totalorder %v3919_v27, %v4064_v36 }
  0x73   :  { %3046 = vmatpush1.msk.msra.mxu1 %vm5861_vm9, %v3572_v17  ;;  %vm5866_vm9 = vcmp.eq.s32.totalorder %v3946_v28, %v4049_v34 }
  0x74   :  { %3047 = vmatprep.subr.msk.mxu1 %vm5901_vm6, %v3572_v17  ;;  %vm5909_vm6 = vcmp.eq.s32.totalorder %v3784_v22, %v4426_v38 }
  0x75   :  { %3048 = vmatpush1.msk.msra.mxu1 %vm5865_vm13, %v3572_v17  ;;  %vm5870_vm13 = vcmp.eq.s32.totalorder %v3606_v7, %v4463_v39 }
  0x76   :  { %3049 = vmatprep.subr.msk.mxu1 %vm5864_vm15, %v3572_v17  ;;  %vm5869_vm15 = vcmp.eq.s32.totalorder %v3599_v2, %v4064_v36 }
  0x77   :  { %3050 = vmatpush1.msk.msra.mxu1 %vm5873_vm8, %v3572_v17  ;;  %vm5895_vm8 = vcmp.eq.s32.totalorder %v3611_v9, %v4426_v38 }
  0x78   :  { %3051 = vmatprep.subr.msk.mxu1 %vm5866_vm9, %v3572_v17  ;;  %vm5872_vm9 = vcmp.eq.s32.totalorder %v3606_v7, %v4478_v40 }
  0x79   :  { %3052 = vmatpush1.msk.msra.mxu1 %vm5867_vm14, %v3572_v17  ;;  %vm5871_vm14 = vcmp.eq.s32.totalorder %v3611_v9, %v4463_v39 }
  0x7a   :  { %3053 = vmatprep.subr.msk.mxu1 %vm5868_vm12, %v3572_v17  ;;  %vm5874_vm12 = vcmp.eq.s32.totalorder %v3611_v9, %v4478_v40 }
  0x7b   :  { %3054 = vmatpush1.msk.msra.mxu1 %vm5869_vm15, %v3572_v17  ;;  %vm5876_vm15 = vcmp.eq.s32.totalorder %v3614_v10, %v4463_v39 }
  0x7c   :  { %3087 = vmatprep.subr.msk.mxu1 %vm5870_vm13, %v3572_v17  ;;  %1470 = vmatmul.mubr.f32.vlgmr.msra.gmra.mxu1 %v4498_v41  ;;  %vm5875_vm13 = vcmp.eq.s32.totalorder %v3614_v10, %v4478_v40 }
  0x7d   :  { %3088 = vmatpush1.msk.msra.mxu1 %vm5872_vm9, %v3572_v17  ;;  %1611 = vmatprep.mubr.f32.mxu1 %v3571_v1  ;;  %vm5877_vm9 = vcmp.eq.s32.totalorder %v3637_v16, %v4463_v39 }
  0x7e   :  { %3089 = vmatprep.subr.msk.mxu1 %vm5871_vm14, %v3572_v17  ;;  %vm5898_vm14 = vcmp.eq.s32.totalorder %v3611_v9, %v4421_v37 }
  0x7f   :  { %3090 = vmatpush1.msk.msra.mxu1 %vm5874_vm12, %v3572_v17  ;;  %vm5878_vm12 = vcmp.eq.s32.totalorder %v3637_v16, %v4478_v40  ;;  %3057 = vmatprep.subr.msk.mxu0 %vm5898_vm14, %v3572_v17  ;;  %vm5905_vm14 = vcmp.eq.s32.totalorder %v3811_v23, %v4478_v40 }
  0x80   :  { %3091 = vmatprep.subr.msk.mxu1 %vm5876_vm15, %v3572_v17  ;;  %3058 = vmatpush1.msk.msra.mxu0 %vm5895_vm8, %v3572_v17  ;;  %vm5880_vm15 = vcmp.eq.s32.totalorder %v3676_v18, %v4463_v39  ;;  %vm5903_vm8 = vcmp.eq.s32.totalorder %v3757_v21, %v4421_v37 }
  0x81   :  { %3092 = vmatpush1.msk.msra.mxu1 %vm5875_vm13, %v3572_v17  ;;  %vm5879_vm13 = vcmp.eq.s32.totalorder %v3614_v10, %v4421_v37 }
  0x82   :  { %3093 = vmatprep.subr.msk.mxu1 %vm5877_vm9, %v3572_v17  ;;  %3059 = vmatprep.subr.msk.mxu0 %vm5879_vm13, %v3572_v17  ;;  %vm5881_vm9 = vcmp.eq.s32.totalorder %v3614_v10, %v4426_v38  ;;  %vm5883_vm13 = vcmp.eq.s32.totalorder %v3637_v16, %v4421_v37 }
  0x83   :  { %3094 = vmatpush1.msk.msra.mxu1 %vm5878_vm12, %v3572_v17  ;;  %vm5882_vm12 = vcmp.eq.s32.totalorder %v3676_v18, %v4478_v40  ;;  %3060 = vmatpush1.msk.msra.mxu0 %vm5881_vm9, %v3572_v17  ;;  %vm5885_vm9 = vcmp.eq.s32.totalorder %v3637_v16, %v4426_v38 }
  0x84   :  { %3095 = vmatprep.subr.msk.mxu1 %vm5880_vm15, %v3572_v17  ;;  %vm5884_vm15 = vcmp.eq.s32.totalorder %v3703_v19, %v4463_v39  ;;  %3061 = vmatprep.subr.msk.mxu0 %vm5883_vm13, %v3572_v17  ;;  %vm5887_vm13 = vcmp.eq.s32.totalorder %v3676_v18, %v4421_v37 }
  0x85   :  { %3096 = vmatpush1.msk.msra.mxu1 %vm5882_vm12, %v3572_v17  ;;  %vm5886_vm12 = vcmp.eq.s32.totalorder %v3703_v19, %v4478_v40  ;;  %3062 = vmatpush1.msk.msra.mxu0 %vm5885_vm9, %v3572_v17  ;;  %vm5889_vm9 = vcmp.eq.s32.totalorder %v3676_v18, %v4426_v38 }
  0x86   :  { %3097 = vmatprep.subr.msk.mxu1 %vm5884_vm15, %v3572_v17  ;;  %vm5888_vm15 = vcmp.eq.s32.totalorder %v3730_v20, %v4463_v39  ;;  %3063 = vmatprep.subr.msk.mxu0 %vm5887_vm13, %v3572_v17  ;;  %vm5891_vm13 = vcmp.eq.s32.totalorder %v3703_v19, %v4421_v37 }
  0x87   :  { %3098 = vmatpush1.msk.msra.mxu1 %vm5886_vm12, %v3572_v17  ;;  %vm5890_vm12 = vcmp.eq.s32.totalorder %v3730_v20, %v4478_v40  ;;  %3064 = vmatpush1.msk.msra.mxu0 %vm5889_vm9, %v3572_v17  ;;  %vm5893_vm9 = vcmp.eq.s32.totalorder %v3703_v19, %v4426_v38 }
  0x88   :  { %3099 = vmatprep.subr.msk.mxu1 %vm5888_vm15, %v3572_v17  ;;  %vm5892_vm15 = vcmp.eq.s32.totalorder %v3757_v21, %v4463_v39  ;;  %3065 = vmatprep.subr.msk.mxu0 %vm5891_vm13, %v3572_v17  ;;  %vm5897_vm13 = vcmp.eq.s32.totalorder %v3730_v20, %v4421_v37 }
  0x89   :  { %3100 = vmatpush1.msk.msra.mxu1 %vm5890_vm12, %v3572_v17  ;;  %vm5894_vm12 = vcmp.eq.s32.totalorder %v3757_v21, %v4478_v40  ;;  %3066 = vmatpush1.msk.msra.mxu0 %vm5893_vm9, %v3572_v17  ;;  %vm5900_vm9 = vcmp.eq.s32.totalorder %v3730_v20, %v4426_v38 }
  0x8a   :  { %3101 = vmatprep.subr.msk.mxu1 %vm5892_vm15, %v3572_v17  ;;  %vm5896_vm15 = vcmp.eq.s32.totalorder %v3784_v22, %v4463_v39  ;;  %3067 = vmatprep.subr.msk.mxu0 %vm5897_vm13, %v3572_v17  ;;  %vm5906_vm13 = vcmp.eq.s32.totalorder %v3757_v21, %v4426_v38 }
  0x8b   :  { %3102 = vmatpush1.msk.msra.mxu1 %vm5894_vm12, %v3572_v17  ;;  %vm5899_vm12 = vcmp.eq.s32.totalorder %v3784_v22, %v4478_v40  ;;  %3068 = vmatpush1.msk.msra.mxu0 %vm5900_vm9, %v3572_v17  ;;  %vm5908_vm9 = vcmp.eq.s32.totalorder %v3838_v24, %v4463_v39 }
  0x8c   :  { %3103 = vmatprep.subr.msk.mxu1 %vm5896_vm15, %v3572_v17  ;;  %vm5902_vm15 = vcmp.eq.s32.totalorder %v3811_v23, %v4463_v39  ;;  %3069 = vmatprep.subr.msk.mxu0 %vm5903_vm8, %v3572_v17  ;;  %vm5911_vm8 = vcmp.eq.s32.totalorder %v3811_v23, %v4421_v37 }
  0x8d   :  { %3104 = vmatpush1.msk.msra.mxu1 %vm5899_vm12, %v3572_v17  ;;  %vm5907_vm12 = vcmp.eq.s32.totalorder %v3784_v22, %v4421_v37  ;;  %3070 = vmatpush1.msk.msra.mxu0 %vm5906_vm13, %v3572_v17  ;;  %vm5914_vm13 = vcmp.eq.s32.totalorder %v3865_v25, %v4478_v40 }
  0x8e   :  { %3105 = vmatprep.subr.msk.mxu1 %vm5902_vm15, %v3572_v17  ;;  %vm5910_vm15 = vcmp.eq.s32.totalorder %v3838_v24, %v4478_v40  ;;  %3071 = vmatprep.subr.msk.mxu0 %vm5907_vm12, %v3572_v17  ;;  %vm5915_vm12 = vcmp.eq.s32.totalorder %v3838_v24, %v4421_v37 }
  0x8f   :  { %3106 = vmatpush1.msk.msra.mxu1 %vm5905_vm14, %v3572_v17  ;;  %vm5913_vm14 = vcmp.eq.s32.totalorder %v3811_v23, %v4426_v38  ;;  %3072 = vmatpush1.msk.msra.mxu0 %vm5909_vm6, %v3572_v17  ;;  %vm5917_vm6 = vcmp.eq.s32.totalorder %v3838_v24, %v4426_v38 }
  0x90   :  { %3107 = vmatprep.subr.msk.mxu1 %vm5908_vm9, %v3572_v17  ;;  %vm5916_vm9 = vcmp.eq.s32.totalorder %v3892_v26, %v4463_v39  ;;  %3073 = vmatprep.subr.msk.mxu0 %vm5911_vm8, %v3572_v17  ;;  %vm5919_vm8 = vcmp.eq.s32.totalorder %v3865_v25, %v4421_v37 }
  0x91   :  { %3108 = vmatpush1.msk.msra.mxu1 %vm5910_vm15, %v3572_v17  ;;  %vm5918_vm15 = vcmp.eq.s32.totalorder %v3892_v26, %v4478_v40  ;;  %3074 = vmatpush1.msk.msra.mxu0 %vm5913_vm14, %v3572_v17  ;;  %vm5921_vm14 = vcmp.eq.s32.totalorder %v3865_v25, %v4426_v38 }
  0x92   :  { %3109 = vmatprep.subr.msk.mxu1 %vm5912_vm10, %v3572_v17  ;;  %vm5920_vm10 = vcmp.eq.s32.totalorder %v3919_v27, %v4463_v39  ;;  %3075 = vmatprep.subr.msk.mxu0 %vm5915_vm12, %v3572_v17  ;;  %vm5923_vm12 = vcmp.eq.s32.totalorder %v3892_v26, %v4421_v37 }
  0x93   :  { %3110 = vmatpush1.msk.msra.mxu1 %vm5914_vm13, %v3572_v17  ;;  %vm5922_vm13 = vcmp.eq.s32.totalorder %v3919_v27, %v4478_v40  ;;  %3076 = vmatpush1.msk.msra.mxu0 %vm5917_vm6, %v3572_v17  ;;  %vm512_vm6 = vcmp.eq.s32.totalorder %v3892_v26, %v4426_v38 }
  0x94   :  { %3111 = vmatprep.subr.msk.mxu1 %vm5916_vm9, %v3572_v17  ;;  %vm5924_vm9 = vcmp.eq.s32.totalorder %v3946_v28, %v4463_v39  ;;  %3077 = vmatprep.subr.msk.mxu0 %vm5919_vm8, %v3572_v17  ;;  %vm507_vm8 = vcmp.eq.s32.totalorder %v3919_v27, %v4421_v37 }
  0x95   :  { %3112 = vmatpush1.msk.msra.mxu1 %vm5918_vm15, %v3572_v17  ;;  %vm5925_vm15 = vcmp.eq.s32.totalorder %v3946_v28, %v4478_v40  ;;  %3078 = vmatpush1.msk.msra.mxu0 %vm5921_vm14, %v3572_v17  ;;  %vm506_vm14 = vcmp.eq.s32.totalorder %v3919_v27, %v4426_v38 }
  0x96   :  { %3113 = vmatprep.subr.msk.mxu1 %vm5920_vm10, %v3572_v17  ;;  %vm5926_vm10 = vcmp.eq.s32.totalorder %v3599_v2, %v4463_v39  ;;  %3079 = vmatprep.subr.msk.mxu0 %vm5923_vm12, %v3572_v17  ;;  %vm501_vm12 = vcmp.eq.s32.totalorder %v3946_v28, %v4421_v37 }
  0x97   :  { %3114 = vmatpush1.msk.msra.mxu1 %vm5922_vm13, %v3572_v17  ;;  %vm496_vm13 = vcmp.eq.s32.totalorder %v3599_v2, %v4478_v40  ;;  %3080 = vmatpush1.msk.msra.mxu0 %vm512_vm6, %v3572_v17 }
  0x98   :  { %3115 = vmatprep.subr.msk.mxu1 %vm5924_vm9, %v3572_v17  ;;  %3081 = vmatprep.subr.msk.mxu0 %vm507_vm8, %v3572_v17  ;;  %vm500_vm9 = vcmp.eq.s32.totalorder %v3946_v28, %v4426_v38 }
  0x99   :  { %3116 = vmatpush1.msk.msra.mxu1 %vm5925_vm15, %v3572_v17  ;;  %3082 = vmatpush1.msk.msra.mxu0 %vm506_vm14, %v3572_v17  ;;  %vm495_vm15 = vcmp.eq.s32.totalorder %v3599_v2, %v4421_v37 }
  0x9a   :  { %3117 = vmatprep.subr.msk.mxu1 %vm5926_vm10, %v3572_v17  ;;  %3083 = vmatprep.subr.msk.mxu0 %vm501_vm12, %v3572_v17  ;;  %vm494_vm10 = vcmp.eq.s32.totalorder %v3599_v2, %v4426_v38 }
  0x9b   :  { %3118 = vmatpush1.msk.msra.mxu1 %vm496_vm13, %v3572_v17  ;;  %3084 = vmatpush1.msk.msra.mxu0 %vm500_vm9, %v3572_v17 }
  0x9c   :  { %1612 = vmatmul.mubr.f32.vlgmr.msra.gmra.mxu1 %v4498_v41  ;;  %3151 = vmatprep.subr.msk.mxu1 %vm174_vm1, %v3572_v17  ;;  %vm5927_vm1 = vcmp.eq.s32.totalorder %v3614_v10, %v3624_v12 }
  0x9d   :  { %3085 = vmatprep.subr.msk.mxu0 %vm495_vm15, %v3572_v17  ;;  %3152 = vmatpush1.msk.msra.mxu1 %vm173_vm3, %v3572_v17  ;;  %vm5930_vm3 = vcmp.eq.s32.totalorder %v3614_v10, %v3619_v11 }
  0x9e   :  { %3086 = vmatpush1.msk.msra.mxu0 %vm494_vm10, %v3572_v17  ;;  %3153 = vmatprep.subr.msk.mxu1 %vm168_vm5, %v3572_v17  ;;  %vm5932_vm5 = vcmp.eq.s32.totalorder %v3614_v10, %v3629_v13 }
  0x9f   :  { %1541 = vmatmul.mubr.f32.vlgmr.msra.gmra.mxu0 %v4498_v41  ;;  %3119 = vmatprep.subr.msk.mxu0 %vm172_vm0, %v3572_v17  ;;  %vm5928_vm0 = vcmp.eq.s32.totalorder %v3611_v9, %v3629_v13 }
  0xa0   :  { %3120 = vmatpush1.msk.msra.mxu0 %vm171_vm2, %v3572_v17  ;;  %3154 = vmatpush1.msk.msra.mxu1 %vm167_vm7, %v3572_v17  ;;  %vm5929_vm2 = vcmp.eq.s32.totalorder %v3614_v10, %v3634_v14  ;;  %vm5933_vm7 = vcmp.eq.s32.totalorder %v3637_v16, %v3634_v14 }
  0xa1   :  { %3121 = vmatprep.subr.msk.mxu0 %vm166_vm4, %v3572_v17  ;;  %3155 = vmatprep.subr.msk.mxu1 %vm5927_vm1, %v3572_v17  ;;  %vm5931_vm4 = vcmp.eq.s32.totalorder %v3637_v16, %v3624_v12  ;;  %vm5934_vm1 = vcmp.eq.s32.totalorder %v3637_v16, %v3619_v11 }
  0xa2   :  { %3122 = vmatpush1.msk.msra.mxu0 %vm5928_vm0, %v3572_v17  ;;  %3156 = vmatpush1.msk.msra.mxu1 %vm5929_vm2, %v3572_v17  ;;  %vm5935_vm0 = vcmp.eq.s32.totalorder %v3676_v18, %v3624_v12  ;;  %vm5936_vm2 = vcmp.eq.s32.totalorder %v3637_v16, %v3629_v13 }
  0xa3   :  { %3123 = vmatprep.subr.msk.mxu0 %vm5930_vm3, %v3572_v17  ;;  %3157 = vmatprep.subr.msk.mxu1 %vm5931_vm4, %v3572_v17  ;;  %vm5937_vm3 = vcmp.eq.s32.totalorder %v3676_v18, %v3634_v14  ;;  %vm5938_vm4 = vcmp.eq.s32.totalorder %v3676_v18, %v3619_v11 }
  0xa4   :  { %3124 = vmatpush1.msk.msra.mxu0 %vm5932_vm5, %v3572_v17  ;;  %3158 = vmatpush1.msk.msra.mxu1 %vm5933_vm7, %v3572_v17  ;;  %vm5939_vm5 = vcmp.eq.s32.totalorder %v3703_v19, %v3624_v12  ;;  %vm5940_vm7 = vcmp.eq.s32.totalorder %v3676_v18, %v3629_v13 }
  0xa5   :  { %3125 = vmatprep.subr.msk.mxu0 %vm5934_vm1, %v3572_v17  ;;  %3159 = vmatprep.subr.msk.mxu1 %vm5935_vm0, %v3572_v17  ;;  %vm5941_vm1 = vcmp.eq.s32.totalorder %v3703_v19, %v3634_v14  ;;  %vm5942_vm0 = vcmp.eq.s32.totalorder %v3703_v19, %v3619_v11 }
  0xa6   :  { %3126 = vmatpush1.msk.msra.mxu0 %vm5936_vm2, %v3572_v17  ;;  %3160 = vmatpush1.msk.msra.mxu1 %vm5937_vm3, %v3572_v17  ;;  %vm5943_vm2 = vcmp.eq.s32.totalorder %v3730_v20, %v3624_v12  ;;  %vm5944_vm3 = vcmp.eq.s32.totalorder %v3703_v19, %v3629_v13 }
  0xa7   :  { %3127 = vmatprep.subr.msk.mxu0 %vm5938_vm4, %v3572_v17  ;;  %3161 = vmatprep.subr.msk.mxu1 %vm5939_vm5, %v3572_v17  ;;  %vm5945_vm4 = vcmp.eq.s32.totalorder %v3730_v20, %v3634_v14  ;;  %vm5946_vm5 = vcmp.eq.s32.totalorder %v3730_v20, %v3619_v11 }
  0xa8   :  { %3128 = vmatpush1.msk.msra.mxu0 %vm5940_vm7, %v3572_v17  ;;  %3162 = vmatpush1.msk.msra.mxu1 %vm5941_vm1, %v3572_v17  ;;  %vm5947_vm7 = vcmp.eq.s32.totalorder %v3757_v21, %v3624_v12  ;;  %vm5948_vm1 = vcmp.eq.s32.totalorder %v3730_v20, %v3629_v13 }
  0xa9   :  { %3129 = vmatprep.subr.msk.mxu0 %vm5942_vm0, %v3572_v17  ;;  %3163 = vmatprep.subr.msk.mxu1 %vm5943_vm2, %v3572_v17  ;;  %vm5949_vm0 = vcmp.eq.s32.totalorder %v3757_v21, %v3634_v14  ;;  %vm5950_vm2 = vcmp.eq.s32.totalorder %v3757_v21, %v3619_v11 }
  0xaa   :  { %3130 = vmatpush1.msk.msra.mxu0 %vm5944_vm3, %v3572_v17  ;;  %3164 = vmatpush1.msk.msra.mxu1 %vm5945_vm4, %v3572_v17  ;;  %vm5951_vm3 = vcmp.eq.s32.totalorder %v3784_v22, %v3624_v12  ;;  %vm5952_vm4 = vcmp.eq.s32.totalorder %v3757_v21, %v3629_v13 }
  0xab   :  { %3131 = vmatprep.subr.msk.mxu0 %vm5946_vm5, %v3572_v17  ;;  %3165 = vmatprep.subr.msk.mxu1 %vm5947_vm7, %v3572_v17  ;;  %vm5953_vm5 = vcmp.eq.s32.totalorder %v3784_v22, %v3634_v14  ;;  %vm5954_vm7 = vcmp.eq.s32.totalorder %v3784_v22, %v3619_v11 }
  0xac   :  { %3132 = vmatpush1.msk.msra.mxu0 %vm5948_vm1, %v3572_v17  ;;  %3166 = vmatpush1.msk.msra.mxu1 %vm5949_vm0, %v3572_v17  ;;  %vm5955_vm1 = vcmp.eq.s32.totalorder %v3811_v23, %v3624_v12  ;;  %vm5956_vm0 = vcmp.eq.s32.totalorder %v3784_v22, %v3629_v13 }
  0xad   :  { %3133 = vmatprep.subr.msk.mxu0 %vm5950_vm2, %v3572_v17  ;;  %3167 = vmatprep.subr.msk.mxu1 %vm5951_vm3, %v3572_v17  ;;  %vm5957_vm2 = vcmp.eq.s32.totalorder %v3811_v23, %v3634_v14  ;;  %vm5958_vm3 = vcmp.eq.s32.totalorder %v3811_v23, %v3619_v11 }
  0xae   :  { %3134 = vmatpush1.msk.msra.mxu0 %vm5952_vm4, %v3572_v17  ;;  %3168 = vmatpush1.msk.msra.mxu1 %vm5953_vm5, %v3572_v17  ;;  %vm5959_vm4 = vcmp.eq.s32.totalorder %v3838_v24, %v3624_v12  ;;  %vm5960_vm5 = vcmp.eq.s32.totalorder %v3811_v23, %v3629_v13 }
  0xaf   :  { %3135 = vmatprep.subr.msk.mxu0 %vm5954_vm7, %v3572_v17  ;;  %3169 = vmatprep.subr.msk.mxu1 %vm5955_vm1, %v3572_v17  ;;  %vm5961_vm7 = vcmp.eq.s32.totalorder %v3838_v24, %v3634_v14  ;;  %vm5962_vm1 = vcmp.eq.s32.totalorder %v3838_v24, %v3619_v11 }
  0xb0   :  { %3136 = vmatpush1.msk.msra.mxu0 %vm5956_vm0, %v3572_v17  ;;  %3170 = vmatpush1.msk.msra.mxu1 %vm5957_vm2, %v3572_v17  ;;  %vm5963_vm0 = vcmp.eq.s32.totalorder %v3865_v25, %v3624_v12  ;;  %vm5964_vm2 = vcmp.eq.s32.totalorder %v3838_v24, %v3629_v13 }
  0xb1   :  { %3137 = vmatprep.subr.msk.mxu0 %vm5958_vm3, %v3572_v17  ;;  %3171 = vmatprep.subr.msk.mxu1 %vm5959_vm4, %v3572_v17  ;;  %vm5965_vm3 = vcmp.eq.s32.totalorder %v3865_v25, %v3634_v14  ;;  %vm5966_vm4 = vcmp.eq.s32.totalorder %v3865_v25, %v3619_v11 }
  0xb2   :  { %3138 = vmatpush1.msk.msra.mxu0 %vm5960_vm5, %v3572_v17  ;;  %3172 = vmatpush1.msk.msra.mxu1 %vm5961_vm7, %v3572_v17  ;;  %vm5967_vm5 = vcmp.eq.s32.totalorder %v3892_v26, %v3624_v12  ;;  %vm5968_vm7 = vcmp.eq.s32.totalorder %v3865_v25, %v3629_v13 }
  0xb3   :  { %3139 = vmatprep.subr.msk.mxu0 %vm5962_vm1, %v3572_v17  ;;  %3173 = vmatprep.subr.msk.mxu1 %vm5963_vm0, %v3572_v17  ;;  %vm5969_vm1 = vcmp.eq.s32.totalorder %v3892_v26, %v3634_v14  ;;  %vm5970_vm0 = vcmp.eq.s32.totalorder %v3892_v26, %v3619_v11 }
  0xb4   :  { %3140 = vmatpush1.msk.msra.mxu0 %vm5964_vm2, %v3572_v17  ;;  %3174 = vmatpush1.msk.msra.mxu1 %vm5965_vm3, %v3572_v17  ;;  %vm5971_vm2 = vcmp.eq.s32.totalorder %v3919_v27, %v3624_v12  ;;  %vm5972_vm3 = vcmp.eq.s32.totalorder %v3892_v26, %v3629_v13 }
  0xb5   :  { %3141 = vmatprep.subr.msk.mxu0 %vm5966_vm4, %v3572_v17  ;;  %3175 = vmatprep.subr.msk.mxu1 %vm5967_vm5, %v3572_v17  ;;  %vm5973_vm4 = vcmp.eq.s32.totalorder %v3919_v27, %v3634_v14  ;;  %vm5974_vm5 = vcmp.eq.s32.totalorder %v3919_v27, %v3619_v11 }
  0xb6   :  { %3142 = vmatpush1.msk.msra.mxu0 %vm5968_vm7, %v3572_v17  ;;  %3176 = vmatpush1.msk.msra.mxu1 %vm5969_vm1, %v3572_v17  ;;  %vm5975_vm7 = vcmp.eq.s32.totalorder %v3946_v28, %v3624_v12  ;;  %vm5976_vm1 = vcmp.eq.s32.totalorder %v3919_v27, %v3629_v13 }
  0xb7   :  { %3143 = vmatprep.subr.msk.mxu0 %vm5970_vm0, %v3572_v17  ;;  %3177 = vmatprep.subr.msk.mxu1 %vm5971_vm2, %v3572_v17  ;;  %vm5977_vm0 = vcmp.eq.s32.totalorder %v3946_v28, %v3634_v14  ;;  %vm5978_vm2 = vcmp.eq.s32.totalorder %v3946_v28, %v3619_v11 }
  0xb8   :  { %3144 = vmatpush1.msk.msra.mxu0 %vm5972_vm3, %v3572_v17  ;;  %3178 = vmatpush1.msk.msra.mxu1 %vm5973_vm4, %v3572_v17  ;;  %vm5979_vm3 = vcmp.eq.s32.totalorder %v3599_v2, %v3624_v12  ;;  %vm5980_vm4 = vcmp.eq.s32.totalorder %v3946_v28, %v3629_v13 }
  0xb9   :  { %3145 = vmatprep.subr.msk.mxu0 %vm5974_vm5, %v3572_v17  ;;  %3179 = vmatprep.subr.msk.mxu1 %vm5975_vm7, %v3572_v17  ;;  %vm5981_vm5 = vcmp.eq.s32.totalorder %v3599_v2, %v3634_v14  ;;  %vm5982_vm7 = vcmp.eq.s32.totalorder %v3599_v2, %v3619_v11 }
  0xba   :  { %3146 = vmatpush1.msk.msra.mxu0 %vm5976_vm1, %v3572_v17  ;;  %3180 = vmatpush1.msk.msra.mxu1 %vm5977_vm0, %v3572_v17  ;;  %vm5983_vm1 = vcmp.eq.s32.totalorder %v3599_v2, %v3629_v13  ;;  %vm5984_vm0 = vcmp.eq.s32.totalorder %v3606_v7, %v4015_v32 }
  0xbb   :  { %3147 = vmatprep.subr.msk.mxu0 %vm5978_vm2, %v3572_v17  ;;  %3181 = vmatprep.subr.msk.mxu1 %vm5979_vm3, %v3572_v17  ;;  %vm5985_vm2 = vcmp.eq.s32.totalorder %v3606_v7, %v4049_v34  ;;  %vm1232_vm3 = vcmask 1041408  }
  0xbc   :  { %3148 = vmatpush1.msk.msra.mxu0 %vm5980_vm4, %v3572_v17  ;;  %3182 = vmatpush1.msk.msra.mxu1 %vm5981_vm5, %v3572_v17  ;;  %vm5986_vm4 = vcmp.eq.s32.totalorder %v3606_v7, %v4032_v33  ;;  %vm5987_vm5 = vcmp.eq.s32.totalorder %v3606_v7, %v4064_v36 }
  0xbd   :  { %3149 = vmatprep.subr.msk.mxu0 %vm5982_vm7, %v3572_v17  ;;  %1958 = vmatprep.mubr.f32.mxu0 %v3571_v1  ;;  %vm5988_vm7 = vcmp.eq.s32.totalorder %v3611_v9, %v4015_v32 }
  0xbe   :  { %3150 = vmatpush1.msk.msra.mxu0 %vm5983_vm1, %v3572_v17  ;;  %2029 = vmatprep.mubr.f32.mxu1 %v3571_v1  ;;  %vm5989_vm1 = vcmp.eq.s32.totalorder %v3611_v9, %v4032_v33 }
  0xbf   :  { %3183 = vmatprep.subr.msk.mxu0 %vm5984_vm0, %v3572_v17  ;;  %3215 = vmatprep.subr.msk.mxu1 %vm5985_vm2, %v3572_v17  ;;  %vm5990_vm0 = vcmp.eq.s32.totalorder %v3611_v9, %v4064_v36  ;;  %vm5991_vm2 = vcmp.eq.s32.totalorder %v3614_v10, %v4015_v32 }
 0x103   :  { %v1043_v42 = vpop.f32.mrf.mxu0  ;;  %v1114_v43 = vpop.f32.mrf.mxu1 }
 0x104   :  { %v1190_v44 = vmul.f32 -1000.0, %v1043_v42  ;;  %v1192_v45 = vmul.f32 -1000.0, %v1114_v43 }
 0x105   :  { %v1045_v46 = vpop.f32.mrf.mxu0  ;;  %v1116_v47 = vpop.f32.mrf.mxu1 }
 0x106   :  { %v1191_v48 = vmul.f32 -1000.0, %v1045_v46  ;;  %v1193_v49 = vmul.f32 -1000.0, %v1116_v47 }
 0x108   :  { %v1196_v50 = vmax.f32 %v1190_v44, %v1191_v48  ;;  %v1208_v51 = vmax.f32 %v1192_v45, %v1193_v49 }
 0x10a   :  { %v1197_v52 = vsub.f32 %v1190_v44, %v1196_v50  ;;  %v1200_v53 = vsub.f32 %v1191_v48, %v1196_v50  ;;  %v1209_v54 = vsub.f32 %v1192_v45, %v1208_v51  ;;  %v1212_v55 = vsub.f32 %v1193_v49, %v1208_v51 }
 0x10c   :  { %v1198_v56 = vmul.f32 1.442695, %v1197_v52  ;;  %v1201_v57 = vmul.f32 1.442695, %v1200_v53  ;;  %v1210_v58 = vmul.f32 1.442695, %v1209_v54 }
 0x10d   :  { %v1213_v59 = vmul.f32 1.442695, %v1212_v55 }
 0x10e   :  { %3360 = vpow2.f32 %v1198_v56 }
 0x10f   :  { %3362 = vpow2.f32 %v1201_v57 }
 0x110   :  { %3364 = vpow2.f32 %v1210_v58 }
 0x111   :  { %3366 = vpow2.f32 %v1213_v59 }
 0x11b   :  { %v3361_v60 = vpop.eup %3360 }
 0x11c   :  { %v3363_v61 = vpop.eup %3362 }
 0x11d   :  { %v3365_v62 = vpop.eup %3364  ;;  %v1203_v63 = vadd.f32 %v3363_v61, %v3361_v60 }
 0x11e   :  { %v3367_v0 = vpop.eup %3366 }
 0x11f   :  { %3368 = vlog2.f32 %v1203_v63  ;;  %v1215_v3 = vadd.f32 %v3367_v0, %v3365_v62 }
 0x121   :  { %3370 = vlog2.f32 %v1215_v3 }
 0x124   :  { %v1185_v4 = vpop.f32.mrf.mxu0 }
 0x125   :  { %v1194_v6 = vmul.f32 -1000.0, %v1185_v4 }
 0x126   :  { %v1187_v5 = vpop.f32.mrf.mxu0 }
 0x127   :  { %v1195_v8 = vmul.f32 -1000.0, %v1187_v5 }
 0x129   :  { %v1220_v11 = vmax.f32 %v1194_v6, %v1195_v8 }
 0x12b   :  { %v1221_v12 = vsub.f32 %v1194_v6, %v1220_v11  ;;  %v1224_v13 = vsub.f32 %v1195_v8, %v1220_v11 }
 0x12c   :  { %v3369_v14 = vpop.eup %3368 }
 0x12d   :  { %v1222_v15 = vmul.f32 1.442695, %v1221_v12  ;;  %v1225_v29 = vmul.f32 1.442695, %v1224_v13  ;;  %v1205_v30 = vmul.f32 0.6931472, %v3369_v14 }
 0x12e   :  { %v3371_v31 = vpop.eup %3370 }
 0x12f   :  { %3372 = vpow2.f32 %v1222_v15  ;;  %v1206_v35 = vadd.f32 %v1205_v30, %v1196_v50  ;;  %v1217_v42 = vmul.f32 0.6931472, %v3371_v31 }
 0x130   :  { %3374 = vpow2.f32 %v1225_v29 }
 0x131   :  { %v5148_v43 = vmul.f32 -0.001, %v1206_v35  ;;  %v1218_v44 = vadd.f32 %v1217_v42, %v1208_v51 }
 0x133   :  { %v1233_v45 = vsel %vm1232_vm3, %v5148_v43, inf  ;;  %v5152_v46 = vmul.f32 -0.001, %v1218_v44 }
 0x134   :  { %1234 = vmin.xlane.f32.xlu0 %v1233_v45 }
 0x135   :  { %v1244_v47 = vsel %vm1232_vm3, %v5152_v46, inf }
 0x138   :  { %1245 = vmin.xlane.f32.xlu0 %v1244_v47 }
 0x13c   :  { %v3373_v48 = vpop.eup %3372  ;;  %v1471_v56 = vpop.f32.mrf.mxu1 }
 0x13d   :  { %v3375_v49 = vpop.eup %3374  ;;  %v1618_v57 = vmul.f32 -1000.0, %v1471_v56 }
 0x13e   :  { %v1227_v52 = vadd.f32 %v3375_v49, %v3373_v48  ;;  %v1473_v58 = vpop.f32.mrf.mxu1 }
 0x13f   :  { %v1619_v59 = vmul.f32 -1000.0, %v1473_v58 }
 0x140   :  { %3376 = vlog2.f32 %v1227_v52 }
 0x141   :  { %v1624_v60 = vmax.f32 %v1618_v57, %v1619_v59 }
 0x143   :  { %v1625_v61 = vsub.f32 %v1618_v57, %v1624_v60  ;;  %v1628_v62 = vsub.f32 %v1619_v59, %v1624_v60 }
 0x145   :  { %v1626_v63 = vmul.f32 1.442695, %v1625_v61  ;;  %v1629_v0 = vmul.f32 1.442695, %v1628_v62 }
 0x147   :  { %3378 = vpow2.f32 %v1626_v63 }
 0x148   :  { %3380 = vpow2.f32 %v1629_v0 }
 0x14d   :  { %v3377_v50 = vpop.eup %3376 }
 0x14e   :  { %v1229_v53 = vmul.f32 0.6931472, %v3377_v50 }
 0x150   :  { %v1230_v54 = vadd.f32 %v1229_v53, %v1220_v11 }
 0x152   :  { %v5156_v55 = vmul.f32 -0.001, %v1230_v54 }
 0x154   :  { %v1256_v51 = vsel %vm1232_vm3, %v5156_v55, inf  ;;  %v3379_v3 = vpop.eup %3378 }
 0x155   :  { %1257 = vmin.xlane.f32.xlu1 %v1256_v51  ;;  %v3381_v4 = vpop.eup %3380 }
 0x156   :  { %v1631_v5 = vadd.f32 %v3381_v4, %v3379_v3 }
 0x158   :  { %3382 = vlog2.f32 %v1631_v5 }
 0x15c   :  { %v1613_v6 = vpop.f32.mrf.mxu1 }
 0x15d   :  { %v1622_v8 = vmul.f32 -1000.0, %v1613_v6 }
 0x15e   :  { %v1615_v11 = vpop.f32.mrf.mxu1 }
 0x15f   :  { %v1623_v12 = vmul.f32 -1000.0, %v1615_v11 }
 0x161   :  { %v1648_v13 = vmax.f32 %v1622_v8, %v1623_v12 }
 0x163   :  { %v1649_v14 = vsub.f32 %v1622_v8, %v1648_v13  ;;  %v1652_v15 = vsub.f32 %v1623_v12, %v1648_v13 }
 0x165   :  { %v1650_v29 = vmul.f32 1.442695, %v1649_v14  ;;  %v1653_v30 = vmul.f32 1.442695, %v1652_v15  ;;  %v3383_v31 = vpop.eup %3382 }
 0x166   :  { %v1633_v35 = vmul.f32 0.6931472, %v3383_v31  ;;  %v1542_v31 = vpop.f32.mrf.mxu0 }
 0x167   :  { %3384 = vpow2.f32 %v1650_v29 }
 0x168   :  { %3386 = vpow2.f32 %v1653_v30  ;;  %v1634_v42 = vadd.f32 %v1633_v35, %v1624_v60  ;;  %v1544_v35 = vpop.f32.mrf.mxu0 }
 0x16a   :  { %v5160_v44 = vmul.f32 -0.001, %v1634_v42  ;;  %v1620_v42 = vmul.f32 -1000.0, %v1542_v31 }
 0x16c   :  { %v1660_v45 = vsel %vm1232_vm3, %v5160_v44, inf }
 0x16d   :  { %1661 = vmin.xlane.f32.xlu0 %v1660_v45  ;;  %v1621_v45 = vmul.f32 -1000.0, %v1544_v35 }
 0x174   :  { %v3385_v47 = vpop.eup %3384 }
 0x175   :  { %v3387_v48 = vpop.eup %3386 }
 0x176   :  { %v1655_v49 = vadd.f32 %v3387_v48, %v3385_v47 }
 0x178   :  { %3388 = vlog2.f32 %v1655_v49 }
 0x185   :  { %v3389_v52 = vpop.eup %3388 }
 0x186   :  { %v1657_v50 = vmul.f32 0.6931472, %v3389_v52  ;;  %v1636_v52 = vmax.f32 %v1620_v42, %v1621_v45 }
 0x188   :  { %v1658_v53 = vadd.f32 %v1657_v50, %v1648_v13 }
 0x18a   :  { %v5164_v54 = vmul.f32 -0.001, %v1658_v53 }
 0x18c   :  { %v1683_v51 = vsel %vm1232_vm3, %v5164_v54, inf }
 0x18d   :  { %1684 = vmin.xlane.f32.xlu0 %v1683_v51  ;;  %v1637_v51 = vsub.f32 %v1620_v42, %v1636_v52 }
 0x1bd   :  { %v1235_v56 = vpop.xlane.xlu0 %1234 }
 0x1be   :  { %v1236_v57 = vrot.slane %v1235_v56, 4 }
 0x1c0   :  { %v1237_v58 = vmin.f32 %v1235_v56, %v1236_v57  ;;  %v1640_v57 = vsub.f32 %v1621_v45, %v1636_v52 }
 0x1c1   :  { %v1246_v59 = vpop.xlane.xlu0 %1245 }
 0x1c2   :  { %v1238_v60 = vrot.slane %v1237_v58, 2  ;;  %v1247_v61 = vrot.slane %v1246_v59, 4 }
 0x1c4   :  { %v1248_v62 = vmin.f32 %v1246_v59, %v1247_v61  ;;  %v1239_v63 = vmin.f32 %v1237_v58, %v1238_v60  ;;  %v1638_v61 = vmul.f32 1.442695, %v1637_v51 }
 0x1c6   :  { %v1249_v0 = vrot.slane %v1248_v62, 2  ;;  %v1240_v3 = vrot.slane %v1239_v63, 1  ;;  %3390 = vpow2.f32 %v1638_v61 }
 0x1c8   :  { %v1241_v4 = vmin.f32 %v1239_v63, %v1240_v3  ;;  %v1250_v5 = vmin.f32 %v1248_v62, %v1249_v0  ;;  %v1641_v0 = vmul.f32 1.442695, %v1640_v57 }
 0x1ca   :  { %3311 = vpush %v1241_v4  ;;  %v1251_v6 = vrot.slane %v1250_v5, 1  ;;  %3392 = vpow2.f32 %v1641_v0 }
 0x1cc   :  { %v1252_v8 = vmin.f32 %v1250_v5, %v1251_v6 }
 0x1ce   :  { %3313 = vpush %v1252_v8 }
 0x1de   :  { %v1258_v11 = vpop.xlane.xlu1 %1257 }
 0x1df   :  { %v1259_v12 = vrot.slane %v1258_v11, 4 }
 0x1e1   :  { %v1260_v13 = vmin.f32 %v1258_v11, %v1259_v12 }
 0x1e3   :  { %v1261_v14 = vrot.slane %v1260_v13, 2 }
 0x1e5   :  { %v1262_v15 = vmin.f32 %v1260_v13, %v1261_v14 }
 0x1e7   :  { %v1263_v29 = vrot.slane %v1262_v15, 1 }
 0x1e9   :  { %v1264_v30 = vmin.f32 %v1262_v15, %v1263_v29 }
 0x1eb   :  { %3315 = vpush %v1264_v30 }
 0x1fb   :  { %s3312_s0 = spop %3311 }
 0x1fc   :  { %v1243_v48 = vstv %s3312_s0 }
 0x1ff   :  { %s3314_s1 = spop %3313 }
 0x200   :  { %v1254_v47 = vstv %s3314_s1 }
 0x201   :  { %v1255_v49 = vmin.f32 %v1243_v48, %v1254_v47 }
 0x21c   :  { %s3316_s21 = spop %3315 }
 0x21d   :  { %v1266_v50 = vstv %s3316_s21 }
 0x21e   :  { %v1267_v53 = vmin.f32 %v1255_v49, %v1266_v50 }
 0x220   :  { %v1268_v56 = vmin.f32 %v1267_v53, 0.0 }
 0x222   :  { %v1269_v58 = vsub.f32 %v5148_v43, %v1268_v56  ;;  %v1270_v59 = vsub.f32 %v5152_v46, %v1268_v56  ;;  %v1271_v60 = vsub.f32 %v5156_v55, %v1268_v56  ;;  %v3391_v43 = vpop.eup %3390 }
 0x223   :  { %v3393_v46 = vpop.eup %3392 }
 0x224   :  { %v1272_v62 = vmul.f32 1000.0, %v1269_v58  ;;  %v1273_v63 = vmul.f32 1000.0, %v1270_v59  ;;  %v1274_v3 = vmul.f32 1000.0, %v1271_v60  ;;  %v1643_v55 = vadd.f32 %v3393_v46, %v3391_v43  ;;  %v1662_v58 = vpop.xlane.xlu0 %1661 }
 0x225   :  { %v1663_v59 = vrot.slane %v1662_v58, 4 }
 0x226   :  { %v1275_v4 = vmax.f32 %v1272_v62, %v1273_v63 }
 0x227   :  { %v1664_v61 = vmin.f32 %v1662_v58, %v1663_v59 }
 0x228   :  { %v1276_v5 = vmax.f32 %v1275_v4, %v1274_v3  ;;  %v1685_v60 = vpop.xlane.xlu0 %1684 }
 0x22a   :  { %v1277_v6 = vsub.f32 %v1272_v62, %v1276_v5  ;;  %v1280_v8 = vsub.f32 %v1273_v63, %v1276_v5  ;;  %v1284_v11 = vsub.f32 %v1274_v3, %v1276_v5  ;;  %v1686_v62 = vrot.slane %v1685_v60, 4 }
 0x22b   :  { %v1665_v63 = vrot.slane %v1664_v61, 2 }
 0x22c   :  { %v1278_v12 = vmul.f32 1.442695, %v1277_v6  ;;  %v1281_v13 = vmul.f32 1.442695, %v1280_v8  ;;  %v1285_v14 = vmul.f32 1.442695, %v1284_v11  ;;  %v1687_v0 = vmin.f32 %v1685_v60, %v1686_v62 }
 0x22d   :  { %v1666_v8 = vmin.f32 %v1664_v61, %v1665_v63 }
 0x22e   :  { %3394 = vpow2.f32 %v1278_v12 }
 0x22f   :  { %3396 = vpow2.f32 %v1281_v13  ;;  %v1667_v43 = vrot.slane %v1666_v8, 1 }
 0x230   :  { %3398 = vpow2.f32 %v1285_v14 }
 0x231   :  { %3400 = vlog2.f32 %v1643_v55 }
 0x23b   :  { %v3395_v15 = vpop.eup %3394 }
 0x23c   :  { %v3397_v29 = vpop.eup %3396 }
 0x23d   :  { %v1283_v30 = vadd.f32 %v3397_v29, %v3395_v15  ;;  %v3399_v31 = vpop.eup %3398 }
 0x23e   :  { %v3401_v42 = vpop.eup %3400 }
 0x23f   :  { %v1287_v35 = vadd.f32 %v3399_v31, %v1283_v30  ;;  %v1645_v45 = vmul.f32 0.6931472, %v3401_v42  ;;  %v1668_v31 = vmin.f32 %v1666_v8, %v1667_v43 }
 0x241   :  { %3402 = vlog2.f32 %v1287_v35  ;;  %v1646_v50 = vadd.f32 %v1645_v45, %v1636_v52 }
 0x243   :  { %v1647_v56 = vmul.f32 -0.001, %v1646_v50 }
 0x245   :  { %v1671_v57 = vsel %vm1232_vm3, %v1647_v56, inf }
 0x24e   :  { %v3403_v47 = vpop.eup %3402 }
 0x24f   :  { %v1289_v48 = vmul.f32 0.6931472, %v3403_v47 }
 0x251   :  { %v1290_v49 = vadd.f32 %v1289_v48, %v1276_v5  ;;  %v1688_v5 = vrot.slane %v1687_v0, 2 }
 0x253   :  { %v5171_v53 = vmul.f32 0.001, %v1290_v49  ;;  %v1689_v46 = vmin.f32 %v1687_v0, %v1688_v5 }
 0x255   :  { %v1292_v51 = vsel %vm1232_vm3, %v5171_v53, -inf  ;;  %v1690_v35 = vrot.slane %v1689_v46, 1 }
 0x256   :  { %1293 = vmax.xlane.f32.xlu1 %v1292_v51 }
 0x257   :  { %v1691_v47 = vmin.f32 %v1689_v46, %v1690_v35 }
 0x25a   :  { %1672 = vmin.xlane.f32.xlu1 %v1671_v57 }
 0x2df   :  { %v1294_v3 = vpop.xlane.xlu1 %1293 }
 0x2e0   :  { %v1295_v4 = vrot.slane %v1294_v3, 4 }
 0x2e2   :  { %v1296_v52 = vmax.f32 %v1294_v3, %v1295_v4 }
 0x2e3   :  { %v1673_v6 = vpop.xlane.xlu1 %1672 }
 0x2e4   :  { %v1297_v11 = vrot.slane %v1296_v52, 2  ;;  %v1674_v12 = vrot.slane %v1673_v6, 4 }
 0x2e6   :  { %v1675_v13 = vmin.f32 %v1673_v6, %v1674_v12  ;;  %v1298_v14 = vmax.f32 %v1296_v52, %v1297_v11 }
 0x2e8   :  { %v1676_v55 = vrot.slane %v1675_v13, 2  ;;  %v1299_v15 = vrot.slane %v1298_v14, 1 }
 0x2ea   :  { %v1300_v29 = vmax.f32 %v1298_v14, %v1299_v15  ;;  %v1677_v30 = vmin.f32 %v1675_v13, %v1676_v55 }
 0x2ec   :  { %3317 = vpush %v1300_v29  ;;  %v1678_v42 = vrot.slane %v1677_v30, 1 }
 0x2ed   :  { %3319 = vpush %v1668_v31 }
 0x2ee   :  { %v1679_v45 = vmin.f32 %v1677_v30, %v1678_v42 }
 0x2f0   :  { %3321 = vpush %v1679_v45 }
 0x2f1   :  { %3323 = vpush %v1691_v47 }
 0x31d   :  { %s3318_s22 = spop %3317 }
 0x31e   :  { %v1302_v48 = vstv %s3318_s22  ;;  %s3320_s23 = spop %3319 }
 0x31f   :  { %v1303_v49 = vmax.f32 %v1302_v48, 1.0  ;;  %v1670_v50 = vstv %s3320_s23 }
 0x321   :  { %3404 = vrcp.f32 %v1303_v49  ;;  %s3322_s24 = spop %3321 }
 0x322   :  { %v1681_v51 = vstv %s3322_s24  ;;  %s3324_s25 = spop %3323 }
 0x323   :  { %v1682_v57 = vmin.f32 %v1670_v50, %v1681_v51  ;;  %v1693_v58 = vstv %s3324_s25 }
 0x325   :  { %v1694_v59 = vmin.f32 %v1682_v57, %v1693_v58 }
 0x327   :  { %v1695_v60 = vmin.f32 %v1694_v59, 0.0 }
 0x329   :  { %v1696_v61 = vsub.f32 %v5160_v44, %v1695_v60  ;;  %v1697_v62 = vsub.f32 %v1647_v56, %v1695_v60  ;;  %v1698_v63 = vsub.f32 %v5164_v54, %v1695_v60  ;;  %v3500_v56 = vld [vmem:[#allocation3] sm:$0x3] }
 0x32a   :  { %v1736_v54 = vmul.f32 1000.0, %v3500_v56 }
 0x32b   :  { %v1699_v0 = vmul.f32 1000.0, %v1696_v61  ;;  %v1700_v3 = vmul.f32 1000.0, %v1697_v62  ;;  %v1701_v4 = vmul.f32 1000.0, %v1698_v63 }
 0x32d   :  { %v1702_v52 = vmax.f32 %v1699_v0, %v1700_v3 }
 0x32e   :  { %v3405_v5 = vpop.eup %3404 }
 0x32f   :  { %v1305_v6 = vmul.f32 %v3405_v5, %v1303_v49  ;;  %v1703_v8 = vmax.f32 %v1702_v52, %v1701_v4 }
 0x331   :  { %v1306_v11 = vsub.f32 2.0, %v1305_v6  ;;  %v1704_v12 = vsub.f32 %v1699_v0, %v1703_v8  ;;  %v1707_v13 = vsub.f32 %v1700_v3, %v1703_v8  ;;  %v1711_v14 = vsub.f32 %v1701_v4, %v1703_v8 }
 0x333   :  { %v1307_v43 = vmul.f32 %v3405_v5, %v1306_v11  ;;  %v1705_v46 = vmul.f32 1.442695, %v1704_v12  ;;  %v1708_v55 = vmul.f32 1.442695, %v1707_v13  ;;  %v1712_v15 = vmul.f32 1.442695, %v1711_v14 }
 0x335   :  { %v1308_v44 = vmul.f32 %v1307_v43, %v5171_v53  ;;  %3406 = vpow2.f32 %v1705_v46 }
 0x336   :  { %3408 = vpow2.f32 %v1708_v55 }
 0x337   :  { %v1737_v29 = vmul.f32 1000.0, %v1308_v44  ;;  %3410 = vpow2.f32 %v1712_v15 }
 0x339   :  { %v1738_v30 = vmax.f32 %v1736_v54, %v1737_v29 }
 0x33b   :  { %v1739_v31 = vsub.f32 %v1736_v54, %v1738_v30  ;;  %v1742_v35 = vsub.f32 %v1737_v29, %v1738_v30 }
 0x33d   :  { %v1740_v42 = vmul.f32 1.442695, %v1739_v31  ;;  %v1743_v45 = vmul.f32 1.442695, %v1742_v35 }
 0x33f   :  { %3412 = vpow2.f32 %v1740_v42 }
 0x340   :  { %3414 = vpow2.f32 %v1743_v45 }
 0x342   :  { %v3407_v47 = vpop.eup %3406 }
 0x343   :  { %v3409_v48 = vpop.eup %3408 }
 0x344   :  { %v1710_v49 = vadd.f32 %v3409_v48, %v3407_v47  ;;  %v3411_v50 = vpop.eup %3410 }
 0x346   :  { %v1714_v51 = vadd.f32 %v3411_v50, %v1710_v49  ;;  %v1761_v49 = vmul.f32 1000.0, %v4498_v41 }
 0x348   :  { %3416 = vlog2.f32 %v1714_v51 }
 0x34c   :  { %v3413_v53 = vpop.eup %3412 }
 0x34d   :  { %v3415_v57 = vpop.eup %3414 }
 0x34e   :  { %v1745_v58 = vadd.f32 %v3415_v57, %v3413_v53 }
 0x350   :  { %3418 = vlog2.f32 %v1745_v58 }
 0x355   :  { %v3417_v59 = vpop.eup %3416 }
 0x356   :  { %v1716_v60 = vmul.f32 0.6931472, %v3417_v59 }
 0x358   :  { %v1717_v61 = vadd.f32 %v1716_v60, %v1703_v8 }
 0x35a   :  { %v1718_v62 = vmul.f32 0.001, %v1717_v61 }
 0x35c   :  { %v1719_v63 = vsel %vm1232_vm3, %v1718_v62, -inf }
 0x35d   :  { %v3419_v0 = vpop.eup %3418  ;;  %1720 = vmax.xlane.f32.xlu1 %v1719_v63 }
 0x35e   :  { %v1747_v3 = vmul.f32 0.6931472, %v3419_v0 }
 0x360   :  { %v1748_v4 = vadd.f32 %v1747_v3, %v1738_v30 }
 0x362   :  { %v5180_v52 = vmul.f32 0.001, %v1748_v4 }
 0x364   :  { %v1750_v5 = vsel %vm1232_vm3, %v5180_v52, -inf }
 0x365   :  { %1751 = vmax.xlane.f32.xlu0 %v1750_v5 }
 0x3e6   :  { %v1721_v6 = vpop.xlane.xlu1 %1720 }
 0x3e7   :  { %v1722_v11 = vrot.slane %v1721_v6, 4 }
 0x3e9   :  { %v1723_v12 = vmax.f32 %v1721_v6, %v1722_v11 }
 0x3eb   :  { %v1724_v13 = vrot.slane %v1723_v12, 2 }
 0x3ed   :  { %v1725_v14 = vmax.f32 %v1723_v12, %v1724_v13 }
 0x3ee   :  { %v1752_v43 = vpop.xlane.xlu0 %1751 }
 0x3ef   :  { %v1753_v8 = vrot.slane %v1752_v43, 4  ;;  %v1726_v46 = vrot.slane %v1725_v14, 1 }
 0x3f1   :  { %v1754_v55 = vmax.f32 %v1752_v43, %v1753_v8  ;;  %v1727_v15 = vmax.f32 %v1725_v14, %v1726_v46 }
 0x3f3   :  { %v1755_v44 = vrot.slane %v1754_v55, 2  ;;  %3325 = vpush %v1727_v15 }
 0x3f5   :  { %v1756_v56 = vmax.f32 %v1754_v55, %v1755_v44 }
 0x3f7   :  { %v1757_v54 = vrot.slane %v1756_v56, 1 }
 0x3f9   :  { %v1758_v29 = vmax.f32 %v1756_v56, %v1757_v54 }
 0x3fb   :  { %3327 = vpush %v1758_v29 }
 0x424   :  { %s3326_s26 = spop %3325 }
 0x425   :  { %v1729_v30 = vstv %s3326_s26 }
 0x426   :  { %v1730_v31 = vmax.f32 %v1729_v30, 1.0 }
 0x428   :  { %3420 = vrcp.f32 %v1730_v31 }
 0x42c   :  { %s3328_s27 = spop %3327 }
 0x42d   :  { %v1760_v8 = vstv %s3328_s27 }
 0x435   :  { %v3421_v35 = vpop.eup %3420 }
 0x436   :  { %v1732_v42 = vmul.f32 %v3421_v35, %v1730_v31 }
 0x438   :  { %v1733_v45 = vsub.f32 2.0, %v1732_v42 }
 0x43a   :  { %v1734_v47 = vmul.f32 %v3421_v35, %v1733_v45 }
 0x43c   :  { %v1735_v48 = vmul.f32 %v1734_v47, %v1718_v62 }
 0x43e   :  { %v1762_v50 = vmul.f32 1000.0, %v1735_v48 }
 0x440   :  { %v1763_v51 = vmax.f32 %v1761_v49, %v1762_v50 }
 0x442   :  { %v1764_v53 = vsub.f32 %v1761_v49, %v1763_v51  ;;  %v1767_v57 = vsub.f32 %v1762_v50, %v1763_v51 }
 0x444   :  { %v1765_v58 = vmul.f32 1.442695, %v1764_v53  ;;  %v1768_v59 = vmul.f32 1.442695, %v1767_v57 }
 0x446   :  { %3422 = vpow2.f32 %v1765_v58 }
 0x447   :  { %3424 = vpow2.f32 %v1768_v59 }
 0x453   :  { %v3423_v60 = vpop.eup %3422 }
 0x454   :  { %v3425_v61 = vpop.eup %3424 }
 0x455   :  { %v1770_v63 = vadd.f32 %v3425_v61, %v3423_v60 }
 0x457   :  { %3426 = vlog2.f32 %v1770_v63 }
 0x464   :  { %v3427_v0 = vpop.eup %3426 }
 0x465   :  { %v1772_v3 = vmul.f32 0.6931472, %v3427_v0 }
 0x467   :  { %v1773_v4 = vadd.f32 %v1772_v3, %v1763_v51 }
 0x469   :  { %v1774_v5 = vmul.f32 0.001, %v1773_v4 }
 0x46b   :  { %v1775_v62 = vsel %vm1232_vm3, %v1774_v5, -inf }
 0x46c   :  { %1776 = vmax.xlane.f32.xlu1 %v1775_v62 }
 0x4f5   :  { %v1777_v41 = vpop.xlane.xlu1 %1776 }
 0x4f6   :  { %v1778_v6 = vrot.slane %v1777_v41, 4 }
 0x4f8   :  { %v1779_v11 = vmax.f32 %v1777_v41, %v1778_v6 }
 0x4fa   :  { %v1780_v12 = vrot.slane %v1779_v11, 2 }
 0x4fc   :  { %v1781_v13 = vmax.f32 %v1779_v11, %v1780_v12 }
 0x4fe   :  { %v1782_v14 = vrot.slane %v1781_v13, 1 }
 0x500   :  { %v1783_v43 = vmax.f32 %v1781_v13, %v1782_v14 }
 0x502   :  { %3329 = vpush %v1783_v43 }
 0x533   :  { %s3330_s28 = spop %3329 }
 0x534   :  { %v1785_v46 = vstv %s3330_s28 }
 0x535   :  { %v1786_v55 = vmax.f32 %v1760_v8, %v1785_v46 }
 0x537   :  { %v1787_v15 = vmax.f32 %v1786_v55, 1.0 }
 0x539   :  { %3428 = vrcp.f32 %v1787_v15 }
 0x546   :  { %v3429_v44 = vpop.eup %3428 }
 0x547   :  { %v1789_v56 = vmul.f32 %v3429_v44, %v1787_v15 }
 0x549   :  { %v1790_v54 = vsub.f32 2.0, %v1789_v56 }
 0x54b   :  { %v1791_v29 = vmul.f32 %v3429_v44, %v1790_v54 }
 0x54d   :  { %v1792_v30 = vmul.f32 %v1791_v29, %v5180_v52  ;;  %v1794_v31 = vmul.f32 %v1791_v29, %v1774_v5 }
 0x54f   :  { %1793 = vst [vmem:[#allocation3] sm:$0x3] %v1792_v30  ;;  %1795 = vst [vmem:[#allocation3 + $0x2] sm:$0x3] %v1794_v31 }
 0x556   :  { %v5187_v35 = vld [vmem:[#allocation3] sm:$0x3] }
 0x557   :  { %1959 = vmatmul.mubr.f32.vlgmr.msra.gmra.mxu0 %v5187_v35  ;;  %2030 = vmatmul.mubr.f32.vlgmr.msra.gmra.mxu1 %v5187_v35 }
 0x558   :  { %3184 = vmatpush1.msk.msra.mxu0 %vm5986_vm4, %v3572_v17  ;;  %3216 = vmatpush1.msk.msra.mxu1 %vm5987_vm5, %v3572_v17  ;;  %vm5992_vm4 = vcmp.eq.s32.totalorder %v3614_v10, %v4049_v34  ;;  %vm5994_vm5 = vcmp.eq.s32.totalorder %v3614_v10, %v4064_v36 }
 0x559   :  { %3185 = vmatprep.subr.msk.mxu0 %vm5988_vm7, %v3572_v17  ;;  %3217 = vmatprep.subr.msk.mxu1 %vm577_vm11, %v3572_v17  ;;  %vm5993_vm11 = vcmp.eq.s32.totalorder %v3614_v10, %v4032_v33  ;;  %vm5995_vm7 = vcmp.eq.s32.totalorder %v3637_v16, %v4015_v32 }
 0x55a   :  { %3186 = vmatpush1.msk.msra.mxu0 %vm5989_vm1, %v3572_v17  ;;  %3218 = vmatpush1.msk.msra.mxu1 %vm5990_vm0, %v3572_v17  ;;  %vm5996_vm1 = vcmp.eq.s32.totalorder %v3637_v16, %v4049_v34  ;;  %vm5997_vm0 = vcmp.eq.s32.totalorder %v3637_v16, %v4032_v33 }
 0x55b   :  { %3187 = vmatprep.subr.msk.mxu0 %vm5991_vm2, %v3572_v17  ;;  %3219 = vmatprep.subr.msk.mxu1 %vm5992_vm4, %v3572_v17  ;;  %vm5998_vm2 = vcmp.eq.s32.totalorder %v3637_v16, %v4064_v36  ;;  %vm5999_vm4 = vcmp.eq.s32.totalorder %v3676_v18, %v4015_v32 }
 0x55c   :  { %3188 = vmatpush1.msk.msra.mxu0 %vm5993_vm11, %v3572_v17  ;;  %3220 = vmatpush1.msk.msra.mxu1 %vm5994_vm5, %v3572_v17  ;;  %vm6000_vm11 = vcmp.eq.s32.totalorder %v3676_v18, %v4049_v34  ;;  %vm6001_vm5 = vcmp.eq.s32.totalorder %v3676_v18, %v4032_v33 }
 0x55d   :  { %3189 = vmatprep.subr.msk.mxu0 %vm5995_vm7, %v3572_v17  ;;  %3221 = vmatprep.subr.msk.mxu1 %vm5996_vm1, %v3572_v17  ;;  %vm6002_vm7 = vcmp.eq.s32.totalorder %v3676_v18, %v4064_v36  ;;  %vm6003_vm1 = vcmp.eq.s32.totalorder %v3703_v19, %v4015_v32 }
 0x55e   :  { %3190 = vmatpush1.msk.msra.mxu0 %vm5997_vm0, %v3572_v17  ;;  %3222 = vmatpush1.msk.msra.mxu1 %vm5998_vm2, %v3572_v17  ;;  %vm6004_vm0 = vcmp.eq.s32.totalorder %v3703_v19, %v4049_v34  ;;  %vm6005_vm2 = vcmp.eq.s32.totalorder %v3703_v19, %v4032_v33 }
 0x55f   :  { %3191 = vmatprep.subr.msk.mxu0 %vm5999_vm4, %v3572_v17  ;;  %3223 = vmatprep.subr.msk.mxu1 %vm6000_vm11, %v3572_v17  ;;  %vm6006_vm4 = vcmp.eq.s32.totalorder %v3703_v19, %v4064_v36  ;;  %vm6007_vm11 = vcmp.eq.s32.totalorder %v3730_v20, %v4015_v32 }
 0x560   :  { %3192 = vmatpush1.msk.msra.mxu0 %vm6001_vm5, %v3572_v17  ;;  %3224 = vmatpush1.msk.msra.mxu1 %vm6002_vm7, %v3572_v17  ;;  %vm6008_vm5 = vcmp.eq.s32.totalorder %v3730_v20, %v4049_v34  ;;  %vm6009_vm7 = vcmp.eq.s32.totalorder %v3730_v20, %v4032_v33 }
 0x561   :  { %3193 = vmatprep.subr.msk.mxu0 %vm6003_vm1, %v3572_v17  ;;  %3225 = vmatprep.subr.msk.mxu1 %vm6004_vm0, %v3572_v17  ;;  %vm6010_vm1 = vcmp.eq.s32.totalorder %v3730_v20, %v4064_v36  ;;  %vm6011_vm0 = vcmp.eq.s32.totalorder %v3757_v21, %v4015_v32 }
 0x562   :  { %3194 = vmatpush1.msk.msra.mxu0 %vm6005_vm2, %v3572_v17  ;;  %3226 = vmatpush1.msk.msra.mxu1 %vm6006_vm4, %v3572_v17  ;;  %vm6012_vm2 = vcmp.eq.s32.totalorder %v3757_v21, %v4049_v34  ;;  %vm6013_vm4 = vcmp.eq.s32.totalorder %v3757_v21, %v4032_v33 }
 0x563   :  { %3195 = vmatprep.subr.msk.mxu0 %vm6007_vm11, %v3572_v17  ;;  %3227 = vmatprep.subr.msk.mxu1 %vm6008_vm5, %v3572_v17  ;;  %vm6014_vm11 = vcmp.eq.s32.totalorder %v3757_v21, %v4064_v36  ;;  %vm6015_vm5 = vcmp.eq.s32.totalorder %v3784_v22, %v4015_v32 }
 0x564   :  { %3196 = vmatpush1.msk.msra.mxu0 %vm6009_vm7, %v3572_v17  ;;  %3228 = vmatpush1.msk.msra.mxu1 %vm6010_vm1, %v3572_v17  ;;  %vm6016_vm7 = vcmp.eq.s32.totalorder %v3784_v22, %v4049_v34  ;;  %vm6017_vm1 = vcmp.eq.s32.totalorder %v3784_v22, %v4032_v33 }
 0x565   :  { %3197 = vmatprep.subr.msk.mxu0 %vm6011_vm0, %v3572_v17  ;;  %3229 = vmatprep.subr.msk.mxu1 %vm6012_vm2, %v3572_v17  ;;  %vm6018_vm0 = vcmp.eq.s32.totalorder %v3784_v22, %v4064_v36  ;;  %vm6019_vm2 = vcmp.eq.s32.totalorder %v3811_v23, %v4015_v32 }
 0x566   :  { %3198 = vmatpush1.msk.msra.mxu0 %vm6013_vm4, %v3572_v17  ;;  %3230 = vmatpush1.msk.msra.mxu1 %vm6014_vm11, %v3572_v17  ;;  %vm6020_vm4 = vcmp.eq.s32.totalorder %v3811_v23, %v4049_v34  ;;  %vm6021_vm11 = vcmp.eq.s32.totalorder %v3811_v23, %v4032_v33 }
 0x567   :  { %3199 = vmatprep.subr.msk.mxu0 %vm6015_vm5, %v3572_v17  ;;  %3231 = vmatprep.subr.msk.mxu1 %vm6016_vm7, %v3572_v17  ;;  %vm6022_vm5 = vcmp.eq.s32.totalorder %v3811_v23, %v4064_v36  ;;  %vm6023_vm7 = vcmp.eq.s32.totalorder %v3838_v24, %v4015_v32 }
 0x568   :  { %3200 = vmatpush1.msk.msra.mxu0 %vm6017_vm1, %v3572_v17  ;;  %3232 = vmatpush1.msk.msra.mxu1 %vm6018_vm0, %v3572_v17  ;;  %vm6024_vm1 = vcmp.eq.s32.totalorder %v3838_v24, %v4049_v34  ;;  %vm6025_vm0 = vcmp.eq.s32.totalorder %v3838_v24, %v4032_v33 }
 0x569   :  { %3201 = vmatprep.subr.msk.mxu0 %vm6019_vm2, %v3572_v17  ;;  %3233 = vmatprep.subr.msk.mxu1 %vm6020_vm4, %v3572_v17  ;;  %vm6026_vm2 = vcmp.eq.s32.totalorder %v3838_v24, %v4064_v36  ;;  %vm6027_vm4 = vcmp.eq.s32.totalorder %v3865_v25, %v4015_v32 }
 0x56a   :  { %3202 = vmatpush1.msk.msra.mxu0 %vm6021_vm11, %v3572_v17  ;;  %3234 = vmatpush1.msk.msra.mxu1 %vm6022_vm5, %v3572_v17  ;;  %vm6028_vm11 = vcmp.eq.s32.totalorder %v3865_v25, %v4049_v34  ;;  %vm6029_vm5 = vcmp.eq.s32.totalorder %v3865_v25, %v4032_v33 }
 0x56b   :  { %3203 = vmatprep.subr.msk.mxu0 %vm6023_vm7, %v3572_v17  ;;  %3235 = vmatprep.subr.msk.mxu1 %vm6024_vm1, %v3572_v17  ;;  %vm6030_vm7 = vcmp.eq.s32.totalorder %v3865_v25, %v4064_v36  ;;  %vm6031_vm1 = vcmp.eq.s32.totalorder %v3892_v26, %v4015_v32 }
 0x56c   :  { %3204 = vmatpush1.msk.msra.mxu0 %vm6025_vm0, %v3572_v17  ;;  %3236 = vmatpush1.msk.msra.mxu1 %vm6026_vm2, %v3572_v17  ;;  %vm6032_vm0 = vcmp.eq.s32.totalorder %v3892_v26, %v4049_v34  ;;  %vm6033_vm2 = vcmp.eq.s32.totalorder %v3892_v26, %v4032_v33 }
 0x56d   :  { %3205 = vmatprep.subr.msk.mxu0 %vm6027_vm4, %v3572_v17  ;;  %3237 = vmatprep.subr.msk.mxu1 %vm6028_vm11, %v3572_v17  ;;  %vm6034_vm4 = vcmp.eq.s32.totalorder %v3892_v26, %v4064_v36  ;;  %vm6035_vm11 = vcmp.eq.s32.totalorder %v3919_v27, %v4015_v32 }
 0x56e   :  { %3206 = vmatpush1.msk.msra.mxu0 %vm6029_vm5, %v3572_v17  ;;  %3238 = vmatpush1.msk.msra.mxu1 %vm6030_vm7, %v3572_v17  ;;  %vm6036_vm5 = vcmp.eq.s32.totalorder %v3919_v27, %v4049_v34  ;;  %vm6037_vm7 = vcmp.eq.s32.totalorder %v3919_v27, %v4032_v33 }
 0x56f   :  { %3207 = vmatprep.subr.msk.mxu0 %vm6031_vm1, %v3572_v17  ;;  %3239 = vmatprep.subr.msk.mxu1 %vm6032_vm0, %v3572_v17  ;;  %vm6038_vm1 = vcmp.eq.s32.totalorder %v3919_v27, %v4064_v36  ;;  %vm6039_vm0 = vcmp.eq.s32.totalorder %v3946_v28, %v4015_v32 }
 0x570   :  { %3208 = vmatpush1.msk.msra.mxu0 %vm6033_vm2, %v3572_v17  ;;  %3240 = vmatpush1.msk.msra.mxu1 %vm6034_vm4, %v3572_v17  ;;  %vm6040_vm2 = vcmp.eq.s32.totalorder %v3946_v28, %v4049_v34  ;;  %vm6041_vm4 = vcmp.eq.s32.totalorder %v3946_v28, %v4032_v33 }
 0x571   :  { %3209 = vmatprep.subr.msk.mxu0 %vm6035_vm11, %v3572_v17  ;;  %3241 = vmatprep.subr.msk.mxu1 %vm6036_vm5, %v3572_v17  ;;  %vm6042_vm11 = vcmp.eq.s32.totalorder %v3946_v28, %v4064_v36  ;;  %vm6043_vm5 = vcmp.eq.s32.totalorder %v3599_v2, %v4015_v32  ;;  %v5441_v32 = vld [vmem:[#allocation3 + $0x2] sm:$0x3] }
 0x572   :  { %3210 = vmatpush1.msk.msra.mxu0 %vm6037_vm7, %v3572_v17  ;;  %3242 = vmatpush1.msk.msra.mxu1 %vm6038_vm1, %v3572_v17  ;;  %vm6044_vm7 = vcmp.eq.s32.totalorder %v3599_v2, %v4049_v34  ;;  %vm6045_vm1 = vcmp.eq.s32.totalorder %v3599_v2, %v4032_v33 }
 0x573   :  { %3211 = vmatprep.subr.msk.mxu0 %vm6039_vm0, %v3572_v17  ;;  %3243 = vmatprep.subr.msk.mxu1 %vm6040_vm2, %v3572_v17  ;;  %vm6046_vm0 = vcmp.eq.s32.totalorder %v3599_v2, %v4064_v36  ;;  %vm6047_vm2 = vcmp.eq.s32.totalorder %v3606_v7, %v4421_v37 }
 0x574   :  { %3212 = vmatpush1.msk.msra.mxu0 %vm6041_vm4, %v3572_v17  ;;  %3244 = vmatpush1.msk.msra.mxu1 %vm6042_vm11, %v3572_v17  ;;  %vm6048_vm4 = vcmp.eq.s32.totalorder %v3606_v7, %v4463_v39  ;;  %vm6049_vm11 = vcmp.eq.s32.totalorder %v3606_v7, %v4426_v38 }
 0x575   :  { %3213 = vmatprep.subr.msk.mxu0 %vm6043_vm5, %v3572_v17  ;;  %3245 = vmatprep.subr.msk.mxu1 %vm6044_vm7, %v3572_v17  ;;  %vm6050_vm5 = vcmp.eq.s32.totalorder %v3606_v7, %v4478_v40  ;;  %vm6051_vm7 = vcmp.eq.s32.totalorder %v3611_v9, %v4421_v37 }
 0x576   :  { %3214 = vmatpush1.msk.msra.mxu0 %vm6045_vm1, %v3572_v17  ;;  %2100 = vmatprep.mubr.f32.mxu0 %v3571_v1  ;;  %vm6052_vm1 = vcmp.eq.s32.totalorder %v3611_v9, %v4463_v39 }
 0x577   :  { %3246 = vmatpush1.msk.msra.mxu1 %vm6046_vm0, %v3572_v17  ;;  %2385 = vmatprep.mubr.f32.mxu1 %v3571_v1  ;;  %vm6053_vm0 = vcmp.eq.s32.totalorder %v3611_v9, %v4426_v38 }
 0x578   :  { %2101 = vmatmul.mubr.f32.vlgmr.msra.gmra.mxu0 %v5187_v35  ;;  %2386 = vmatmul.mubr.f32.vlgmr.msra.gmra.mxu1 %v5441_v32 }
 0x579   :  { %3247 = vmatprep.subr.msk.mxu0 %vm6047_vm2, %v3572_v17  ;;  %3279 = vmatprep.subr.msk.mxu1 %vm6048_vm4, %v3572_v17  ;;  %vm6054_vm2 = vcmp.eq.s32.totalorder %v3611_v9, %v4478_v40  ;;  %vm6055_vm4 = vcmp.eq.s32.totalorder %v3614_v10, %v4421_v37 }
 0x57a   :  { %3248 = vmatpush1.msk.msra.mxu0 %vm6049_vm11, %v3572_v17  ;;  %3280 = vmatpush1.msk.msra.mxu1 %vm6050_vm5, %v3572_v17  ;;  %vm6056_vm11 = vcmp.eq.s32.totalorder %v3614_v10, %v4463_v39  ;;  %vm6057_vm5 = vcmp.eq.s32.totalorder %v3614_v10, %v4426_v38 }
 0x57b   :  { %3249 = vmatprep.subr.msk.mxu0 %vm6051_vm7, %v3572_v17  ;;  %3281 = vmatprep.subr.msk.mxu1 %vm6052_vm1, %v3572_v17  ;;  %vm6058_vm7 = vcmp.eq.s32.totalorder %v3614_v10, %v4478_v40  ;;  %vm6059_vm1 = vcmp.eq.s32.totalorder %v3637_v16, %v4421_v37 }
 0x57c   :  { %3250 = vmatpush1.msk.msra.mxu0 %vm6053_vm0, %v3572_v17  ;;  %3282 = vmatpush1.msk.msra.mxu1 %vm6054_vm2, %v3572_v17  ;;  %vm6060_vm0 = vcmp.eq.s32.totalorder %v3637_v16, %v4463_v39  ;;  %vm6061_vm2 = vcmp.eq.s32.totalorder %v3637_v16, %v4426_v38 }
 0x57d   :  { %3251 = vmatprep.subr.msk.mxu0 %vm6055_vm4, %v3572_v17  ;;  %3283 = vmatprep.subr.msk.mxu1 %vm6056_vm11, %v3572_v17  ;;  %vm6062_vm4 = vcmp.eq.s32.totalorder %v3637_v16, %v4478_v40  ;;  %vm6063_vm11 = vcmp.eq.s32.totalorder %v3676_v18, %v4421_v37 }
 0x57e   :  { %3252 = vmatpush1.msk.msra.mxu0 %vm6057_vm5, %v3572_v17  ;;  %3284 = vmatpush1.msk.msra.mxu1 %vm6058_vm7, %v3572_v17  ;;  %vm6064_vm5 = vcmp.eq.s32.totalorder %v3676_v18, %v4463_v39  ;;  %vm6065_vm7 = vcmp.eq.s32.totalorder %v3676_v18, %v4426_v38 }
 0x57f   :  { %3253 = vmatprep.subr.msk.mxu0 %vm6059_vm1, %v3572_v17  ;;  %3285 = vmatprep.subr.msk.mxu1 %vm6060_vm0, %v3572_v17  ;;  %vm6066_vm1 = vcmp.eq.s32.totalorder %v3676_v18, %v4478_v40  ;;  %vm6067_vm0 = vcmp.eq.s32.totalorder %v3703_v19, %v4421_v37 }
 0x580   :  { %3254 = vmatpush1.msk.msra.mxu0 %vm6061_vm2, %v3572_v17  ;;  %3286 = vmatpush1.msk.msra.mxu1 %vm6062_vm4, %v3572_v17  ;;  %vm6068_vm2 = vcmp.eq.s32.totalorder %v3703_v19, %v4463_v39  ;;  %vm6069_vm4 = vcmp.eq.s32.totalorder %v3703_v19, %v4426_v38 }
 0x581   :  { %3255 = vmatprep.subr.msk.mxu0 %vm6063_vm11, %v3572_v17  ;;  %3287 = vmatprep.subr.msk.mxu1 %vm6064_vm5, %v3572_v17  ;;  %vm6070_vm11 = vcmp.eq.s32.totalorder %v3703_v19, %v4478_v40  ;;  %vm6071_vm5 = vcmp.eq.s32.totalorder %v3730_v20, %v4421_v37 }
 0x582   :  { %3256 = vmatpush1.msk.msra.mxu0 %vm6065_vm7, %v3572_v17  ;;  %3288 = vmatpush1.msk.msra.mxu1 %vm6066_vm1, %v3572_v17  ;;  %vm6072_vm7 = vcmp.eq.s32.totalorder %v3730_v20, %v4463_v39  ;;  %vm6073_vm1 = vcmp.eq.s32.totalorder %v3730_v20, %v4426_v38 }
 0x583   :  { %3257 = vmatprep.subr.msk.mxu0 %vm6067_vm0, %v3572_v17  ;;  %3289 = vmatprep.subr.msk.mxu1 %vm6068_vm2, %v3572_v17  ;;  %vm6074_vm0 = vcmp.eq.s32.totalorder %v3730_v20, %v4478_v40  ;;  %vm6075_vm2 = vcmp.eq.s32.totalorder %v3757_v21, %v4421_v37 }
 0x584   :  { %3258 = vmatpush1.msk.msra.mxu0 %vm6069_vm4, %v3572_v17  ;;  %3290 = vmatpush1.msk.msra.mxu1 %vm6070_vm11, %v3572_v17  ;;  %vm6076_vm4 = vcmp.eq.s32.totalorder %v3757_v21, %v4463_v39  ;;  %vm6077_vm11 = vcmp.eq.s32.totalorder %v3757_v21, %v4426_v38 }
 0x585   :  { %3259 = vmatprep.subr.msk.mxu0 %vm6071_vm5, %v3572_v17  ;;  %3291 = vmatprep.subr.msk.mxu1 %vm6072_vm7, %v3572_v17  ;;  %vm6078_vm5 = vcmp.eq.s32.totalorder %v3757_v21, %v4478_v40  ;;  %vm6079_vm7 = vcmp.eq.s32.totalorder %v3784_v22, %v4421_v37 }
 0x586   :  { %3260 = vmatpush1.msk.msra.mxu0 %vm6073_vm1, %v3572_v17  ;;  %3292 = vmatpush1.msk.msra.mxu1 %vm6074_vm0, %v3572_v17  ;;  %vm6080_vm1 = vcmp.eq.s32.totalorder %v3784_v22, %v4463_v39  ;;  %vm6081_vm0 = vcmp.eq.s32.totalorder %v3784_v22, %v4426_v38 }
 0x587   :  { %3261 = vmatprep.subr.msk.mxu0 %vm6075_vm2, %v3572_v17  ;;  %3293 = vmatprep.subr.msk.mxu1 %vm6076_vm4, %v3572_v17  ;;  %vm6082_vm2 = vcmp.eq.s32.totalorder %v3784_v22, %v4478_v40  ;;  %vm6083_vm4 = vcmp.eq.s32.totalorder %v3811_v23, %v4421_v37 }
 0x588   :  { %3262 = vmatpush1.msk.msra.mxu0 %vm6077_vm11, %v3572_v17  ;;  %3294 = vmatpush1.msk.msra.mxu1 %vm6078_vm5, %v3572_v17  ;;  %vm6084_vm11 = vcmp.eq.s32.totalorder %v3811_v23, %v4463_v39  ;;  %vm6085_vm5 = vcmp.eq.s32.totalorder %v3811_v23, %v4426_v38 }
 0x589   :  { %3263 = vmatprep.subr.msk.mxu0 %vm6079_vm7, %v3572_v17  ;;  %3295 = vmatprep.subr.msk.mxu1 %vm6080_vm1, %v3572_v17  ;;  %vm6086_vm7 = vcmp.eq.s32.totalorder %v3811_v23, %v4478_v40  ;;  %vm6087_vm1 = vcmp.eq.s32.totalorder %v3838_v24, %v4421_v37 }
 0x58a   :  { %3264 = vmatpush1.msk.msra.mxu0 %vm6081_vm0, %v3572_v17  ;;  %3296 = vmatpush1.msk.msra.mxu1 %vm6082_vm2, %v3572_v17  ;;  %vm6088_vm0 = vcmp.eq.s32.totalorder %v3838_v24, %v4463_v39  ;;  %vm6089_vm2 = vcmp.eq.s32.totalorder %v3838_v24, %v4426_v38 }
 0x58b   :  { %3265 = vmatprep.subr.msk.mxu0 %vm6083_vm4, %v3572_v17  ;;  %3297 = vmatprep.subr.msk.mxu1 %vm6084_vm11, %v3572_v17  ;;  %vm6090_vm4 = vcmp.eq.s32.totalorder %v3838_v24, %v4478_v40  ;;  %vm6091_vm11 = vcmp.eq.s32.totalorder %v3865_v25, %v4421_v37 }
 0x58c   :  { %3266 = vmatpush1.msk.msra.mxu0 %vm6085_vm5, %v3572_v17  ;;  %3298 = vmatpush1.msk.msra.mxu1 %vm6086_vm7, %v3572_v17  ;;  %vm6092_vm5 = vcmp.eq.s32.totalorder %v3865_v25, %v4463_v39  ;;  %vm6093_vm7 = vcmp.eq.s32.totalorder %v3865_v25, %v4426_v38 }
 0x58d   :  { %3267 = vmatprep.subr.msk.mxu0 %vm6087_vm1, %v3572_v17  ;;  %3299 = vmatprep.subr.msk.mxu1 %vm6088_vm0, %v3572_v17  ;;  %vm6094_vm1 = vcmp.eq.s32.totalorder %v3865_v25, %v4478_v40  ;;  %vm6095_vm0 = vcmp.eq.s32.totalorder %v3892_v26, %v4421_v37 }
 0x58e   :  { %3268 = vmatpush1.msk.msra.mxu0 %vm6089_vm2, %v3572_v17  ;;  %3300 = vmatpush1.msk.msra.mxu1 %vm6090_vm4, %v3572_v17  ;;  %vm6096_vm2 = vcmp.eq.s32.totalorder %v3892_v26, %v4463_v39  ;;  %vm6097_vm4 = vcmp.eq.s32.totalorder %v3892_v26, %v4478_v40 }
 0x58f   :  { %3269 = vmatprep.subr.msk.mxu0 %vm6091_vm11, %v3572_v17  ;;  %3301 = vmatprep.subr.msk.mxu1 %vm6092_vm5, %v3572_v17  ;;  %vm6098_vm11 = vcmp.eq.s32.totalorder %v3919_v27, %v4463_v39 }
 0x590   :  { %3270 = vmatpush1.msk.msra.mxu0 %vm6093_vm7, %v3572_v17  ;;  %3302 = vmatpush1.msk.msra.mxu1 %vm6094_vm1, %v3572_v17 }
 0x591   :  { %3271 = vmatprep.subr.msk.mxu0 %vm6095_vm0, %v3572_v17  ;;  %3303 = vmatprep.subr.msk.mxu1 %vm6096_vm2, %v3572_v17 }
 0x592   :  { %3272 = vmatpush1.msk.msra.mxu0 %vm512_vm6, %v3572_v17  ;;  %3304 = vmatpush1.msk.msra.mxu1 %vm6097_vm4, %v3572_v17  ;;  %vm6099_vm6 = vcmp.eq.s32.totalorder %v3919_v27, %v4478_v40 }
 0x593   :  { %3273 = vmatprep.subr.msk.mxu0 %vm507_vm8, %v3572_v17  ;;  %3305 = vmatprep.subr.msk.mxu1 %vm6098_vm11, %v3572_v17  ;;  %vm6100_vm8 = vcmp.eq.s32.totalorder %v3946_v28, %v4463_v39 }
 0x594   :  { %3274 = vmatpush1.msk.msra.mxu0 %vm506_vm14, %v3572_v17  ;;  %3306 = vmatpush1.msk.msra.mxu1 %vm6099_vm6, %v3572_v17  ;;  %vm6101_vm14 = vcmp.eq.s32.totalorder %v3946_v28, %v4478_v40 }
 0x595   :  { %3275 = vmatprep.subr.msk.mxu0 %vm501_vm12, %v3572_v17  ;;  %3307 = vmatprep.subr.msk.mxu1 %vm6100_vm8, %v3572_v17  ;;  %vm6102_vm12 = vcmp.eq.s32.totalorder %v3599_v2, %v4463_v39 }
 0x596   :  { %3276 = vmatpush1.msk.msra.mxu0 %vm500_vm9, %v3572_v17  ;;  %3308 = vmatpush1.msk.msra.mxu1 %vm6101_vm14, %v3572_v17 }
 0x597   :  { %3277 = vmatprep.subr.msk.mxu0 %vm495_vm15, %v3572_v17  ;;  %3309 = vmatprep.subr.msk.mxu1 %vm6102_vm12, %v3572_v17 }
 0x598   :  { %3278 = vmatpush1.msk.msra.mxu0 %vm494_vm10, %v3572_v17  ;;  %2456 = vmatprep.mubr.f32.mxu0 %v3571_v1 }
 0x599   :  { %3310 = vmatpush1.msk.msra.mxu1 %vm496_vm13, %v3572_v17  ;;  %2527 = vmatprep.mubr.f32.mxu1 %v3571_v1 }
 0x59a   :  { %2457 = vmatmul.mubr.f32.vlgmr.msra.gmra.mxu0 %v5441_v32  ;;  %2528 = vmatmul.mubr.f32.vlgmr.msra.gmra.mxu1 %v5441_v32 }
 0x617   :  { %v1960_v7 = vpop.f32.mrf.mxu0  ;;  %v2031_v9 = vpop.f32.mrf.mxu1 }
 0x618   :  { %v2107_v18 = vmul.f32 -1000.0, %v1960_v7  ;;  %v2109_v19 = vmul.f32 -1000.0, %v2031_v9 }
 0x619   :  { %v1962_v10 = vpop.f32.mrf.mxu0  ;;  %v2033_v16 = vpop.f32.mrf.mxu1 }
 0x61a   :  { %v2108_v20 = vmul.f32 -1000.0, %v1962_v10  ;;  %v2110_v21 = vmul.f32 -1000.0, %v2033_v16 }
 0x61c   :  { %v2113_v22 = vmax.f32 %v2107_v18, %v2108_v20  ;;  %v2125_v23 = vmax.f32 %v2109_v19, %v2110_v21 }
 0x61e   :  { %v2114_v24 = vsub.f32 %v2107_v18, %v2113_v22  ;;  %v2117_v25 = vsub.f32 %v2108_v20, %v2113_v22  ;;  %v2126_v2 = vsub.f32 %v2109_v19, %v2125_v23  ;;  %v2129_v17 = vsub.f32 %v2110_v21, %v2125_v23 }
 0x620   :  { %v2115_v26 = vmul.f32 1.442695, %v2114_v24  ;;  %v2118_v1 = vmul.f32 1.442695, %v2117_v25  ;;  %v2127_v27 = vmul.f32 1.442695, %v2126_v2 }
 0x621   :  { %v2130_v28 = vmul.f32 1.442695, %v2129_v17 }
 0x622   :  { %3430 = vpow2.f32 %v2115_v26 }
 0x623   :  { %3432 = vpow2.f32 %v2118_v1 }
 0x624   :  { %3434 = vpow2.f32 %v2127_v27 }
 0x625   :  { %3436 = vpow2.f32 %v2130_v28 }
 0x62f   :  { %v3431_v33 = vpop.eup %3430 }
 0x630   :  { %v3433_v34 = vpop.eup %3432 }
 0x631   :  { %v3435_v36 = vpop.eup %3434  ;;  %v2120_v37 = vadd.f32 %v3433_v34, %v3431_v33 }
 0x632   :  { %v3437_v38 = vpop.eup %3436 }
 0x633   :  { %v2132_v39 = vadd.f32 %v3437_v38, %v3435_v36  ;;  %3438 = vlog2.f32 %v2120_v37 }
 0x635   :  { %3440 = vlog2.f32 %v2132_v39 }
 0x638   :  { %v2102_v40 = vpop.f32.mrf.mxu0  ;;  %v2387_v52 = vpop.f32.mrf.mxu1 }
 0x639   :  { %v2111_v47 = vmul.f32 -1000.0, %v2102_v40  ;;  %v2534_v48 = vmul.f32 -1000.0, %v2387_v52 }
 0x63a   :  { %v2104_v42 = vpop.f32.mrf.mxu0  ;;  %v2389_v45 = vpop.f32.mrf.mxu1 }
 0x63b   :  { %v2112_v49 = vmul.f32 -1000.0, %v2104_v42  ;;  %v2535_v50 = vmul.f32 -1000.0, %v2389_v45 }
 0x63d   :  { %v2137_v51 = vmax.f32 %v2111_v47, %v2112_v49  ;;  %v2540_v53 = vmax.f32 %v2534_v48, %v2535_v50 }
 0x63f   :  { %v2138_v57 = vsub.f32 %v2111_v47, %v2137_v51  ;;  %v2141_v58 = vsub.f32 %v2112_v49, %v2137_v51  ;;  %v2541_v59 = vsub.f32 %v2534_v48, %v2540_v53  ;;  %v2544_v60 = vsub.f32 %v2535_v50, %v2540_v53 }
 0x640   :  { %v3439_v61 = vpop.eup %3438 }
 0x641   :  { %v2139_v63 = vmul.f32 1.442695, %v2138_v57  ;;  %v2142_v0 = vmul.f32 1.442695, %v2141_v58  ;;  %v2542_v3 = vmul.f32 1.442695, %v2541_v59 }
 0x642   :  { %v3441_v4 = vpop.eup %3440  ;;  %v2545_v5 = vmul.f32 1.442695, %v2544_v60  ;;  %v2122_v62 = vmul.f32 0.6931472, %v3439_v61 }
 0x643   :  { %3442 = vpow2.f32 %v2139_v63  ;;  %v2134_v41 = vmul.f32 0.6931472, %v3441_v4 }
 0x644   :  { %3444 = vpow2.f32 %v2142_v0  ;;  %v2123_v6 = vadd.f32 %v2122_v62, %v2113_v22 }
 0x645   :  { %3446 = vpow2.f32 %v2542_v3  ;;  %v2135_v11 = vadd.f32 %v2134_v41, %v2125_v23 }
 0x646   :  { %3448 = vpow2.f32 %v2545_v5  ;;  %v5705_v12 = vmul.f32 -0.001, %v2123_v6 }
 0x647   :  { %v5707_v13 = vmul.f32 -0.001, %v2135_v11 }
 0x648   :  { %v2149_v14 = vsel %vm1232_vm3, %v5705_v12, inf }
 0x649   :  { %v2160_v43 = vsel %vm1232_vm3, %v5707_v13, inf  ;;  %2150 = vmin.xlane.f32.xlu0 %v2149_v14 }
 0x64a   :  { %2161 = vmin.xlane.f32.xlu1 %v2160_v43 }
 0x650   :  { %v3443_v8 = vpop.eup %3442 }
 0x651   :  { %v3445_v46 = vpop.eup %3444 }
 0x652   :  { %v3447_v55 = vpop.eup %3446  ;;  %v2144_v15 = vadd.f32 %v3445_v46, %v3443_v8 }
 0x653   :  { %v3449_v44 = vpop.eup %3448 }
 0x654   :  { %3450 = vlog2.f32 %v2144_v15  ;;  %v2547_v56 = vadd.f32 %v3449_v44, %v3447_v55 }
 0x656   :  { %3452 = vlog2.f32 %v2547_v56 }
 0x65a   :  { %v2529_v54 = vpop.f32.mrf.mxu1  ;;  %v2458_v62 = vpop.f32.mrf.mxu0 }
 0x65b   :  { %v2538_v30 = vmul.f32 -1000.0, %v2529_v54  ;;  %v2536_v43 = vmul.f32 -1000.0, %v2458_v62 }
 0x65c   :  { %v2531_v29 = vpop.f32.mrf.mxu1  ;;  %v2460_v41 = vpop.f32.mrf.mxu0 }
 0x65d   :  { %v2539_v31 = vmul.f32 -1000.0, %v2531_v29  ;;  %v2537_v6 = vmul.f32 -1000.0, %v2460_v41 }
 0x65f   :  { %v2564_v7 = vmax.f32 %v2538_v30, %v2539_v31  ;;  %v2552_v8 = vmax.f32 %v2536_v43, %v2537_v6 }
 0x661   :  { %v3451_v9 = vpop.eup %3450  ;;  %v2565_v10 = vsub.f32 %v2538_v30, %v2564_v7  ;;  %v2568_v16 = vsub.f32 %v2539_v31, %v2564_v7  ;;  %v2553_v44 = vsub.f32 %v2536_v43, %v2552_v8  ;;  %v2556_v54 = vsub.f32 %v2537_v6, %v2552_v8 }
 0x662   :  { %v2146_v18 = vmul.f32 0.6931472, %v3451_v9 }
 0x663   :  { %v3453_v19 = vpop.eup %3452  ;;  %v2566_v20 = vmul.f32 1.442695, %v2565_v10  ;;  %v2569_v21 = vmul.f32 1.442695, %v2568_v16  ;;  %v2557_v16 = vmul.f32 1.442695, %v2556_v54 }
 0x664   :  { %v2147_v22 = vadd.f32 %v2146_v18, %v2137_v51  ;;  %v2549_v23 = vmul.f32 0.6931472, %v3453_v19 }
 0x665   :  { %3454 = vpow2.f32 %v2566_v20 }
 0x666   :  { %v5713_v24 = vmul.f32 -0.001, %v2147_v22  ;;  %v2550_v25 = vadd.f32 %v2549_v23, %v2540_v53  ;;  %3456 = vpow2.f32 %v2569_v21 }
 0x668   :  { %v2172_v2 = vsel %vm1232_vm3, %v5713_v24, inf  ;;  %v5717_v17 = vmul.f32 -0.001, %v2550_v25 }
 0x669   :  { %2173 = vmin.xlane.f32.xlu0 %v2172_v2 }
 0x66a   :  { %v2576_v26 = vsel %vm1232_vm3, %v5717_v17, inf }
 0x66d   :  { %2577 = vmin.xlane.f32.xlu0 %v2576_v26 }
 0x672   :  { %v3455_v1 = vpop.eup %3454 }
 0x673   :  { %v3457_v27 = vpop.eup %3456 }
 0x674   :  { %v2571_v28 = vadd.f32 %v3457_v27, %v3455_v1 }
 0x676   :  { %3458 = vlog2.f32 %v2571_v28 }
 0x683   :  { %v3459_v33 = vpop.eup %3458 }
 0x684   :  { %v2573_v34 = vmul.f32 0.6931472, %v3459_v33 }
 0x686   :  { %v2574_v36 = vadd.f32 %v2573_v34, %v2564_v7  ;;  %v2554_v7 = vmul.f32 1.442695, %v2553_v44 }
 0x688   :  { %v5721_v37 = vmul.f32 -0.001, %v2574_v36  ;;  %3460 = vpow2.f32 %v2554_v7 }
 0x689   :  { %3462 = vpow2.f32 %v2557_v16 }
 0x68a   :  { %v2599_v38 = vsel %vm1232_vm3, %v5721_v37, inf }
 0x68b   :  { %2600 = vmin.xlane.f32.xlu0 %v2599_v38 }
 0x6d2   :  { %v2151_v39 = vpop.xlane.xlu0 %2150 }
 0x6d3   :  { %v2162_v40 = vpop.xlane.xlu1 %2161  ;;  %v2152_v52 = vrot.slane %v2151_v39, 4 }
 0x6d4   :  { %v2163_v42 = vrot.slane %v2162_v40, 4 }
 0x6d5   :  { %v2153_v45 = vmin.f32 %v2151_v39, %v2152_v52 }
 0x6d6   :  { %v2164_v47 = vmin.f32 %v2162_v40, %v2163_v42 }
 0x6d7   :  { %v2154_v48 = vrot.slane %v2153_v45, 2 }
 0x6d8   :  { %v2165_v49 = vrot.slane %v2164_v47, 2 }
 0x6d9   :  { %v2155_v50 = vmin.f32 %v2153_v45, %v2154_v48 }
 0x6da   :  { %v2166_v51 = vmin.f32 %v2164_v47, %v2165_v49 }
 0x6db   :  { %v2156_v53 = vrot.slane %v2155_v50, 1 }
 0x6dc   :  { %v2167_v57 = vrot.slane %v2166_v51, 1 }
 0x6dd   :  { %v2157_v58 = vmin.f32 %v2155_v50, %v2156_v53 }
 0x6de   :  { %v2168_v59 = vmin.f32 %v2166_v51, %v2167_v57 }
 0x6df   :  { %3331 = vpush %v2157_v58 }
 0x6e0   :  { %3333 = vpush %v2168_v59 }
 0x6f2   :  { %v2174_v60 = vpop.xlane.xlu0 %2173 }
 0x6f3   :  { %v2175_v61 = vrot.slane %v2174_v60, 4 }
 0x6f5   :  { %v2176_v63 = vmin.f32 %v2174_v60, %v2175_v61 }
 0x6f6   :  { %v2578_v50 = vpop.xlane.xlu0 %2577 }
 0x6f7   :  { %v2177_v0 = vrot.slane %v2176_v63, 2  ;;  %v2579_v51 = vrot.slane %v2578_v50, 4 }
 0x6f9   :  { %v2178_v3 = vmin.f32 %v2176_v63, %v2177_v0  ;;  %v2580_v57 = vmin.f32 %v2578_v50, %v2579_v51 }
 0x6fb   :  { %v2179_v4 = vrot.slane %v2178_v3, 1  ;;  %v2581_v59 = vrot.slane %v2580_v57, 2 }
 0x6fd   :  { %v2180_v5 = vmin.f32 %v2178_v3, %v2179_v4 }
 0x6ff   :  { %3335 = vpush %v2180_v5  ;;  %v2582_v5 = vmin.f32 %v2580_v57, %v2581_v59 }
 0x710   :  { %s3332_s29 = spop %3331 }
 0x711   :  { %s3334_s30 = spop %3333  ;;  %v2159_v11 = vstv %s3332_s29 }
 0x712   :  { %v2170_v14 = vstv %s3334_s30 }
 0x713   :  { %v2171_v46 = vmin.f32 %v2159_v11, %v2170_v14  ;;  %v2583_v14 = vrot.slane %v2582_v5, 1 }
 0x714   :  { %v2601_v53 = vpop.xlane.xlu0 %2600 }
 0x715   :  { %v2602_v58 = vrot.slane %v2601_v53, 4  ;;  %v2584_v44 = vmin.f32 %v2582_v5, %v2583_v14 }
 0x717   :  { %v2603_v60 = vmin.f32 %v2601_v53, %v2602_v58 }
 0x719   :  { %v2604_v3 = vrot.slane %v2603_v60, 2 }
 0x71b   :  { %v2605_v43 = vmin.f32 %v2603_v60, %v2604_v3 }
 0x730   :  { %s3336_s3 = spop %3335 }
 0x731   :  { %v2182_v55 = vstv %s3336_s3 }
 0x732   :  { %v2183_v15 = vmin.f32 %v2171_v46, %v2182_v55 }
 0x734   :  { %v2184_v56 = vmin.f32 %v2183_v15, 0.0 }
 0x736   :  { %v2185_v29 = vsub.f32 %v5705_v12, %v2184_v56  ;;  %v2186_v30 = vsub.f32 %v5707_v13, %v2184_v56  ;;  %v2187_v31 = vsub.f32 %v5713_v24, %v2184_v56  ;;  %v3461_v12 = vpop.eup %3460  ;;  %v2606_v56 = vrot.slane %v2605_v43, 1 }
 0x737   :  { %v3463_v13 = vpop.eup %3462 }
 0x738   :  { %v2188_v9 = vmul.f32 1000.0, %v2185_v29  ;;  %v2189_v10 = vmul.f32 1000.0, %v2186_v30  ;;  %v2190_v18 = vmul.f32 1000.0, %v2187_v31  ;;  %v2559_v24 = vadd.f32 %v3463_v13, %v3461_v12 }
 0x739   :  { %v2607_v30 = vmin.f32 %v2605_v43, %v2606_v56 }
 0x73a   :  { %v2191_v19 = vmax.f32 %v2188_v9, %v2189_v10 }
 0x73c   :  { %v2192_v20 = vmax.f32 %v2191_v19, %v2190_v18 }
 0x73e   :  { %v2193_v21 = vsub.f32 %v2188_v9, %v2192_v20  ;;  %v2196_v22 = vsub.f32 %v2189_v10, %v2192_v20  ;;  %v2200_v23 = vsub.f32 %v2190_v18, %v2192_v20 }
 0x740   :  { %v2194_v25 = vmul.f32 1.442695, %v2193_v21  ;;  %v2197_v2 = vmul.f32 1.442695, %v2196_v22  ;;  %v2201_v26 = vmul.f32 1.442695, %v2200_v23 }
 0x742   :  { %3464 = vpow2.f32 %v2194_v25 }
 0x743   :  { %3466 = vpow2.f32 %v2197_v2 }
 0x744   :  { %3468 = vpow2.f32 %v2201_v26 }
 0x745   :  { %3470 = vlog2.f32 %v2559_v24 }
 0x74f   :  { %v3465_v1 = vpop.eup %3464 }
 0x750   :  { %v3467_v27 = vpop.eup %3466 }
 0x751   :  { %v2199_v28 = vadd.f32 %v3467_v27, %v3465_v1  ;;  %v3469_v33 = vpop.eup %3468 }
 0x752   :  { %v3471_v36 = vpop.eup %3470 }
 0x753   :  { %v2203_v34 = vadd.f32 %v3469_v33, %v2199_v28  ;;  %v2561_v38 = vmul.f32 0.6931472, %v3471_v36 }
 0x755   :  { %3472 = vlog2.f32 %v2203_v34  ;;  %v2562_v42 = vadd.f32 %v2561_v38, %v2552_v8 }
 0x757   :  { %v2563_v48 = vmul.f32 -0.001, %v2562_v42 }
 0x759   :  { %v2587_v49 = vsel %vm1232_vm3, %v2563_v48, inf }
 0x762   :  { %v3473_v39 = vpop.eup %3472 }
 0x763   :  { %v2205_v40 = vmul.f32 0.6931472, %v3473_v39 }
 0x765   :  { %v2206_v52 = vadd.f32 %v2205_v40, %v2192_v20 }
 0x767   :  { %v5728_v45 = vmul.f32 0.001, %v2206_v52  ;;  %v2652_v52 = vmul.f32 1000.0, %v5187_v35 }
 0x769   :  { %v2208_v47 = vsel %vm1232_vm3, %v5728_v45, -inf }
 0x76a   :  { %2209 = vmax.xlane.f32.xlu1 %v2208_v47 }
 0x76e   :  { %2588 = vmin.xlane.f32.xlu1 %v2587_v49 }
 0x7f3   :  { %v2210_v61 = vpop.xlane.xlu1 %2209 }
 0x7f4   :  { %v2211_v63 = vrot.slane %v2210_v61, 4 }
 0x7f6   :  { %v2212_v0 = vmax.f32 %v2210_v61, %v2211_v63 }
 0x7f7   :  { %v2589_v4 = vpop.xlane.xlu1 %2588 }
 0x7f8   :  { %v2213_v62 = vrot.slane %v2212_v0, 2  ;;  %v2590_v41 = vrot.slane %v2589_v4, 4 }
 0x7fa   :  { %v2591_v6 = vmin.f32 %v2589_v4, %v2590_v41  ;;  %v2214_v11 = vmax.f32 %v2212_v0, %v2213_v62 }
 0x7fc   :  { %v2592_v8 = vrot.slane %v2591_v6, 2  ;;  %v2215_v46 = vrot.slane %v2214_v11, 1 }
 0x7fe   :  { %v2216_v55 = vmax.f32 %v2214_v11, %v2215_v46  ;;  %v2593_v15 = vmin.f32 %v2591_v6, %v2592_v8 }
 0x800   :  { %3337 = vpush %v2216_v55  ;;  %v2594_v54 = vrot.slane %v2593_v15, 1 }
 0x801   :  { %3339 = vpush %v2584_v44 }
 0x802   :  { %v2595_v29 = vmin.f32 %v2593_v15, %v2594_v54 }
 0x804   :  { %3341 = vpush %v2595_v29 }
 0x805   :  { %3343 = vpush %v2607_v30 }
 0x831   :  { %s3338_s4 = spop %3337 }
 0x832   :  { %v2218_v31 = vstv %s3338_s4  ;;  %s3340_s5 = spop %3339 }
 0x833   :  { %v2219_v7 = vmax.f32 %v2218_v31, 1.0  ;;  %v2586_v9 = vstv %s3340_s5 }
 0x835   :  { %3474 = vrcp.f32 %v2219_v7  ;;  %s3342_s6 = spop %3341 }
 0x836   :  { %v2597_v10 = vstv %s3342_s6  ;;  %s3344_s7 = spop %3343 }
 0x837   :  { %v2598_v16 = vmin.f32 %v2586_v9, %v2597_v10  ;;  %v2609_v18 = vstv %s3344_s7 }
 0x839   :  { %v2610_v19 = vmin.f32 %v2598_v16, %v2609_v18 }
 0x83b   :  { %v2611_v20 = vmin.f32 %v2610_v19, 0.0 }
 0x83d   :  { %v2612_v21 = vsub.f32 %v5717_v17, %v2611_v20  ;;  %v2613_v22 = vsub.f32 %v2563_v48, %v2611_v20  ;;  %v2614_v23 = vsub.f32 %v5721_v37, %v2611_v20 }
 0x83f   :  { %v2615_v25 = vmul.f32 1000.0, %v2612_v21  ;;  %v2616_v2 = vmul.f32 1000.0, %v2613_v22  ;;  %v2617_v26 = vmul.f32 1000.0, %v2614_v23 }
 0x841   :  { %v2618_v12 = vmax.f32 %v2615_v25, %v2616_v2 }
 0x842   :  { %v3475_v13 = vpop.eup %3474 }
 0x843   :  { %v2221_v24 = vmul.f32 %v3475_v13, %v2219_v7  ;;  %v2619_v1 = vmax.f32 %v2618_v12, %v2617_v26 }
 0x845   :  { %v2222_v27 = vsub.f32 2.0, %v2221_v24  ;;  %v2620_v28 = vsub.f32 %v2615_v25, %v2619_v1  ;;  %v2623_v33 = vsub.f32 %v2616_v2, %v2619_v1  ;;  %v2627_v34 = vsub.f32 %v2617_v26, %v2619_v1 }
 0x846   :  { %v2677_v25 = vmul.f32 1000.0, %v5441_v32 }
 0x847   :  { %v2223_v36 = vmul.f32 %v3475_v13, %v2222_v27  ;;  %v2621_v38 = vmul.f32 1.442695, %v2620_v28  ;;  %v2624_v39 = vmul.f32 1.442695, %v2623_v33  ;;  %v2628_v40 = vmul.f32 1.442695, %v2627_v34 }
 0x849   :  { %v2224_v17 = vmul.f32 %v2223_v36, %v5728_v45  ;;  %3476 = vpow2.f32 %v2621_v38 }
 0x84a   :  { %3478 = vpow2.f32 %v2624_v39 }
 0x84b   :  { %v2653_v37 = vmul.f32 1000.0, %v2224_v17  ;;  %3480 = vpow2.f32 %v2628_v40 }
 0x84d   :  { %v2654_v42 = vmax.f32 %v2652_v52, %v2653_v37 }
 0x84f   :  { %v2655_v47 = vsub.f32 %v2652_v52, %v2654_v42  ;;  %v2658_v48 = vsub.f32 %v2653_v37, %v2654_v42 }
 0x851   :  { %v2656_v49 = vmul.f32 1.442695, %v2655_v47  ;;  %v2659_v50 = vmul.f32 1.442695, %v2658_v48 }
 0x853   :  { %3482 = vpow2.f32 %v2656_v49 }
 0x854   :  { %3484 = vpow2.f32 %v2659_v50 }
 0x856   :  { %v3477_v51 = vpop.eup %3476 }
 0x857   :  { %v3479_v53 = vpop.eup %3478 }
 0x858   :  { %v2626_v57 = vadd.f32 %v3479_v53, %v3477_v51  ;;  %v3481_v58 = vpop.eup %3480 }
 0x85a   :  { %v2630_v59 = vadd.f32 %v3481_v58, %v2626_v57 }
 0x85c   :  { %3486 = vlog2.f32 %v2630_v59 }
 0x860   :  { %v3483_v45 = vpop.eup %3482 }
 0x861   :  { %v3485_v60 = vpop.eup %3484 }
 0x862   :  { %v2661_v61 = vadd.f32 %v3485_v60, %v3483_v45 }
 0x864   :  { %3488 = vlog2.f32 %v2661_v61 }
 0x869   :  { %v3487_v63 = vpop.eup %3486 }
 0x86a   :  { %v2632_v35 = vmul.f32 0.6931472, %v3487_v63 }
 0x86c   :  { %v2633_v0 = vadd.f32 %v2632_v35, %v2619_v1 }
 0x86e   :  { %v2634_v3 = vmul.f32 0.001, %v2633_v0 }
 0x870   :  { %v2635_v4 = vsel %vm1232_vm3, %v2634_v3, -inf }
 0x871   :  { %v3489_v5 = vpop.eup %3488  ;;  %2636 = vmax.xlane.f32.xlu1 %v2635_v4 }
 0x872   :  { %v2663_v62 = vmul.f32 0.6931472, %v3489_v5 }
 0x874   :  { %v2664_v41 = vadd.f32 %v2663_v62, %v2654_v42 }
 0x876   :  { %v5738_v6 = vmul.f32 0.001, %v2664_v41 }
 0x878   :  { %v2666_v11 = vsel %vm1232_vm3, %v5738_v6, -inf }
 0x879   :  { %2667 = vmax.xlane.f32.xlu0 %v2666_v11 }
 0x8fa   :  { %v2637_v14 = vpop.xlane.xlu1 %2636 }
 0x8fb   :  { %v2638_v43 = vrot.slane %v2637_v14, 4 }
 0x8fd   :  { %v2639_v8 = vmax.f32 %v2637_v14, %v2638_v43 }
 0x8ff   :  { %v2640_v46 = vrot.slane %v2639_v8, 2 }
 0x901   :  { %v2641_v55 = vmax.f32 %v2639_v8, %v2640_v46 }
 0x902   :  { %v2668_v15 = vpop.xlane.xlu0 %2667 }
 0x903   :  { %v2669_v44 = vrot.slane %v2668_v15, 4  ;;  %v2642_v56 = vrot.slane %v2641_v55, 1 }
 0x905   :  { %v2670_v54 = vmax.f32 %v2668_v15, %v2669_v44  ;;  %v2643_v29 = vmax.f32 %v2641_v55, %v2642_v56 }
 0x907   :  { %v2671_v30 = vrot.slane %v2670_v54, 2  ;;  %3345 = vpush %v2643_v29 }
 0x909   :  { %v2672_v31 = vmax.f32 %v2670_v54, %v2671_v30 }
 0x90b   :  { %v2673_v7 = vrot.slane %v2672_v31, 1 }
 0x90d   :  { %v2674_v9 = vmax.f32 %v2672_v31, %v2673_v7 }
 0x90f   :  { %3347 = vpush %v2674_v9 }
 0x938   :  { %s3346_s8 = spop %3345 }
 0x939   :  { %v2645_v10 = vstv %s3346_s8 }
 0x93a   :  { %v2646_v16 = vmax.f32 %v2645_v10, 1.0 }
 0x93c   :  { %3490 = vrcp.f32 %v2646_v16 }
 0x940   :  { %s3348_s9 = spop %3347 }
 0x941   :  { %v2676_v48 = vstv %s3348_s9 }
 0x949   :  { %v3491_v18 = vpop.eup %3490 }
 0x94a   :  { %v2648_v19 = vmul.f32 %v3491_v18, %v2646_v16 }
 0x94c   :  { %v2649_v20 = vsub.f32 2.0, %v2648_v19 }
 0x94e   :  { %v2650_v21 = vmul.f32 %v3491_v18, %v2649_v20 }
 0x950   :  { %v2651_v22 = vmul.f32 %v2650_v21, %v2634_v3 }
 0x952   :  { %v2678_v23 = vmul.f32 1000.0, %v2651_v22 }
 0x954   :  { %v2679_v2 = vmax.f32 %v2677_v25, %v2678_v23 }
 0x956   :  { %v2680_v26 = vsub.f32 %v2677_v25, %v2679_v2  ;;  %v2683_v12 = vsub.f32 %v2678_v23, %v2679_v2 }
 0x958   :  { %v2681_v13 = vmul.f32 1.442695, %v2680_v26  ;;  %v2684_v24 = vmul.f32 1.442695, %v2683_v12 }
 0x95a   :  { %3492 = vpow2.f32 %v2681_v13 }
 0x95b   :  { %3494 = vpow2.f32 %v2684_v24 }
 0x967   :  { %v3493_v1 = vpop.eup %3492 }
 0x968   :  { %v3495_v27 = vpop.eup %3494 }
 0x969   :  { %v2686_v28 = vadd.f32 %v3495_v27, %v3493_v1 }
 0x96b   :  { %3496 = vlog2.f32 %v2686_v28 }
 0x978   :  { %v3497_v33 = vpop.eup %3496 }
 0x979   :  { %v2688_v34 = vmul.f32 0.6931472, %v3497_v33 }
 0x97b   :  { %v2689_v36 = vadd.f32 %v2688_v34, %v2679_v2 }
 0x97d   :  { %v2690_v38 = vmul.f32 0.001, %v2689_v36 }
 0x97f   :  { %v2691_v39 = vsel %vm1232_vm3, %v2690_v38, -inf }
 0x980   :  { %2692 = vmax.xlane.f32.xlu1 %v2691_v39 }
 0xa09   :  { %v2693_v40 = vpop.xlane.xlu1 %2692 }
 0xa0a   :  { %v2694_v32 = vrot.slane %v2693_v40, 4 }
 0xa0c   :  { %v2695_v17 = vmax.f32 %v2693_v40, %v2694_v32 }
 0xa0e   :  { %v2696_v37 = vrot.slane %v2695_v17, 2 }
 0xa10   :  { %v2697_v52 = vmax.f32 %v2695_v17, %v2696_v37 }
 0xa12   :  { %v2698_v42 = vrot.slane %v2697_v52, 1 }
 0xa14   :  { %v2699_v47 = vmax.f32 %v2697_v52, %v2698_v42 }
 0xa16   :  { %3349 = vpush %v2699_v47 }
 0xa47   :  { %s3350_s10 = spop %3349 }
 0xa48   :  { %v2701_v49 = vstv %s3350_s10 }
 0xa49   :  { %v2702_v50 = vmax.f32 %v2676_v48, %v2701_v49 }
 0xa4b   :  { %v2703_v51 = vmax.f32 %v2702_v50, 1.0 }
 0xa4d   :  { %3498 = vrcp.f32 %v2703_v51 }
 0xa5a   :  { %v3499_v53 = vpop.eup %3498 }
 0xa5b   :  { %v2705_v57 = vmul.f32 %v3499_v53, %v2703_v51 }
 0xa5d   :  { %v2706_v58 = vsub.f32 2.0, %v2705_v57 }
 0xa5f   :  { %v2707_v59 = vmul.f32 %v3499_v53, %v2706_v58 }
 0xa61   :  { %v2708_v45 = vmul.f32 %v2707_v59, %v5738_v6  ;;  %v2710_v60 = vmul.f32 %v2707_v59, %v2690_v38 }
 0xa63   :  { %2709 = vst [vmem:[#allocation3] sm:$0x3] %v2708_v45  ;;  %2711 = vst [vmem:[#allocation3 + $0x2] sm:$0x3] %v2710_v60 }
 0xa6a   :  { %v2712_v61 = vld [vmem:[#allocation3] sm:$0xf]  }
 0xa6b   :  { %2713 = vst [vmem:[#allocation9] sm:$0xf] %v2712_v61  }
 0xa6c   :  { %3552 = shalt.err (!%p3549_p0)
}
 0xa6d   :  { %s3574_s14 = smov 32   ;;  %s3575_s15 = smov 2  }
 0xa6e   :  { %2728 = dma.vmem_to_hbm [thread:$0]  %s2723_s12, 64, %s5750_s2, [#allocation6], %s3574_s14, %s3574_s14, %s3575_s15  }
 0xa6f   :  { %3565 = dma.done.wait [#allocation6], 64  }
 0xa70   :  { %3566 = vsyncadd [#allocation6], 4294967232 }
 0xa71   :  { %2732 = vsyncpa [#allocation5], 1 }
 0xa72   :  { %2733 = vsyncpa [#allocation8], 1 }
 0xa73   :  { %2734 = vsyncpa [#allocation6], 1 }

</bundles_post_ra>
